<compile_context>
chip_gen: v6e
topology: v6e:2x2x1
jax: 0.10.0
libtpu: 0.0.40
codegen_flags: <defaults>
</compile_context>

<pallas_src>
import math

import jax
import jax.numpy as jnp
import numpy as np
from jax.experimental import pallas as pl
from jax.experimental.pallas import tpu as pltpu


def _round_up(a: int, b: int) -> int:
    return (a + b - 1) // b * b


def _fourier_kernel(x_ref, w_ref, b_ref, out_ref):
    # x_ref:   (tile, R*C)       packed coordinates (R original rows per packed row)
    # w_ref:   (R*C, R*2*C*L)    resident bf16 block-diagonal expand+scale matrix
    # b_ref:   (1,   R*2*C*L)    f32 phase bias: 0 on cos columns, -pi/2 on sin columns
    # out_ref: (tile, R*2*C*L)   packed [cos | sin] features
    w = w_ref[...]
    if jnp.dtype(x_ref.dtype) == jnp.dtype(jnp.bfloat16):
        # bf16 coordinates: one bf16 x bf16 -> f32 MXU pass is already exact.
        args = jnp.dot(x_ref[...], w, preferred_element_type=jnp.float32)
    else:
        # f32 coordinates: manual BF16_BF16_F32_X3.  Every W column holds a single
        # power-of-two entry, so each partial product / partial sum is exact in f32
        # and the result is bit-identical to x * 2**level, at roughly half the MXU
        # passes of precision=HIGHEST.
        x = x_ref[...].astype(jnp.float32)
        xh = x.astype(jnp.bfloat16)
        r1 = x - xh.astype(jnp.float32)
        xm = r1.astype(jnp.bfloat16)
        r2 = r1 - xm.astype(jnp.float32)
        xl = r2.astype(jnp.bfloat16)
        args = (jnp.dot(xh, w, preferred_element_type=jnp.float32)
                + jnp.dot(xm, w, preferred_element_type=jnp.float32)
                + jnp.dot(xl, w, preferred_element_type=jnp.float32))
    # Single transcendental per output element: sin(a) = cos(a - pi/2).
    out_ref[...] = jnp.cos(args + b_ref[...]).astype(out_ref.dtype)


def fourier_features(x: jax.Array, levels: int, *, block_rows: int = 32768,
                     out_dtype=None) -> jax.Array:
    """Pallas TPU implementation of FourierFeatures.forward for x of shape (N, C)."""
    N, C = x.shape
    L = int(levels)
    CL = C * L
    out_w = 2 * CL
    out_dtype = jnp.dtype(x.dtype if out_dtype is None else out_dtype)

    # Pack R original rows per wide row so the packed output width is a multiple of
    # 128 lanes (lane-dense stores / full-width transcendentals).  out_w=24 -> R=16.
    # Do NOT enlarge R to make the input width lane-dense: MXU work scales with R
    # and the input stream is only ~1/8 of the HBM traffic.
    R = 128 // math.gcd(out_w, 128)
    pw_in = R * C
    pw_out = R * out_w

    # Constant expansion matrix (one power-of-two entry per column; exact in bf16)
    # and the f32 phase-bias row.  Both resident in VMEM for the whole grid
    # (constant index_map -> fetched once).
    w_np = np.zeros((pw_in, pw_out), dtype=np.float32)
    b_np = np.zeros((1, pw_out), dtype=np.float32)
    for r in range(R):
        for c in range(C):
            for l in range(L):
                w_np[r * C + c, r * out_w + c * L + l] = 2.0 ** l        # cos half
                w_np[r * C + c, r * out_w + CL + c * L + l] = 2.0 ** l   # sin half
        b_np[0, r * out_w + CL: r * out_w + 2 * CL] = -math.pi / 2.0     # sin = cos(x - pi/2)
    w = jnp.asarray(w_np, dtype=jnp.bfloat16)
    b = jnp.asarray(b_np, dtype=jnp.float32)

    # Pad the (small) input only up to a multiple of R so the packed reshape is a
    # free row-major view.  The grid handles a ragged last block directly (Pallas
    # masks the partial output stores), so there is no pad-to-tile and no full-size
    # out[:N] unpad pass over the expanded output.
    n_rows = _round_up(N, R)
    n_packed = n_rows // R
    x_pad = x if n_rows == N else jnp.pad(x, ((0, n_rows - N), (0, 0)))
    x2 = x_pad.reshape(n_packed, pw_in)

    # Row tiling: dtype-aware sublane multiple.  Default ~2048 packed rows per step
    # (~7 MiB double-buffered I/O + temporaries): amortizes the ~0.35 us/step cost
    # on v6e/v7x and still fits v5e once vmem_limit_bytes below is raised.  Bump
    # block_rows further on v6e/v7x for large N if the grid keeps >=4 steps per TC.
    sub = max({1: 32, 2: 16}.get(jnp.dtype(x.dtype).itemsize, 8),
              {1: 32, 2: 16}.get(out_dtype.itemsize, 8))
    tile = max(1, block_rows // R)
    tile = min(tile, _round_up(n_packed, sub))
    tile = max(sub, _round_up(tile, sub))
    grid = (pl.cdiv(n_packed, tile),)

    cost = pl.CostEstimate(
        flops=2 * 3 * n_packed * pw_in * pw_out,          # three bf16 MXU passes
        transcendentals=n_packed * pw_out,
        bytes_accessed=(n_packed * pw_in * x.dtype.itemsize
                        + int(w.size) * 2
                        + n_packed * pw_out * out_dtype.itemsize),
    )

    out2 = pl.pallas_call(
        _fourier_kernel,
        out_shape=jax.ShapeDtypeStruct((n_packed, pw_out), out_dtype),
        grid_spec=pltpu.PrefetchScalarGridSpec(
            num_scalar_prefetch=0,
            grid=grid,
            in_specs=[
                pl.BlockSpec((tile, pw_in), lambda i: (i, 0)),    # streamed row blocks
                pl.BlockSpec((pw_in, pw_out), lambda i: (0, 0)),  # resident W
                pl.BlockSpec((1, pw_out), lambda i: (0, 0)),      # resident phase bias
            ],
            out_specs=pl.BlockSpec((tile, pw_out), lambda i: (i, 0)),
        ),
        compiler_params=pltpu.CompilerParams(
            dimension_semantics=("parallel",),     # megacore / v7x 2-TC row sharding
            vmem_limit_bytes=32 * 1024 * 1024,     # headroom above v5e's 16 MiB default
        ),
        cost_estimate=cost,
    )(x2, w, b)

    out = out2.reshape(n_rows, out_w)              # free row-major reshape (unpack rows)
    if n_rows != N:
        # Only when N % R != 0: trims at most R-1 padded rows.
        # TODO(synk): a fully slice-free ragged-N path would need a separate
        # lane-masked store of just the final partial row group.
        out = out[:N]
    return out


def fourier_features_ref(x: jax.Array, levels: int) -> jax.Array:
    """Pure-JAX reference matching the PyTorch forward exactly."""
    C = x.shape[1]
    scale = jnp.tile(2.0 ** jnp.arange(levels, dtype=x.dtype), C)
    args = jnp.repeat(x, levels, axis=1) * scale
    return jnp.concatenate([jnp.cos(args), jnp.sin(args)], axis=1)


if __name__ == "__main__":
    levels = 4
    N, C = 1000, 3   # 3-D positions; N not a multiple of R=16 -> exercises ragged last block

    key = jax.random.PRNGKey(0)
    x = jax.random.normal(key, (N, C), dtype=jnp.float32)

    out = jax.block_until_ready(fourier_features(x, levels))
    ref = fourier_features_ref(x, levels)

    assert out.shape == (N, 2 * C * levels), out.shape
    # sin computed as cos(x - fl(pi/2)) plus differing cos lowerings -> ~1e-6 abs error max.
    assert jnp.allclose(out, ref, atol=1e-4, rtol=1e-4), float(jnp.max(jnp.abs(out - ref)))

    print("KERNEL_OK")
</pallas_src>

<mosaic_0001>
module attributes {stable_mosaic.version = 11 : i64} {
  func.func @_fourier_kernel(%arg0: i32, %arg1: memref<64x48xf32, #tpu.memory_space<vmem>>, %arg2: memref<48x384xbf16, #tpu.memory_space<vmem>>, %arg3: memref<1x384xf32, #tpu.memory_space<vmem>>, %arg4: memref<64x384xf32, #tpu.memory_space<vmem>>) attributes {dimension_semantics = [#tpu.dimension_semantics<parallel>], iteration_bounds = array<i64: 1>, scalar_prefetch = 0 : i64, scratch_operands = 0 : i64, tpu.core_type = #tpu.core_type<tc>, window_params = [{transform_indices = @transform_0, window_bounds = array<i64: 64, 48>}, {pipeline_mode = #tpu.pipeline_mode<synchronous>, transform_indices = @transform_1, window_bounds = array<i64: 48, 384>}, {pipeline_mode = #tpu.pipeline_mode<synchronous>, transform_indices = @transform_2, window_bounds = array<i64: 1, 384>}, {transform_indices = @transform_3, window_bounds = array<i64: 64, 384>}]} {
    %c0 = arith.constant 0 : index
    %c0_0 = arith.constant 0 : index
    %0 = vector.load %arg2[%c0, %c0_0] : memref<48x384xbf16, #tpu.memory_space<vmem>>, vector<48x384xbf16>
    %c0_1 = arith.constant 0 : index
    %c0_2 = arith.constant 0 : index
    %1 = vector.load %arg1[%c0_1, %c0_2] : memref<64x48xf32, #tpu.memory_space<vmem>>, vector<64x48xf32>
    %2 = arith.truncf %1 : vector<64x48xf32> to vector<64x48xbf16>
    %3 = arith.extf %2 : vector<64x48xbf16> to vector<64x48xf32>
    %4 = arith.subf %1, %3 : vector<64x48xf32>
    %5 = arith.truncf %4 : vector<64x48xf32> to vector<64x48xbf16>
    %6 = arith.extf %5 : vector<64x48xbf16> to vector<64x48xf32>
    %7 = arith.subf %4, %6 : vector<64x48xf32>
    %8 = arith.truncf %7 : vector<64x48xf32> to vector<64x48xbf16>
    %cst = arith.constant dense<0.000000e+00> : vector<64x384xf32>
    %9 = tpu.matmul %2, %0, %cst {dimension_numbers = #tpu.dot_dimension_numbers<[1], [0], [0], [1], [0, 0, 1, 1], [], []>} : vector<64x48xbf16>, vector<48x384xbf16>, vector<64x384xf32> -> vector<64x384xf32>
    %cst_3 = arith.constant dense<0.000000e+00> : vector<64x384xf32>
    %10 = tpu.matmul %5, %0, %cst_3 {dimension_numbers = #tpu.dot_dimension_numbers<[1], [0], [0], [1], [0, 0, 1, 1], [], []>} : vector<64x48xbf16>, vector<48x384xbf16>, vector<64x384xf32> -> vector<64x384xf32>
    %11 = arith.addf %9, %10 : vector<64x384xf32>
    %cst_4 = arith.constant dense<0.000000e+00> : vector<64x384xf32>
    %12 = tpu.matmul %8, %0, %cst_4 {dimension_numbers = #tpu.dot_dimension_numbers<[1], [0], [0], [1], [0, 0, 1, 1], [], []>} : vector<64x48xbf16>, vector<48x384xbf16>, vector<64x384xf32> -> vector<64x384xf32>
    %13 = arith.addf %11, %12 : vector<64x384xf32>
    %c0_5 = arith.constant 0 : index
    %c0_6 = arith.constant 0 : index
    %14 = vector.load %arg3[%c0_5, %c0_6] : memref<1x384xf32, #tpu.memory_space<vmem>>, vector<1x384xf32>
    %15 = vector.broadcast %14 : vector<1x384xf32> to vector<64x384xf32>
    %16 = arith.addf %13, %15 : vector<64x384xf32>
    %17 = math.cos %16 : vector<64x384xf32>
    %c0_7 = arith.constant 0 : index
    %c0_8 = arith.constant 0 : index
    %18 = vector.load %arg4[%c0_7, %c0_8] : memref<64x384xf32, #tpu.memory_space<vmem>>, vector<64x384xf32>
    tpu.vector_store %arg4[%c0_7, %c0_8], %17 {strides = array<i32>} : memref<64x384xf32, #tpu.memory_space<vmem>>, vector<64x384xf32>,
    return
  }
  func.func @transform_0(%arg0: i32) -> (i32, i32) {
    %c0_i32 = arith.constant 0 : i32
    %c0_i32_0 = arith.constant 0 : i32
    return %arg0, %c0_i32 : i32, i32
  }
  func.func @transform_1(%arg0: i32) -> (i32, i32) {
    %c0_i32 = arith.constant 0 : i32
    %c0_i32_0 = arith.constant 0 : i32
    %c0_i32_1 = arith.constant 0 : i32
    return %c0_i32, %c0_i32_0 : i32, i32
  }
  func.func @transform_2(%arg0: i32) -> (i32, i32) {
    %c0_i32 = arith.constant 0 : i32
    %c0_i32_0 = arith.constant 0 : i32
    %c0_i32_1 = arith.constant 0 : i32
    return %c0_i32, %c0_i32_0 : i32, i32
  }
  func.func @transform_3(%arg0: i32) -> (i32, i32) {
    %c0_i32 = arith.constant 0 : i32
    %c0_i32_0 = arith.constant 0 : i32
    return %arg0, %c0_i32 : i32, i32
  }
}

</mosaic_0001>

<bundles_post_ra>
// kernel: tpu_custom_call.1
= control target key start
LH: loop header
LB: loop body
LE: loop exit
PB: predicated region body
PF: predicated region fallthrough
CT: control target
= control target key end

     0   :  { %v3584_v2 = vmov 0   ;;  %s5762_s0 = inlined_call_operand.vmem [shape: f32[63,48], index: 0, kind: input, shape index: {}]   ;;  %s5763_s1 = inlined_call_operand.vmem [shape: bf16[48,384], index: 1, kind: input, shape index: {}]   ;;  %s5764_s2 = inlined_call_operand.vmem [shape: f32[1,384], index: 2, kind: input, shape index: {}]   ;;  %s5765_s3 = inlined_call_operand.hbm [shape: f32[63,384], index: 3, kind: output, shape index: {}]  }
   0x1   :  { %v3617_v0 = vld [vmem:[%s5763_s1 + $0x34] ss:$12 sps:$4 sm:$0xff]   ;;  %v3622_v1 = vld [vmem:[%s5763_s1 + $0x38] ss:$12 sps:$4 sm:$0xff]   ;;  %173 = vmatprep.mubr.bf16.mxu0 %v3584_v2  ;;  %v3629_v3 = vld [vmem:[%s5763_s1 + $0x30] ss:$12 sps:$4 sm:$0xff]  }
   0x2   :  { %151 = vmatprep.subr.bf16.mxu0 %v3617_v0  ;;  %3306 = vmatprep.subr.bf16.mxu1 %v3622_v1  ;;  %v3635_v4 = vld [vmem:[%s5763_s1 + $0x1c] ss:$12 sps:$4 sm:$0xff]   ;;  %v3642_v5 = vld [vmem:[%s5763_s1 + $0x20] ss:$12 sps:$4 sm:$0xff]   ;;  %v3647_v6 = vld [vmem:[%s5763_s1 + $0x18] ss:$12 sps:$4 sm:$0xff]  }
   0x3   :  { %152 = vmatpush1.bf16.msra.mxu0 %v3629_v3  ;;  %3307 = vmatpush3.bf16.msra.mxu1 %v3622_v1  ;;  %v3653_v7 = vld [vmem:[%s5763_s1 + $0x4] ss:$12 sps:$4 sm:$0xff]   ;;  %v3659_v8 = vld [vmem:[%s5763_s1 + $0x8] ss:$12 sps:$4 sm:$0xff]   ;;  %v3664_v9 = vld [vmem:[%s5763_s1] ss:$12 sps:$4 sm:$0xff]  }
   0x4   :  { %153 = vmatprep.subr.bf16.mxu0 %v3635_v4  ;;  %3308 = vmatprep.subr.bf16.mxu1 %v3642_v5  ;;  %v28_v10 = vld [vmem:[%s5762_s0] sm:$0xff]  ;;  %v29_v11 = vld [vmem:[%s5762_s0 + $0x8] sm:$0xff]  ;;  %v30_v12 = vld [vmem:[%s5762_s0 + $0x10] sm:$0xff] }
   0x5   :  { %v3677_v13 = vpack.c.bf16 %v29_v11, %v28_v10  ;;  %v31_v14 = vld [vmem:[%s5762_s0 + $0x18] sm:$0xff]  ;;  %v32_v15 = vld [vmem:[%s5762_s0 + $0x20] sm:$0xff]  ;;  %v33_v16 = vld [vmem:[%s5762_s0 + $0x28] sm:$0xff] }
   0x6   :  { %v3690_v17 = vpack.c.bf16 %v31_v14, %v30_v12  ;;  %v3692_v18 = vpack.c.bf16 %v33_v16, %v32_v15  ;;  %v34_v19 = vld [vmem:[%s5762_s0 + $0x30] sm:$0xff]  ;;  %v35_v20 = vld [vmem:[%s5762_s0 + $0x38] sm:$0xff] }
   0x7   :  { %154 = vmatpush1.bf16.msra.mxu0 %v3647_v6  ;;  %3309 = vmatpush3.bf16.msra.mxu1 %v3642_v5 }
   0x8   :  { %155 = vmatprep.subr.bf16.mxu0 %v3653_v7  ;;  %3310 = vmatprep.subr.bf16.mxu1 %v3659_v8 }
   0x9   :  { %8 = vsyncpa [#allocation3], 0  ;;  %v40_v21 = vunpack.c.l.bf16 %v3677_v13  ;;  %v41_v22 = vunpack.c.h.bf16 %v3677_v13  ;;  %v3702_v23 = vpack.c.bf16 %v35_v20, %v34_v19  ;;  %v42_v24 = vunpack.c.l.bf16 %v3690_v17 }
   0xa   :  { %v43_v25 = vunpack.c.h.bf16 %v3690_v17  ;;  %v44_v26 = vunpack.c.l.bf16 %v3692_v18  ;;  %v45_v27 = vunpack.c.h.bf16 %v3692_v18  ;;  %vm128_vm0 = vcmask 392192  }
   0xb   :  { %156 = vmatpush1.bf16.msra.mxu0 %v3664_v9  ;;  %3311 = vmatpush3.bf16.msra.mxu1 %v3659_v8  ;;  %v48_v28 = vsub.f32 %v28_v10, %v40_v21  ;;  %v49_v29 = vsub.f32 %v29_v11, %v41_v22  ;;  %v46_v30 = vunpack.c.l.bf16 %v3702_v23  ;;  %v3711_v31 = vsub.f32 %v30_v12, %v42_v24 }
   0xc   :  { %v3713_v32 = vsub.f32 %v31_v14, %v43_v25  ;;  %3320 = vmatprep.subr.bf16.mxu0 %v3622_v1  ;;  %301 = vmatprep.subr.bf16.mxu1 %v3617_v0  ;;  %v3717_v33 = vsub.f32 %v32_v15, %v44_v26  ;;  %v47_v34 = vunpack.c.h.bf16 %v3702_v23  ;;  %v3720_v36 = vsub.f32 %v33_v16, %v45_v27 }
   0xd   :  { %v56_v35 = vpack.c.bf16 %v49_v29, %v48_v28  ;;  %v3730_v39 = vsub.f32 %v34_v19, %v46_v30 }
   0xe   :  { %v57_v37 = vpack.c.bf16 %v3713_v32, %v3711_v31  ;;  %v58_v38 = vpack.c.bf16 %v3720_v36, %v3717_v33  ;;  %v3732_v40 = vsub.f32 %v35_v20, %v47_v34 }
   0xf   :  { %3312 = vmatprep.mubr.msk.bf16.mxu1 %vm128_vm0, %v56_v35  ;;  %3165 = vmatmul.mubr.msk.bf16.vlgmr.msra.gmra.mxu0 %vm128_vm0, %v56_v35  ;;  %v60_v42 = vunpack.c.l.bf16 %v56_v35  ;;  %v61_v43 = vunpack.c.h.bf16 %v56_v35 }
  0x10   :  { %3313 = vmatmul.mubr.msk.bf16.vlgmr.msra.gmra.mxu1 %vm128_vm0, %v57_v37  ;;  %3321 = vmatpush3.bf16.msra.mxu0 %v3622_v1  ;;  %v59_v41 = vpack.c.bf16 %v3732_v40, %v3730_v39  ;;  %v62_v46 = vunpack.c.l.bf16 %v57_v37  ;;  %v63_v47 = vunpack.c.h.bf16 %v57_v37  ;;  %v64_v49 = vunpack.c.l.bf16 %v58_v38 }
  0x11   :  { %302 = vmatpush1.bf16.msra.mxu1 %v3629_v3  ;;  %183 = vmatprep.mubr.bf16.mxu0 %v3584_v2  ;;  %v68_v44 = vsub.f32 %v48_v28, %v60_v42  ;;  %v69_v45 = vsub.f32 %v49_v29, %v61_v43  ;;  %v65_v50 = vunpack.c.h.bf16 %v58_v38  ;;  %v605_v42 = vlaneseq }
  0x12   :  { %3316 = vmatprep.mubr.msk.bf16.mxu1 %vm128_vm0, %v58_v38  ;;  %303 = vmatprep.subr.bf16.mxu1 %v3635_v4  ;;  %v70_v51 = vsub.f32 %v3711_v31, %v62_v46  ;;  %v71_v52 = vsub.f32 %v3713_v32, %v63_v47  ;;  %v72_v53 = vsub.f32 %v3717_v33, %v64_v49  ;;  %v66_v56 = vunpack.c.l.bf16 %v59_v41 }
  0x13   :  { %3322 = vmatprep.subr.bf16.mxu0 %v3642_v5  ;;  %v76_v48 = vpack.c.bf16 %v69_v45, %v68_v44  ;;  %v73_v54 = vsub.f32 %v3720_v36, %v65_v50  ;;  %v67_v57 = vunpack.c.h.bf16 %v59_v41 }
  0x14   :  { %3323 = vmatpush3.bf16.msra.mxu0 %v3642_v5  ;;  %v77_v55 = vpack.c.bf16 %v71_v52, %v70_v51  ;;  %v74_v59 = vsub.f32 %v3730_v39, %v66_v56  ;;  %v606_v51 = vshrl.u32 %v605_v42, 7 }
  0x15   :  { %304 = vmatpush1.bf16.msra.mxu1 %v3647_v6  ;;  %3324 = vmatprep.subr.bf16.mxu0 %v3659_v8  ;;  %v78_v58 = vpack.c.bf16 %v73_v54, %v72_v53  ;;  %v75_v60 = vsub.f32 %v3732_v40, %v67_v57 }
  0x16   :  { %305 = vmatprep.subr.bf16.mxu1 %v3653_v7 }
  0x17   :  { %3166 = vmatmul.mubr.msk.bf16.gmra.mxu0 %vm128_vm0, %v57_v37  ;;  %v79_v61 = vpack.c.bf16 %v75_v60, %v74_v59  ;;  %v607_v60 = vsub.s32 0, %v606_v51 }
  0x18   :  { %3317 = vmatmul.mubr.msk.bf16.gmra.mxu1 %vm128_vm0, %v59_v41  ;;  %193 = vmatprep.mubr.bf16.mxu0 %v3584_v2 }
  0x19   :  { %306 = vmatpush1.bf16.msra.mxu1 %v3664_v9  ;;  %323 = vmatprep.mubr.bf16.mxu1 %v3584_v2 }
  0x1a   :  { %3325 = vmatpush3.bf16.msra.mxu0 %v3659_v8  ;;  %3334 = vmatprep.subr.bf16.mxu1 %v3622_v1 }
  0x1b   :  { %451 = vmatprep.subr.bf16.mxu0 %v3617_v0 }
  0x1f   :  { %3167 = vmatmul.mubr.msk.bf16.gmra.mxu0 %vm128_vm0, %v58_v38 }
  0x20   :  { %3173 = vmatmul.mubr.msk.bf16.vlgmr.msra.gmra.mxu1 %vm128_vm0, %v3677_v13  ;;  %203 = vmatprep.mubr.bf16.mxu0 %v3584_v2 }
  0x21   :  { %333 = vmatprep.mubr.bf16.mxu1 %v3584_v2  ;;  %3335 = vmatpush3.bf16.msra.mxu1 %v3622_v1 }
  0x22   :  { %3336 = vmatprep.subr.bf16.mxu1 %v3642_v5 }
  0x25   :  { %3337 = vmatpush3.bf16.msra.mxu1 %v3642_v5 }
  0x26   :  { %3338 = vmatprep.subr.bf16.mxu1 %v3659_v8 }
  0x27   :  { %3168 = vmatmul.mubr.msk.bf16.gmra.mxu0 %vm128_vm0, %v59_v41 }
  0x28   :  { %3174 = vmatmul.mubr.msk.bf16.gmra.mxu1 %vm128_vm0, %v3690_v17  ;;  %3326 = vmatprep.mubr.msk.bf16.mxu0 %vm128_vm0, %v3677_v13 }
  0x29   :  { %343 = vmatprep.mubr.bf16.mxu1 %v3584_v2  ;;  %3339 = vmatpush3.bf16.msra.mxu1 %v3659_v8 }
  0x2f   :  { %3327 = vmatmul.mubr.msk.bf16.vlgmr.msra.gmra.mxu0 %vm128_vm0, %v3690_v17 }
  0x30   :  { %3175 = vmatmul.mubr.msk.bf16.gmra.mxu1 %vm128_vm0, %v3692_v18  ;;  %452 = vmatpush1.bf16.msra.mxu0 %v3629_v3 }
  0x31   :  { %453 = vmatprep.subr.bf16.mxu0 %v3635_v4  ;;  %353 = vmatprep.mubr.bf16.mxu1 %v3584_v2 }
  0x32   :  { %3330 = vmatprep.mubr.msk.bf16.mxu0 %vm128_vm0, %v3692_v18 }
  0x34   :  { %454 = vmatpush1.bf16.msra.mxu0 %v3647_v6 }
  0x35   :  { %455 = vmatprep.subr.bf16.mxu0 %v3653_v7 }
  0x37   :  { %3331 = vmatmul.mubr.msk.bf16.gmra.mxu0 %vm128_vm0, %v3702_v23 }
  0x38   :  { %3176 = vmatmul.mubr.msk.bf16.gmra.mxu1 %vm128_vm0, %v3702_v23  ;;  %456 = vmatpush1.bf16.msra.mxu0 %v3664_v9 }
  0x39   :  { %473 = vmatprep.mubr.bf16.mxu0 %v3584_v2  ;;  %3340 = vmatprep.mubr.msk.bf16.mxu1 %vm128_vm0, %v76_v48 }
  0x3f   :  { %3181 = vmatmul.mubr.msk.bf16.vlgmr.msra.gmra.mxu0 %vm128_vm0, %v76_v48 }
  0x40   :  { %3341 = vmatmul.mubr.msk.bf16.vlgmr.msra.gmra.mxu1 %vm128_vm0, %v77_v55  ;;  %483 = vmatprep.mubr.bf16.mxu0 %v3584_v2 }
  0x41   :  { %3344 = vmatprep.mubr.msk.bf16.mxu1 %vm128_vm0, %v78_v58 }
  0x47   :  { %3182 = vmatmul.mubr.msk.bf16.gmra.mxu0 %vm128_vm0, %v77_v55 }
  0x48   :  { %3345 = vmatmul.mubr.msk.bf16.gmra.mxu1 %vm128_vm0, %v79_v61  ;;  %493 = vmatprep.mubr.bf16.mxu0 %v3584_v2 }
  0x4f   :  { %3183 = vmatmul.mubr.msk.bf16.gmra.mxu0 %vm128_vm0, %v78_v58 }
  0x50   :  { %503 = vmatprep.mubr.bf16.mxu0 %v3584_v2 }
  0x57   :  { %3184 = vmatmul.mubr.msk.bf16.gmra.mxu0 %vm128_vm0, %v79_v61 }
  0xcf   :  { %v3803_v62 = vpop.f32.mrf.mxu0 }
  0xd0   :  { %v3805_v63 = vpop.f32.mrf.mxu1 }
  0xd1   :  { %v3807_v0 = vpop.f32.mrf.mxu0 }
  0xd2   :  { %v248_v1 = vpop.f32.mrf.mxu1 }
  0xd3   :  { %v179_v3 = vpop.f32.mrf.mxu0 }
  0xd4   :  { %v3315_v4 = vpop.f32.mrf.mxu1 }
  0xd5   :  { %v181_v5 = vpop.f32.mrf.mxu0 }
  0xd6   :  { %v251_v6 = vpop.f32.mrf.mxu1 }
  0xd7   :  { %v185_v7 = vpop.f32.mrf.mxu0 }
  0xd8   :  { %v3318_v8 = vpop.f32.mrf.mxu1 }
  0xd9   :  { %v187_v9 = vpop.f32.mrf.mxu0 }
  0xda   :  { %v264_v10 = vpop.f32.mrf.mxu1 }
  0xdb   :  { %v189_v11 = vpop.f32.mrf.mxu0 }
  0xdc   :  { %v3319_v12 = vpop.f32.mrf.mxu1 }
  0xdd   :  { %v191_v2 = vpop.f32.mrf.mxu0 }
  0xde   :  { %v267_v13 = vpop.f32.mrf.mxu1 }
  0xdf   :  { %v195_v14 = vpop.f32.mrf.mxu0 }
  0xe0   :  { %v325_v15 = vpop.f32.mrf.mxu1 }
  0xe1   :  { %v197_v16 = vpop.f32.mrf.mxu0 }
  0xe2   :  { %v327_v17 = vpop.f32.mrf.mxu1 }
  0xe3   :  { %v199_v18 = vpop.f32.mrf.mxu0 }
  0xe4   :  { %v329_v19 = vpop.f32.mrf.mxu1 }
  0xe5   :  { %v3809_v20 = vadd.f32 %v329_v19, %v179_v3  ;;  %v201_v21 = vpop.f32.mrf.mxu0  ;;  %v603_v3 = vld [vmem:[%s5764_s2] sm:$0x7]  ;;  %s3591_s2 = smov [#allocation2]  }
  0xe6   :  { %v331_v22 = vpop.f32.mrf.mxu1  ;;  %s3145_s19 = sshll.u32 %s3591_s2, 4  ;;  %s3146_s19 = int_to_ptr.vmem [resolvable:$true] %s3145_s19 }
  0xe7   :  { %v3811_v23 = vadd.f32 %v331_v22, %v181_v5  ;;  %v205_v24 = vpop.f32.mrf.mxu0  ;;  %s3562_s20 = scalar_lea.vmem %s3146_s19, 3072  ;;  %p3567_p1 = scmp.lt.s32.totalorder %s3146_s19, %s3146_s19 }
  0xe8   :  { %v335_v25 = vpop.f32.mrf.mxu1  ;;  %p3563_p0 = scmp.ne.s32.totalorder %s3146_s19, %s3562_s20  ;;  %p3568_p2 = scmp.lt.s32.totalorder %s3562_s20, %s3562_s20 }
  0xe9   :  { %v3813_v26 = vadd.f32 %v335_v25, %v185_v7  ;;  %v207_v27 = vpop.f32.mrf.mxu0 }
  0xea   :  { %v337_v28 = vpop.f32.mrf.mxu1  ;;  %p3569_p3 = por %p3568_p2, %p3567_p1 }
  0xeb   :  { %v3815_v29 = vadd.f32 %v337_v28, %v187_v9  ;;  %v209_v30 = vpop.f32.mrf.mxu0  ;;  %v326_v9 = vadd.f32 %v325_v15, %v3803_v62 }
  0xec   :  { %v339_v31 = vpop.f32.mrf.mxu1  ;;  %p3570_p4 = pnand %p3569_p3, %p3563_p0 }
  0xed   :  { %v3817_v32 = vadd.f32 %v339_v31, %v189_v11  ;;  %v211_v33 = vpop.f32.mrf.mxu0 }
  0xee   :  { %v341_v34 = vpop.f32.mrf.mxu1 }
  0xef   :  { %v3819_v35 = vadd.f32 %v341_v34, %v191_v2  ;;  %v3328_v36 = vpop.f32.mrf.mxu0  ;;  %v3851_v2 = vrot.slane %v603_v3, %v607_v60 }
  0xf0   :  { %v345_v37 = vpop.f32.mrf.mxu1 }
  0xf1   :  { %v3821_v38 = vadd.f32 %v345_v37, %v195_v14  ;;  %v398_v39 = vpop.f32.mrf.mxu0  ;;  %v611_v14 = vsub.s32 1, %v606_v51 }
  0xf2   :  { %v347_v40 = vpop.f32.mrf.mxu1  ;;  %v399_v41 = vadd.f32 %v398_v39, %v248_v1 }
  0xf3   :  { %v3823_v43 = vadd.f32 %v347_v40, %v197_v16  ;;  %v3329_v44 = vpop.f32.mrf.mxu0  ;;  %v407_v16 = vadd.f32 %v3328_v36, %v3805_v63  ;;  %v3862_v15 = vrot.slane %v603_v3, %v611_v14  ;;  %v5768_v14 = vmov 683565275  }
  0xf4   :  { %v349_v45 = vpop.f32.mrf.mxu1  ;;  %v3825_v46 = vadd.f32 %v3329_v44, %v3315_v4  ;;  %v615_v4 = vsub.s32 2, %v606_v51 }
  0xf5   :  { %v3827_v47 = vadd.f32 %v349_v45, %v199_v18  ;;  %v401_v48 = vpop.f32.mrf.mxu0 }
  0xf6   :  { %v351_v49 = vpop.f32.mrf.mxu1  ;;  %v3829_v50 = vadd.f32 %v401_v48, %v251_v6 }
  0xf7   :  { %v3831_v52 = vadd.f32 %v351_v49, %v201_v21  ;;  %v3332_v53 = vpop.f32.mrf.mxu0  ;;  %v3856_v21 = vrot.slane %v603_v3, %v615_v4 }
  0xf8   :  { %v355_v54 = vpop.f32.mrf.mxu1  ;;  %v3833_v55 = vadd.f32 %v3332_v53, %v3318_v8 }
  0xf9   :  { %v3835_v56 = vadd.f32 %v355_v54, %v205_v24  ;;  %v414_v57 = vpop.f32.mrf.mxu0 }
  0xfa   :  { %v357_v58 = vpop.f32.mrf.mxu1  ;;  %v3837_v59 = vadd.f32 %v414_v57, %v264_v10 }
  0xfb   :  { %v3839_v61 = vadd.f32 %v357_v58, %v207_v27  ;;  %v3333_v1 = vpop.f32.mrf.mxu0 }
  0xfc   :  { %v359_v5 = vpop.f32.mrf.mxu1  ;;  %v3844_v6 = vadd.f32 %v3333_v1, %v3319_v12  ;;  %v328_v12 = vadd.f32 %v327_v17, %v3807_v0 }
  0xfd   :  { %v3846_v7 = vadd.f32 %v359_v5, %v209_v30  ;;  %v417_v8 = vpop.f32.mrf.mxu0 }
  0xfe   :  { %v361_v11 = vpop.f32.mrf.mxu1  ;;  %v3849_v10 = vadd.f32 %v417_v8, %v267_v13 }
  0xff   :  { %5778 = vst [vmem:[#allocation5_spill] sm:$0xff] %v3846_v7  ;;  %v3854_v18 = vadd.f32 %v361_v11, %v211_v33  ;;  %v475_v19 = vpop.f32.mrf.mxu0 }
 0x100   :  { %v579_v22 = vadd.f32 %v475_v19, %v326_v9  ;;  %v3342_v24 = vpop.f32.mrf.mxu1 }
 0x101   :  { %5779 = vst [vmem:[#allocation6_spill] sm:$0xff] %v3854_v18  ;;  %v587_v25 = vadd.f32 %v3342_v24, %v407_v16  ;;  %v477_v27 = vpop.f32.mrf.mxu0 }
 0x102   :  { %v3860_v62 = vadd.f32 %v3851_v2, %v579_v22  ;;  %v580_v13 = vadd.f32 %v477_v27, %v328_v12  ;;  %v548_v39 = vpop.f32.mrf.mxu1  ;;  %v5770_v22 = vmov 2475754826  }
 0x103   :  { %v3865_v28 = vadd.f32 %v3856_v21, %v587_v25  ;;  %v581_v48 = vadd.f32 %v548_v39, %v399_v41  ;;  %v5775_v25 = vmov 2131351028  }
 0x104   :  { %v5767_v63 = vand.u32 2147483647, %v3860_v62  ;;  %v647_v30 = vand.u32 2139095040, %v3860_v62  ;;  %v3872_v33 = vadd.f32 %v3862_v15, %v580_v13  ;;  %v5772_v13 = vmov 2102212464  }
 0x105   :  { %v5766_v31 = vand.u32 2147483647, %v3865_v28  ;;  %v1471_v0 = vand.u32 2139095040, %v3865_v28  ;;  %v3880_v4 = vadd.f32 %v3856_v21, %v581_v48 }
 0x106   :  { %v648_v17 = vshrl.u32 %v647_v30, 23  ;;  %v651_v34 = vand.u32 8388607, %v5767_v63  ;;  %v750_v44 = vand.u32 2139095040, %v3872_v33 }
 0x107   :  { %v1472_v36 = vshrl.u32 %v1471_v0, 23  ;;  %v1475_v37 = vand.u32 8388607, %v5766_v31  ;;  %v3589_v0 = vmov 920167782  }
 0x108   :  { %v3189_v40 = vadd.s32 4294967169, %v648_v17  ;;  %v652_v49 = vor.u32 8388608, %v651_v34  ;;  %v751_v54 = vshrl.u32 %v750_v44, 23 }
 0x109   :  { %v3221_v42 = vadd.s32 4294967169, %v1472_v36  ;;  %v1476_v51 = vor.u32 8388608, %v1475_v37 }
 0x10a   :  { %v654_v45 = vadd.s32 1, %v3189_v40  ;;  %v3193_v58 = vadd.s32 4294967169, %v751_v54  ;;  %v3882_v5 = vshll.u32 %v652_v49, 8 }
 0x10b   :  { %v1478_v53 = vadd.s32 1, %v3221_v42  ;;  %v3886_v9 = vshll.u32 %v1476_v51, 8  ;;  %v3590_v42 = vmov 1326507024  }
 0x10c   :  { %vm655_vm1 = vcmp.gt.s32.totalorder %v654_v45, 0  ;;  %v3890_v12 = vadd.s32 1, %v3193_v58 }
 0x10d   :  { %v656_v57 = vsel %vm655_vm1, %v654_v45, 0  ;;  %vm1479_vm2 = vcmp.gt.s32.totalorder %v1478_v53, 0 }
 0x10e   :  { %v657_v60 = vshrl.u32 %v656_v57, 5  ;;  %v658_v1 = vand.u32 31, %v656_v57  ;;  %v1480_v3 = vsel %vm1479_vm2, %v1478_v53, 0  ;;  %vm758_vm12 = vcmp.gt.s32.totalorder %v3890_v12, 0 }
 0x10f   :  { %v3884_v8 = vshrl.u32 %v1480_v3, 5  ;;  %v1482_v19 = vand.u32 31, %v1480_v3  ;;  %vm646_vm2 = vcmp.lt.s32.totalorder %v3860_v62, 0 }
 0x110   :  { %v659_v11 = vsub.s32 32, %v658_v1  ;;  %v661_v16 = vshll.u32 %v5768_v14, %v658_v1  ;;  %v664_v24 = vshll.u32 %v5770_v22, %v658_v1  ;;  %v667_v27 = vshll.u32 %v5775_v25, %v658_v1 }
 0x111   :  { %v670_v30 = vshll.u32 %v5772_v13, %v658_v1  ;;  %v673_v17 = vshll.u32 %v3589_v0, %v658_v1  ;;  %vm676_vm3 = vcmp.lt.s32.totalorder %v657_v60, 1  ;;  %vm677_vm4 = vcmp.lt.s32.totalorder %v657_v60, 2 }
 0x112   :  { %v662_v34 = vshrl.u32 %v5770_v22, %v659_v11  ;;  %v665_v36 = vshrl.u32 %v5775_v25, %v659_v11  ;;  %v668_v37 = vshrl.u32 %v5772_v13, %v659_v11  ;;  %v660_v39 = vshrl.u32 %v5768_v14, %v659_v11 }
 0x113   :  { %v671_v40 = vshrl.u32 %v3589_v0, %v659_v11  ;;  %v674_v44 = vshrl.u32 %v3590_v42, %v659_v11  ;;  %v1483_v51 = vsub.s32 32, %v1482_v19  ;;  %vm678_vm5 = vcmp.lt.s32.totalorder %v657_v60, 3 }
 0x114   :  { %v663_v45 = vor.u32 %v662_v34, %v661_v16  ;;  %v666_v48 = vor.u32 %v665_v36, %v664_v24  ;;  %v669_v49 = vor.u32 %v668_v37, %v667_v27  ;;  %vm679_vm6 = vcmp.lt.s32.totalorder %v657_v60, 4 }
 0x115   :  { %v672_v53 = vor.u32 %v671_v40, %v670_v30  ;;  %v675_v54 = vor.u32 %v674_v44, %v673_v17  ;;  %v1485_v11 = vshll.u32 %v5768_v14, %v1482_v19  ;;  %v1486_v27 = vshrl.u32 %v5770_v22, %v1483_v51 }
 0x116   :  { %v680_v57 = vsel %vm676_vm3, %v660_v39, %v663_v45  ;;  %v681_v58 = vsel %vm679_vm6, %v669_v49, 2102212464  ;;  %v684_v1 = vsel %vm676_vm3, %v663_v45, %v666_v48  ;;  %v688_v3 = vsel %vm676_vm3, %v666_v48, %v669_v49 }
 0x117   :  { %v682_v31 = vsel %vm678_vm5, %v666_v48, %v681_v58  ;;  %v685_v63 = vsel %vm679_vm6, %v672_v53, 920167782  ;;  %v689_v41 = vsel %vm679_vm6, %v675_v54, 1326507024  ;;  %v1488_v30 = vshll.u32 %v5770_v22, %v1482_v19 }
 0x118   :  { %v686_v16 = vsel %vm678_vm5, %v669_v49, %v685_v63  ;;  %v690_v24 = vsel %vm678_vm5, %v672_v53, %v689_v41  ;;  %v683_v17 = vsel %vm677_vm4, %v680_v57, %v682_v31  ;;  %v1489_v37 = vshrl.u32 %v5775_v25, %v1483_v51 }
 0x119   :  { %v687_v34 = vsel %vm677_vm4, %v684_v1, %v686_v16  ;;  %v691_v36 = vsel %vm677_vm4, %v688_v3, %v690_v24  ;;  %v1487_v41 = vor.u32 %v1486_v27, %v1485_v11  ;;  %v1491_v48 = vshll.u32 %v5775_v25, %v1482_v19 }
 0x11a   :  { %v3913_v39 = vmul.u32.u64.low %v3882_v5, %v691_v36  ;;  %v3914_v40 = vmul.u32.u64.high %v3882_v5, %v691_v36, %v3913_v39  ;;  %v3917_v44 = vmul.u32.u64.low %v3882_v5, %v687_v34  ;;  %v3918_v63 = vmul.u32.u64.high %v3882_v5, %v687_v34, %v3917_v44 }
 0x11b   :  { %v1490_v45 = vor.u32 %v1489_v37, %v1488_v30  ;;  %v1492_v31 = vshrl.u32 %v5772_v13, %v1483_v51  ;;  %v1484_v49 = vshrl.u32 %v5768_v14, %v1483_v51  ;;  %v1494_v60 = vshll.u32 %v5772_v13, %v1482_v19 }
 0x11c   :  { %v1495_v53 = vshrl.u32 %v3589_v0, %v1483_v51  ;;  %v1498_v54 = vshrl.u32 %v3590_v42, %v1483_v51  ;;  %v699_v57 = vmul.u32 %v3882_v5, %v683_v17  ;;  %v1497_v1 = vshll.u32 %v3589_v0, %v1482_v19 }
 0x11d   :  { %v1493_v58 = vor.u32 %v1492_v31, %v1491_v48  ;;  %vm1500_vm7 = vcmp.lt.s32.totalorder %v3884_v8, 1  ;;  %vm701_vm8 = vc.u32 %v3914_v40, %v3917_v44  ;;  %v702_v3 = vadd.s32 1, %v3918_v63 }
 0x11e   :  { %v1496_v11 = vor.u32 %v1495_v53, %v1494_v60  ;;  %vm1501_vm9 = vcmp.lt.s32.totalorder %v3884_v8, 2  ;;  %v1499_v16 = vor.u32 %v1498_v54, %v1497_v1  ;;  %vm1502_vm10 = vcmp.lt.s32.totalorder %v3884_v8, 3 }
 0x11f   :  { %vm1503_vm11 = vcmp.lt.s32.totalorder %v3884_v8, 4  ;;  %v1508_v51 = vsel %vm1500_vm7, %v1487_v41, %v1490_v45  ;;  %v703_v5 = vsel %vm701_vm8, %v702_v3, %v3918_v63  ;;  %v1512_v19 = vsel %vm1500_vm7, %v1490_v45, %v1493_v58 }
 0x120   :  { %v1505_v24 = vsel %vm1503_vm11, %v1493_v58, 2102212464  ;;  %v1509_v27 = vsel %vm1503_vm11, %v1496_v11, 920167782  ;;  %v704_v30 = vadd.s32 %v703_v5, %v699_v57  ;;  %v1504_v17 = vsel %vm1500_vm7, %v1484_v49, %v1487_v41 }
 0x121   :  { %v1510_v34 = vsel %vm1502_vm10, %v1493_v58, %v1509_v27  ;;  %v1513_v36 = vsel %vm1503_vm11, %v1499_v16, 1326507024  ;;  %v1506_v37 = vsel %vm1502_vm10, %v1490_v45, %v1505_v24  ;;  %v5780_v45 = vand.u32 2147483647, %v3872_v33 }
 0x122   :  { %v1511_v39 = vsel %vm1501_vm9, %v1508_v51, %v1510_v34  ;;  %v1514_v48 = vsel %vm1502_vm10, %v1496_v11, %v1513_v36  ;;  %v705_v31 = vadd.s32 536870912, %v704_v30  ;;  %v759_v57 = vsel %vm758_vm12, %v3890_v12, 0 }
 0x123   :  { %v1515_v60 = vsel %vm1501_vm9, %v1512_v19, %v1514_v48  ;;  %v3941_v63 = vmul.u32.u64.low %v3886_v9, %v1511_v39  ;;  %v3942_v53 = vmul.u32.u64.high %v3886_v9, %v1511_v39, %v3941_v63  ;;  %v754_v54 = vand.u32 8388607, %v5780_v45 }
 0x124   :  { %v3946_v41 = vmul.u32.u64.low %v3886_v9, %v1515_v60  ;;  %v3947_v49 = vmul.u32.u64.high %v3886_v9, %v1515_v60, %v3946_v41  ;;  %v3952_v58 = vshrl.u32 %v705_v31, 30  ;;  %v1507_v1 = vsel %vm1501_vm9, %v1504_v17, %v1506_v37 }
 0x125   :  { %v761_v3 = vand.u32 31, %v759_v57  ;;  %v1526_v16 = vadd.s32 1, %v3942_v53  ;;  %v853_v5 = vand.u32 2139095040, %v3880_v4  ;;  %v1523_v24 = vmul.u32 %v3886_v9, %v1507_v1 }
 0x126   :  { %v707_v11 = vshll.u32 %v3952_v58, 30  ;;  %vm1525_vm13 = vc.u32 %v3947_v49, %v3941_v63  ;;  %v755_v27 = vor.u32 8388608, %v754_v54  ;;  %v5774_v36 = vand.u32 2147483647, %v3880_v4 }
 0x127   :  { %v762_v51 = vsub.s32 32, %v761_v3  ;;  %v1527_v19 = vsel %vm1525_vm13, %v1526_v16, %v3942_v53  ;;  %v854_v37 = vshrl.u32 %v853_v5, 23  ;;  %v700_v39 = vadd.s32 %v3917_v44, %v3914_v40  ;;  %v479_v44 = vpop.f32.mrf.mxu0 }
 0x128   :  { %v708_v12 = vsub.s32 %v704_v30, %v707_v11  ;;  %v1528_v34 = vadd.s32 %v1527_v19, %v1523_v24  ;;  %v3967_v9 = vshll.u32 %v755_v27, 8  ;;  %v3969_v41 = vshrl.u32 %v759_v57, 5 }
 0x129   :  { %v765_v17 = vshrl.u32 %v5770_v22, %v762_v51  ;;  %v768_v31 = vshrl.u32 %v5775_v25, %v762_v51  ;;  %v764_v30 = vshll.u32 %v5768_v14, %v761_v3  ;;  %v771_v53 = vshrl.u32 %v5772_v13, %v762_v51 }
 0x12a   :  { %v710_v8 = vsub.s32 0, %v708_v12  ;;  %v1529_v48 = vadd.s32 536870912, %v1528_v34  ;;  %v767_v54 = vshll.u32 %v5770_v22, %v761_v3  ;;  %v773_v1 = vshll.u32 %v5772_v13, %v761_v3 }
 0x12b   :  { %v774_v40 = vshrl.u32 %v3589_v0, %v762_v51  ;;  %v766_v16 = vor.u32 %v765_v17, %v764_v30  ;;  %v770_v5 = vshll.u32 %v5775_v25, %v761_v3  ;;  %v3197_v24 = vadd.s32 4294967169, %v854_v37 }
 0x12c   :  { %v3190_v60 = vmin.u32 %v710_v8, %v708_v12  ;;  %v3973_v45 = vshrl.u32 %v1529_v48, 30  ;;  %v769_v27 = vor.u32 %v768_v31, %v767_v54  ;;  %v777_v8 = vshrl.u32 %v3590_v42, %v762_v51 }
 0x12d   :  { %v775_v19 = vor.u32 %v774_v40, %v773_v1  ;;  %v772_v14 = vor.u32 %v771_v53, %v770_v5  ;;  %v3983_v22 = vand.u32 8388607, %v5774_v36  ;;  %v3986_v13 = vadd.f32 %v479_v44, %v3809_v20 }
 0x12e   :  { %v712_v11 = vclz %v3190_v60  ;;  %v1531_v57 = vshll.u32 %v3973_v45, 30  ;;  %v5781_v17 = vmov 683565275   ;;  %v776_v37 = vshll.u32 %v3589_v0, %v761_v3 }
 0x12f   :  { %v763_v30 = vshrl.u32 %v5781_v17, %v762_v51  ;;  %vm782_vm14 = vcmp.lt.s32.totalorder %v3969_v41, 4  ;;  %vm779_vm0 = vcmp.lt.s32.totalorder %v3969_v41, 1  ;;  %vm781_vm1 = vcmp.lt.s32.totalorder %v3969_v41, 3 }
 0x130   :  { %v3191_v48 = vadd.s32 4294967294, %v712_v11  ;;  %v3988_v60 = vsub.s32 %v1528_v34, %v1531_v57  ;;  %v788_v31 = vsel %vm782_vm14, %v775_v19, 920167782  ;;  %v778_v54 = vor.u32 %v777_v8, %v776_v37 }
 0x131   :  { %v787_v34 = vsel %vm779_vm0, %v766_v16, %v769_v27  ;;  %vm780_vm3 = vcmp.lt.s32.totalorder %v3969_v41, 2  ;;  %v789_v1 = vsel %vm781_vm1, %v772_v14, %v788_v31  ;;  %v783_v11 = vsel %vm779_vm0, %v763_v30, %v766_v16 }
 0x132   :  { %vm3192_vm15 = vcmp.lt.s32.totalorder %v3191_v48, 0  ;;  %v1534_v20 = vsub.s32 0, %v3988_v60  ;;  %v784_v5 = vsel %vm782_vm14, %v772_v14, 2102212464  ;;  %v791_v37 = vsel %vm779_vm0, %v769_v27, %v772_v14 }
 0x133   :  { %v715_v53 = vsel %vm3192_vm15, 0, %v3191_v48  ;;  %v790_v48 = vsel %vm780_vm3, %v787_v34, %v789_v1  ;;  %v5782_v16 = vand.u32 2147483647, %v3860_v62  ;;  %vm1470_vm5 = vcmp.lt.s32.totalorder %v3865_v28, 0 }
 0x134   :  { %v716_v3 = vsub.s32 32, %v715_v53  ;;  %v720_v51 = vsub.s32 4294967266, %v715_v53  ;;  %v717_v40 = vshll.u32 %v708_v12, %v715_v53  ;;  %v3222_v44 = vmin.u32 %v1534_v20, %v3988_v60 }
 0x135   :  { %v792_v12 = vsel %vm782_vm14, %v778_v54, 1326507024  ;;  %v4016_v31 = vmul.u32.u64.low %v3967_v9, %v790_v48  ;;  %v4017_v53 = vmul.u32.u64.high %v3967_v9, %v790_v48, %v4016_v31  ;;  %vm4022_vm4 = vcmp.le.f32.partialorder %v5782_v16, 0.7853982  ;;  %v3343_v16 = vpop.f32.mrf.mxu1 }
 0x136   :  { %v718_v57 = vshrl.u32 %v700_v39, %v716_v3  ;;  %v721_v8 = vadd.s32 127, %v720_v51  ;;  %v1536_v36 = vclz %v3222_v44  ;;  %v785_v14 = vsel %vm781_vm1, %v769_v27, %v784_v5 }
 0x137   :  { %v793_v54 = vsel %vm781_vm1, %v775_v19, %v792_v12  ;;  %v730_v34 = vsub.s32 4, %v3952_v58  ;;  %v860_v1 = vadd.s32 1, %v3197_v24  ;;  %v786_v27 = vsel %vm780_vm3, %v783_v11, %v785_v14 }
 0x138   :  { %v719_v30 = vor.u32 %v718_v57, %v717_v40  ;;  %v722_v20 = vshll.u32 %v721_v8, 23  ;;  %v3223_v3 = vadd.s32 4294967294, %v1536_v36  ;;  %v794_v51 = vsel %vm780_vm3, %v791_v37, %v793_v54 }
 0x139   :  { %v1524_v40 = vadd.s32 %v3941_v63, %v3947_v49  ;;  %v4037_v57 = vmul.u32.u64.low %v3967_v9, %v794_v51  ;;  %v4038_v8 = vmul.u32.u64.high %v3967_v9, %v794_v51, %v4037_v57  ;;  %v805_v19 = vadd.s32 1, %v4017_v53 }
 0x13a   :  { %v723_v44 = vor.u32 4788187, %v722_v20  ;;  %vm3224_vm6 = vcmp.lt.s32.totalorder %v3223_v3, 0  ;;  %vm861_vm7 = vcmp.gt.s32.totalorder %v860_v1, 0  ;;  %v726_v5 = vcvt.s32.f32 %v719_v30 }
 0x13b   :  { %v1539_v48 = vsel %vm3224_vm6, 0, %v3223_v3  ;;  %v862_v37 = vsel %vm861_vm7, %v860_v1, 0  ;;  %v731_v24 = vsel %vm646_vm2, %v730_v34, %v3952_v58  ;;  %v1554_v12 = vsub.s32 4, %v3973_v45 }
 0x13c   :  { %v724_v36 = vand.u32 2147483647, %v723_v44  ;;  %v1540_v63 = vsub.s32 32, %v1539_v48  ;;  %v1544_v49 = vsub.s32 4294967266, %v1539_v48  ;;  %v802_v41 = vmul.u32 %v3967_v9, %v786_v27 }
 0x13d   :  { %vm804_vm8 = vc.u32 %v4038_v8, %v4016_v31  ;;  %v864_v11 = vand.u32 31, %v862_v37  ;;  %v5785_v30 = vand.u32 2147483647, %v3865_v28  ;;  %v1541_v58 = vshll.u32 %v3988_v60, %v1539_v48 }
 0x13e   :  { %v727_v20 = vmul.f32 %v726_v5, %v724_v36  ;;  %v1542_v54 = vshrl.u32 %v1524_v40, %v1540_v63  ;;  %v1545_v34 = vadd.s32 127, %v1544_v49  ;;  %v806_v3 = vsel %vm804_vm8, %v805_v19, %v4017_v53 }
 0x13f   :  { %vm4052_vm9 = vcmp.le.f32.partialorder %v5785_v30, 0.7853982  ;;  %v807_v1 = vadd.s32 %v806_v3, %v802_v41  ;;  %v865_v44 = vsub.s32 32, %v864_v11  ;;  %v4059_v9 = vadd.f32 %v3343_v16, %v3825_v46 }
 0x140   :  { %v728_v51 = vxor.u32 2147483648, %v727_v20  ;;  %v733_v57 = vsel %vm4022_vm4, 0, %v731_v24  ;;  %v1543_v27 = vor.u32 %v1542_v54, %v1541_v58  ;;  %v1546_v36 = vshll.u32 %v1545_v34, 23 }
 0x141   :  { %v4066_v5 = vsel %vm1470_vm5, %v1554_v12, %v3973_v45  ;;  %v808_v53 = vadd.s32 536870912, %v807_v1  ;;  %v858_v40 = vor.u32 8388608, %v3983_v22  ;;  %v4071_v19 = vshrl.u32 %v862_v37, 5 }
 0x142   :  { %v729_v60 = vsel %vm646_vm2, %v728_v51, %v727_v20  ;;  %v1547_v48 = vor.u32 4788187, %v1546_v36  ;;  %v5788_v24 = vmov 2475754826   ;;  %v871_v49 = vshrl.u32 %v5775_v25, %v865_v44 }
 0x143   :  { %v732_v46 = vsel %vm4022_vm4, %v3860_v62, %v729_v60  ;;  %v868_v63 = vshrl.u32 %v5788_v24, %v865_v44  ;;  %v4078_v45 = vshrl.u32 %v808_v53, 30  ;;  %v867_v12 = vshll.u32 %v5781_v17, %v864_v11 }
 0x144   :  { %3466 = vcosq.f32 %v732_v46  ;;  %v870_v16 = vshll.u32 %v5788_v24, %v864_v11  ;;  %v1548_v22 = vand.u32 2147483647, %v1547_v48  ;;  %v1550_v37 = vcvt.s32.f32 %v1543_v27 }
 0x145   :  { %3468 = vsinq.f32 %v732_v46  ;;  %v5789_v20 = vmov 2102212464   ;;  %v810_v39 = vshll.u32 %v4078_v45, 30  ;;  %v873_v30 = vshll.u32 %v5775_v25, %v864_v11 }
 0x146   :  { %v874_v41 = vshrl.u32 %v5789_v20, %v865_v44  ;;  %v876_v58 = vshll.u32 %v5789_v20, %v864_v11  ;;  %v877_v54 = vshrl.u32 %v3589_v0, %v865_v44  ;;  %v1551_v34 = vmul.f32 %v1550_v37, %v1548_v22 }
 0x147   :  { %v869_v3 = vor.u32 %v868_v63, %v867_v12  ;;  %v872_v51 = vor.u32 %v871_v49, %v870_v16  ;;  %v880_v36 = vshrl.u32 %v3590_v42, %v865_v44  ;;  %v4088_v60 = vand.u32 3, %v733_v57 }
 0x148   :  { %v1557_v27 = vsel %vm4052_vm9, 0, %v4066_v5  ;;  %v4093_v53 = vsub.s32 %v807_v1, %v810_v39  ;;  %v878_v46 = vor.u32 %v877_v54, %v876_v58  ;;  %v1552_v48 = vxor.u32 2147483648, %v1551_v34 }
 0x149   :  { %v875_v25 = vor.u32 %v874_v41, %v873_v30  ;;  %v879_v18 = vshll.u32 %v3589_v0, %v864_v11  ;;  %v4096_v7 = vshll.u32 %v858_v40, 8  ;;  %vm882_vm10 = vcmp.lt.s32.totalorder %v4071_v19, 1 }
 0x14a   :  { %v813_v63 = vsub.s32 0, %v4093_v53  ;;  %vm885_vm11 = vcmp.lt.s32.totalorder %v4071_v19, 4  ;;  %v4103_v57 = vadd.f32 %v3851_v2, %v3986_v13  ;;  %v1553_v1 = vsel %vm1470_vm5, %v1552_v48, %v1551_v34 }
 0x14b   :  { %v881_v5 = vor.u32 %v880_v36, %v879_v18  ;;  %v890_v49 = vsel %vm882_vm10, %v869_v3, %v872_v51  ;;  %v891_v11 = vsel %vm885_vm11, %v878_v46, 920167782  ;;  %v1556_v40 = vsel %vm4052_vm9, %v3865_v28, %v1553_v1 }
 0x14c   :  { %v3194_v12 = vmin.u32 %v813_v63, %v4093_v53  ;;  %v866_v16 = vshrl.u32 %v5781_v17, %v865_v44  ;;  %vm884_vm12 = vcmp.lt.s32.totalorder %v4071_v19, 3  ;;  %vm738_vm13 = vcmp.lt.s32.totalorder %v4088_v60, 2 }
 0x14d   :  { %3470 = vcosq.f32 %v1556_v40  ;;  %vm883_vm14 = vcmp.lt.s32.totalorder %v4071_v19, 2  ;;  %v887_v18 = vsel %vm885_vm11, %v875_v25, 2102212464  ;;  %v892_v13 = vsel %vm884_vm12, %v875_v25, %v891_v11 }
 0x14e   :  { %vm736_vm15 = vweird.f32 %v3860_v62  ;;  %3472 = vsinq.f32 %v1556_v40  ;;  %v815_v14 = vclz %v3194_v12  ;;  %v893_v44 = vsel %vm883_vm14, %v890_v49, %v892_v13 }
 0x14f   :  { %v894_v22 = vsel %vm882_vm10, %v872_v51, %v875_v25  ;;  %vm739_vm0 = vcmp.eq.s32.totalorder %v4088_v60, 0  ;;  %v895_v37 = vsel %vm885_vm11, %v881_v5, 1326507024  ;;  %v886_v58 = vsel %vm882_vm10, %v866_v16, %v869_v3 }
 0x150   :  { %v4132_v41 = vmul.u32.u64.low %v4096_v7, %v893_v44  ;;  %v4133_v39 = vmul.u32.u64.high %v4096_v7, %v893_v44, %v4132_v41  ;;  %v3195_v30 = vadd.s32 4294967294, %v815_v14  ;;  %v888_v54 = vsel %vm884_vm12, %v872_v51, %v887_v18 }
 0x151   :  { %v896_v25 = vsel %vm884_vm12, %v878_v46, %v895_v37  ;;  %v3467_v34 = vpop.eup %3466  ;;  %vm742_vm1 = vcmp.eq.s32.totalorder %v4088_v60, 2  ;;  %v4143_v36 = vand.u32 3, %v1557_v27  ;;  %vm749_vm2 = vcmp.lt.s32.totalorder %v3872_v33, 0 }
 0x152   :  { %v897_v48 = vsel %vm883_vm14, %v894_v22, %v896_v25  ;;  %v956_v63 = vand.u32 2139095040, %v4103_v57  ;;  %v3469_v1 = vpop.eup %3468  ;;  %v743_v3 = vxor.u32 2147483648, %v3467_v34  ;;  %vm3196_vm3 = vcmp.lt.s32.totalorder %v3195_v30, 0 }
 0x153   :  { %v4150_v51 = vmul.u32.u64.low %v4096_v7, %v897_v48  ;;  %v4151_v5 = vmul.u32.u64.high %v4096_v7, %v897_v48, %v4150_v51  ;;  %v740_v46 = vxor.u32 2147483648, %v3469_v1  ;;  %v803_v49 = vadd.s32 %v4016_v31, %v4038_v8 }
 0x154   :  { %v818_v27 = vsel %vm3196_vm3, 0, %v3195_v30  ;;  %v889_v11 = vsel %vm883_vm14, %v886_v58, %v888_v54  ;;  %v744_v40 = vsel %vm742_vm1, %v743_v3, %v3469_v1  ;;  %v908_v18 = vadd.s32 1, %v4133_v39 }
 0x155   :  { %v819_v12 = vsub.s32 32, %v818_v27  ;;  %v823_v16 = vsub.s32 4294967266, %v818_v27  ;;  %v741_v13 = vsel %vm739_vm0, %v3467_v34, %v740_v46  ;;  %v833_v14 = vsub.s32 4, %v4078_v45 }
 0x156   :  { %v953_v44 = vand.u32 2147483647, %v4103_v57  ;;  %v957_v22 = vshrl.u32 %v956_v63, 23  ;;  %v745_v31 = vsel %vm738_vm13, %v741_v13, %v744_v40  ;;  %v820_v8 = vshll.u32 %v4093_v53, %v818_v27 }
 0x157   :  { %v821_v19 = vshrl.u32 %v803_v49, %v819_v12  ;;  %v824_v37 = vadd.s32 127, %v823_v16  ;;  %v746_v30 = vsel %vm736_vm15, nan, %v745_v31  ;;  %v905_v58 = vmul.u32 %v4096_v7, %v889_v11 }
 0x158   :  { %vm907_vm4 = vc.u32 %v4151_v5, %v4132_v41  ;;  %v3201_v54 = vadd.s32 4294967169, %v957_v22  ;;  %3116 = vst [vmem:[#allocation2] sm:$0xff] %v746_v30  ;;  %v5790_v25 = vand.u32 2147483647, %v3872_v33  ;;  %vm1562_vm6 = vcmp.lt.s32.totalorder %v4143_v36, 2 }
 0x159   :  { %v822_v60 = vor.u32 %v821_v19, %v820_v8  ;;  %v825_v53 = vshll.u32 %v824_v37, 23  ;;  %v909_v48 = vsel %vm907_vm4, %v908_v18, %v4133_v39  ;;  %vm1563_vm7 = vcmp.eq.s32.totalorder %v4143_v36, 0 }
 0x15a   :  { %vm4172_vm5 = vcmp.le.f32.partialorder %v5790_v25, 0.7853982  ;;  %v910_v7 = vadd.s32 %v909_v48, %v905_v58  ;;  %v963_v62 = vadd.s32 1, %v3201_v54  ;;  %v3471_v63 = vpop.eup %3470  ;;  %v834_v3 = vsel %vm749_vm2, %v833_v14, %v4078_v45 }
 0x15b   :  { %v826_v1 = vor.u32 4788187, %v825_v53  ;;  %v960_v51 = vand.u32 8388607, %v953_v44  ;;  %v4186_v46 = vadd.f32 %v3856_v21, %v4059_v9  ;;  %v3473_v39 = vpop.eup %3472  ;;  %vm1566_vm8 = vcmp.eq.s32.totalorder %v4143_v36, 2 }
 0x15c   :  { %v1567_v49 = vxor.u32 2147483648, %v3471_v63  ;;  %v911_v27 = vadd.s32 536870912, %v910_v7  ;;  %vm964_vm9 = vcmp.gt.s32.totalorder %v963_v62, 0  ;;  %v1564_v11 = vxor.u32 2147483648, %v3473_v39 }
 0x15d   :  { %v827_v40 = vand.u32 2147483647, %v826_v1  ;;  %v829_v12 = vcvt.s32.f32 %v822_v60  ;;  %v965_v16 = vsel %vm964_vm9, %v963_v62, 0  ;;  %v836_v45 = vsel %vm4172_vm5, 0, %v834_v3 }
 0x15e   :  { %v1568_v18 = vsel %vm1566_vm8, %v1567_v49, %v3473_v39  ;;  %v4191_v13 = vshrl.u32 %v911_v27, 30  ;;  %v967_v14 = vand.u32 31, %v965_v16  ;;  %v1565_v9 = vsel %vm1563_vm7, %v3471_v63, %v1564_v11 }
 0x15f   :  { %v830_v22 = vmul.f32 %v829_v12, %v827_v40  ;;  %v961_v31 = vor.u32 8388608, %v960_v51  ;;  %v1780_v8 = vand.u32 2139095040, %v4186_v46  ;;  %vm1560_vm10 = vweird.f32 %v3865_v28 }
 0x160   :  { %v1569_v19 = vsel %vm1562_vm6, %v1565_v9, %v1568_v18  ;;  %v913_v37 = vshll.u32 %v4191_v13, 30  ;;  %v968_v30 = vsub.s32 32, %v967_v14  ;;  %v4200_v25 = vand.u32 3, %v836_v45 }
 0x161   :  { %v1570_v58 = vsel %vm1560_vm10, nan, %v1569_v19  ;;  %v831_v54 = vxor.u32 2147483648, %v830_v22  ;;  %v906_v60 = vadd.s32 %v4132_v41, %v4151_v5  ;;  %v1777_v28 = vand.u32 2147483647, %v4186_v46 }
 0x162   :  { %3124 = vst [vmem:[#allocation2 + $0x40] sm:$0xff] %v1570_v58  ;;  %v4204_v53 = vsub.s32 %v910_v7, %v913_v37  ;;  %v971_v48 = vshrl.u32 %v5788_v24, %v968_v30  ;;  %v5793_v62 = vmov 2131351028   ;;  %v4211_v1 = vshll.u32 %v961_v31, 8 }
 0x163   :  { %v832_v36 = vsel %vm749_vm2, %v831_v54, %v830_v22  ;;  %v974_v63 = vshrl.u32 %v5793_v62, %v968_v30  ;;  %v1781_v3 = vshrl.u32 %v1780_v8, 23  ;;  %v970_v5 = vshll.u32 %v5781_v17, %v967_v14 }
 0x164   :  { %v835_v51 = vsel %vm4172_vm5, %v3872_v33, %v832_v36  ;;  %v916_v41 = vsub.s32 0, %v4204_v53  ;;  %v973_v7 = vshll.u32 %v5788_v24, %v967_v14  ;;  %v966_v39 = vshrl.u32 %v965_v16, 5 }
 0x165   :  { %3474 = vcosq.f32 %v835_v51  ;;  %v976_v49 = vshll.u32 %v5793_v62, %v967_v14  ;;  %v977_v27 = vshrl.u32 %v5789_v20, %v968_v30  ;;  %v972_v40 = vor.u32 %v971_v48, %v970_v5 }
 0x166   :  { %3476 = vsinq.f32 %v835_v51  ;;  %v3198_v11 = vmin.u32 %v916_v41, %v4204_v53  ;;  %v975_v12 = vor.u32 %v974_v63, %v973_v7  ;;  %v979_v34 = vshll.u32 %v5789_v20, %v967_v14 }
 0x167   :  { %v978_v18 = vor.u32 %v977_v27, %v976_v49  ;;  %v980_v45 = vshrl.u32 %v3589_v0, %v968_v30  ;;  %v3233_v9 = vadd.s32 4294967169, %v1781_v3  ;;  %v936_v31 = vsub.s32 4, %v4191_v13 }
 0x168   :  { %v918_v22 = vclz %v3198_v11  ;;  %v982_v16 = vshll.u32 %v3589_v0, %v967_v14  ;;  %v983_v8 = vshrl.u32 %v3590_v42, %v968_v30  ;;  %v969_v19 = vshrl.u32 %v5781_v17, %v968_v30 }
 0x169   :  { %v981_v37 = vor.u32 %v980_v45, %v979_v34  ;;  %vm985_vm11 = vcmp.lt.s32.totalorder %v966_v39, 1  ;;  %vm986_vm12 = vcmp.lt.s32.totalorder %v966_v39, 2  ;;  %vm852_vm13 = vcmp.lt.s32.totalorder %v3880_v4, 0 }
 0x16a   :  { %v3199_v58 = vadd.s32 4294967294, %v918_v22  ;;  %v984_v54 = vor.u32 %v983_v8, %v982_v16  ;;  %vm988_vm14 = vcmp.lt.s32.totalorder %v966_v39, 4  ;;  %v993_v48 = vsel %vm985_vm11, %v972_v40, %v975_v12 }
 0x16b   :  { %vm987_vm15 = vcmp.lt.s32.totalorder %v966_v39, 3  ;;  %v990_v36 = vsel %vm988_vm14, %v978_v18, 2102212464  ;;  %v994_v63 = vsel %vm988_vm14, %v981_v37, 920167782  ;;  %v997_v3 = vsel %vm985_vm11, %v975_v12, %v978_v18 }
 0x16c   :  { %vm3200_vm0 = vcmp.lt.s32.totalorder %v3199_v58, 0  ;;  %v995_v14 = vsel %vm987_vm15, %v978_v18, %v994_v63  ;;  %v998_v51 = vsel %vm988_vm14, %v984_v54, 1326507024  ;;  %v1787_v41 = vadd.s32 1, %v3233_v9 }
 0x16d   :  { %v921_v30 = vsel %vm3200_vm0, 0, %v3199_v58  ;;  %v989_v5 = vsel %vm985_vm11, %v969_v19, %v972_v40  ;;  %v996_v7 = vsel %vm986_vm12, %v993_v48, %v995_v14  ;;  %v999_v49 = vsel %vm987_vm15, %v981_v37, %v998_v51 }
 0x16e   :  { %v5794_v27 = vand.u32 2147483647, %v3880_v4  ;;  %v922_v34 = vsub.s32 32, %v921_v30  ;;  %v926_v45 = vsub.s32 4294967266, %v921_v30  ;;  %v991_v22 = vsel %vm987_vm15, %v975_v12, %v990_v36 }
 0x16f   :  { %v1000_v16 = vsel %vm986_vm12, %v997_v3, %v999_v49  ;;  %vm839_vm2 = vweird.f32 %v3872_v33  ;;  %v4246_v40 = vmul.u32.u64.low %v4211_v1, %v996_v7  ;;  %v4247_v8 = vmul.u32.u64.high %v4211_v1, %v996_v7, %v4246_v40 }
 0x170   :  { %vm4235_vm1 = vcmp.le.f32.partialorder %v5794_v27, 0.7853982  ;;  %v4242_v18 = vmul.u32.u64.low %v4211_v1, %v1000_v16  ;;  %v4243_v9 = vmul.u32.u64.high %v4211_v1, %v1000_v16, %v4242_v18  ;;  %v923_v19 = vshll.u32 %v4204_v53, %v921_v30 }
 0x171   :  { %v924_v37 = vshrl.u32 %v906_v60, %v922_v34  ;;  %v927_v58 = vadd.s32 127, %v926_v45  ;;  %vm1788_vm3 = vcmp.gt.s32.totalorder %v1787_v41, 0  ;;  %vm841_vm4 = vcmp.lt.s32.totalorder %v4200_v25, 2 }
 0x172   :  { %v992_v12 = vsel %vm986_vm12, %v989_v5, %v991_v22  ;;  %v4255_v54 = vand.u32 8388607, %v1777_v28  ;;  %v1789_v48 = vsel %vm1788_vm3, %v1787_v41, 0  ;;  %v3475_v36 = vpop.eup %3474  ;;  %vm845_vm5 = vcmp.eq.s32.totalorder %v4200_v25, 2 }
 0x173   :  { %v925_v63 = vor.u32 %v924_v37, %v923_v19  ;;  %v928_v3 = vshll.u32 %v927_v58, 23  ;;  %v1791_v14 = vand.u32 31, %v1789_v48  ;;  %v3477_v51 = vpop.eup %3476  ;;  %v846_v53 = vxor.u32 2147483648, %v3475_v36 }
 0x174   :  { %v937_v60 = vsel %vm852_vm13, %v936_v31, %v4191_v13  ;;  %vm1010_vm6 = vc.u32 %v4243_v9, %v4246_v40  ;;  %v1011_v39 = vadd.s32 1, %v4247_v8  ;;  %v843_v30 = vxor.u32 2147483648, %v3477_v51 }
 0x175   :  { %v929_v5 = vor.u32 4788187, %v928_v3  ;;  %v1008_v41 = vmul.u32 %v4211_v1, %v992_v12  ;;  %v1792_v7 = vsub.s32 32, %v1791_v14  ;;  %vm842_vm7 = vcmp.eq.s32.totalorder %v4200_v25, 0 }
 0x176   :  { %v847_v49 = vsel %vm845_vm5, %v846_v53, %v3477_v51  ;;  %v1012_v27 = vsel %vm1010_vm6, %v1011_v39, %v4247_v8  ;;  %v1785_v34 = vor.u32 8388608, %v4255_v54  ;;  %v844_v45 = vsel %vm842_vm7, %v3475_v36, %v843_v30 }
 0x177   :  { %v930_v22 = vand.u32 2147483647, %v929_v5  ;;  %v932_v13 = vcvt.s32.f32 %v925_v63  ;;  %v1013_v31 = vadd.s32 %v1012_v27, %v1008_v41  ;;  %v848_v16 = vsel %vm841_vm4, %v844_v45, %v847_v49  ;;  %v551_v41 = vpop.f32.mrf.mxu1 }
 0x178   :  { %v939_v18 = vsel %vm4235_vm1, 0, %v937_v60  ;;  %v1795_v1 = vshrl.u32 %v5788_v24, %v1792_v7  ;;  %v1798_v19 = vshrl.u32 %v5793_v62, %v1792_v7  ;;  %v849_v37 = vsel %vm839_vm2, nan, %v848_v16  ;;  %v481_v60 = vpop.f32.mrf.mxu0 }
 0x179   :  { %v933_v8 = vmul.f32 %v932_v13, %v930_v22  ;;  %v1014_v58 = vadd.s32 536870912, %v1013_v31  ;;  %v1801_v12 = vshrl.u32 %v5789_v20, %v1792_v7  ;;  %3117 = vst [vmem:[#allocation2 + $0x8] sm:$0xff] %v849_v37  ;;  %v1790_v54 = vshrl.u32 %v1789_v48, 5 }
 0x17a   :  { %v1794_v36 = vshll.u32 %v5781_v17, %v1791_v14  ;;  %v1800_v25 = vshll.u32 %v5793_v62, %v1791_v14  ;;  %v1804_v63 = vshrl.u32 %v3589_v0, %v1792_v7  ;;  %v1797_v53 = vshll.u32 %v5788_v24, %v1791_v14 }
 0x17b   :  { %v934_v3 = vxor.u32 2147483648, %v933_v8  ;;  %v4280_v51 = vshrl.u32 %v1014_v58, 30  ;;  %v1803_v33 = vshll.u32 %v5789_v20, %v1791_v14  ;;  %v1806_v5 = vshll.u32 %v3589_v0, %v1791_v14 }
 0x17c   :  { %v1796_v39 = vor.u32 %v1795_v1, %v1794_v36  ;;  %v1802_v30 = vor.u32 %v1801_v12, %v1800_v25  ;;  %v1807_v48 = vshrl.u32 %v3590_v42, %v1792_v7  ;;  %v1799_v45 = vor.u32 %v1798_v19, %v1797_v53 }
 0x17d   :  { %v935_v49 = vsel %vm852_vm13, %v934_v3, %v933_v8  ;;  %v1016_v27 = vshll.u32 %v4280_v51, 30  ;;  %v1805_v22 = vor.u32 %v1804_v63, %v1803_v33  ;;  %v4292_v16 = vand.u32 3, %v939_v18 }
 0x17e   :  { %v938_v13 = vsel %vm4235_vm1, %v3880_v4, %v935_v49  ;;  %v1808_v1 = vor.u32 %v1807_v48, %v1806_v5  ;;  %v583_v37 = vadd.f32 %v481_v60, %v3811_v23  ;;  %vm1812_vm8 = vcmp.lt.s32.totalorder %v1790_v54, 4 }
 0x17f   :  { %3478 = vcosq.f32 %v938_v13  ;;  %v4295_v14 = vsub.s32 %v1013_v31, %v1016_v27  ;;  %v584_v58 = vadd.f32 %v551_v41, %v3829_v50  ;;  %v1793_v8 = vshrl.u32 %v5781_v17, %v1792_v7 }
 0x180   :  { %3480 = vsinq.f32 %v938_v13  ;;  %vm1809_vm9 = vcmp.lt.s32.totalorder %v1790_v54, 1  ;;  %v1814_v19 = vsel %vm1812_vm8, %v1802_v30, 2102212464  ;;  %vm1811_vm10 = vcmp.lt.s32.totalorder %v1790_v54, 3 }
 0x181   :  { %v1019_v12 = vsub.s32 0, %v4295_v14  ;;  %v1817_v11 = vsel %vm1809_vm9, %v1796_v39, %v1799_v45  ;;  %v1818_v18 = vsel %vm1812_vm8, %v1805_v22, 920167782  ;;  %v1821_v25 = vsel %vm1809_vm9, %v1799_v45, %v1802_v30 }
 0x182   :  { %v1819_v36 = vsel %vm1811_vm10, %v1802_v30, %v1818_v18  ;;  %v1822_v63 = vsel %vm1812_vm8, %v1808_v1, 1326507024  ;;  %v1825_v23 = vshll.u32 %v1785_v34, 8  ;;  %vm1810_vm11 = vcmp.lt.s32.totalorder %v1790_v54, 2 }
 0x183   :  { %v3202_v31 = vmin.u32 %v1019_v12, %v4295_v14  ;;  %v1813_v3 = vsel %vm1809_vm9, %v1793_v8, %v1796_v39  ;;  %v1815_v53 = vsel %vm1811_vm10, %v1799_v45, %v1814_v19  ;;  %v1820_v50 = vsel %vm1810_vm11, %v1817_v11, %v1819_v36 }
 0x184   :  { %v1823_v33 = vsel %vm1811_vm10, %v1805_v22, %v1822_v63  ;;  %v4302_v7 = vadd.f32 %v3862_v15, %v583_v37  ;;  %v4305_v60 = vadd.f32 %v3856_v21, %v584_v58  ;;  %vm955_vm12 = vcmp.lt.s32.totalorder %v4103_v57, 0 }
 0x185   :  { %v1021_v5 = vclz %v3202_v31  ;;  %v1824_v48 = vsel %vm1810_vm11, %v1821_v25, %v1823_v33  ;;  %v4307_v41 = vmul.u32.u64.low %v1825_v23, %v1820_v50  ;;  %v4308_v49 = vmul.u32.u64.high %v1825_v23, %v1820_v50, %v4307_v41 }
 0x186   :  { %v1039_v34 = vsub.s32 4, %v4280_v51  ;;  %v4312_v54 = vmul.u32.u64.low %v1825_v23, %v1824_v48  ;;  %v4313_v39 = vmul.u32.u64.high %v1825_v23, %v1824_v48, %v4312_v54  ;;  %vm4317_vm13 = vcmp.le.f32.partialorder %v953_v44, 0.7853982 }
 0x187   :  { %v3203_v27 = vadd.s32 4294967294, %v1021_v5  ;;  %v1816_v45 = vsel %vm1810_vm11, %v1813_v3, %v1815_v53  ;;  %v1059_v22 = vand.u32 2139095040, %v4302_v7  ;;  %vm944_vm14 = vcmp.lt.s32.totalorder %v4292_v16, 2 }
 0x188   :  { %vm945_vm15 = vcmp.eq.s32.totalorder %v4292_v16, 0  ;;  %vm948_vm0 = vcmp.eq.s32.totalorder %v4292_v16, 2  ;;  %v1056_v13 = vand.u32 2147483647, %v4302_v7  ;;  %v1162_v1 = vand.u32 2139095040, %v4305_v60 }
 0x189   :  { %vm942_vm1 = vweird.f32 %v3880_v4  ;;  %v1009_v44 = vadd.s32 %v4246_v40, %v4243_v9  ;;  %vm3204_vm2 = vcmp.lt.s32.totalorder %v3203_v27, 0  ;;  %v1835_v37 = vadd.s32 1, %v4308_v49 }
 0x18a   :  { %v1060_v58 = vshrl.u32 %v1059_v22, 23  ;;  %v1024_v8 = vsel %vm3204_vm2, 0, %v3203_v27  ;;  %v1040_v19 = vsel %vm955_vm12, %v1039_v34, %v4280_v51  ;;  %v1832_v12 = vmul.u32 %v1825_v23, %v1816_v45 }
 0x18b   :  { %vm1834_vm3 = vc.u32 %v4313_v39, %v4307_v41  ;;  %v1025_v11 = vsub.s32 32, %v1024_v8  ;;  %v1029_v18 = vsub.s32 4294967266, %v1024_v8  ;;  %v5777_v25 = vand.u32 2147483647, %v4305_v60 }
 0x18c   :  { %v1836_v36 = vsel %vm1834_vm3, %v1835_v37, %v4308_v49  ;;  %v3479_v63 = vpop.eup %3478  ;;  %v3205_v40 = vadd.s32 4294967169, %v1060_v58  ;;  %v1063_v31 = vand.u32 8388607, %v1056_v13  ;;  %v1163_v3 = vshrl.u32 %v1162_v1, 23 }
 0x18d   :  { %v1837_v9 = vadd.s32 %v1836_v36, %v1832_v12  ;;  %v3481_v53 = vpop.eup %3480  ;;  %v949_v50 = vxor.u32 2147483648, %v3479_v63  ;;  %v1026_v51 = vshll.u32 %v4295_v14, %v1024_v8  ;;  %v1027_v23 = vshrl.u32 %v1009_v44, %v1025_v11 }
 0x18e   :  { %v1030_v33 = vadd.s32 127, %v1029_v18  ;;  %v946_v5 = vxor.u32 2147483648, %v3481_v53  ;;  %v1066_v34 = vadd.s32 1, %v3205_v40  ;;  %v3209_v54 = vadd.s32 4294967169, %v1163_v3 }
 0x18f   :  { %v1838_v48 = vadd.s32 536870912, %v1837_v9  ;;  %v950_v49 = vsel %vm948_vm0, %v949_v50, %v3481_v53  ;;  %v1028_v27 = vor.u32 %v1027_v23, %v1026_v51  ;;  %v1042_v22 = vsel %vm4317_vm13, 0, %v1040_v19 }
 0x190   :  { %v1031_v45 = vshll.u32 %v1030_v33, 23  ;;  %v947_v1 = vsel %vm945_vm15, %v3479_v63, %v946_v5  ;;  %v1064_v14 = vor.u32 8388608, %v1063_v31  ;;  %vm1067_vm4 = vcmp.gt.s32.totalorder %v1066_v34, 0 }
 0x191   :  { %v4346_v37 = vshrl.u32 %v1838_v48, 30  ;;  %v951_v44 = vsel %vm944_vm14, %v947_v1, %v950_v49  ;;  %v1068_v8 = vsel %vm1067_vm4, %v1066_v34, 0  ;;  %v4352_v12 = vand.u32 8388607, %v5777_v25 }
 0x192   :  { %v1032_v58 = vor.u32 4788187, %v1031_v45  ;;  %v952_v11 = vsel %vm942_vm1, nan, %v951_v44  ;;  %v1169_v18 = vadd.s32 1, %v3209_v54  ;;  %v1035_v63 = vcvt.s32.f32 %v1028_v27 }
 0x193   :  { %v1840_v19 = vshll.u32 %v4346_v37, 30  ;;  %3118 = vst [vmem:[#allocation2 + $0x10] sm:$0xff] %v952_v11  ;;  %v1070_v40 = vand.u32 31, %v1068_v8  ;;  %v4357_v31 = vand.u32 3, %v1042_v22  ;;  %v1833_v16 = vadd.s32 %v4307_v41, %v4313_v39 }
 0x194   :  { %v1033_v36 = vand.u32 2147483647, %v1032_v58  ;;  %v1069_v53 = vshrl.u32 %v1068_v8, 5  ;;  %v4362_v23 = vshll.u32 %v1064_v14, 8  ;;  %v1167_v4 = vor.u32 8388608, %v4352_v12 }
 0x195   :  { %v4360_v3 = vsub.s32 %v1837_v9, %v1840_v19  ;;  %v1071_v51 = vsub.s32 32, %v1070_v40  ;;  %v1863_v5 = vsub.s32 4, %v4346_v37  ;;  %v1073_v48 = vshll.u32 %v5781_v17, %v1070_v40 }
 0x196   :  { %v1036_v50 = vmul.f32 %v1035_v63, %v1033_v36  ;;  %vm1170_vm5 = vcmp.gt.s32.totalorder %v1169_v18, 0  ;;  %v1076_v41 = vshll.u32 %v5788_v24, %v1070_v40  ;;  %v1079_v27 = vshll.u32 %v5793_v62, %v1070_v40 }
 0x197   :  { %v1843_v33 = vsub.s32 0, %v4360_v3  ;;  %v1074_v54 = vshrl.u32 %v5788_v24, %v1071_v51  ;;  %v1077_v39 = vshrl.u32 %v5793_v62, %v1071_v51  ;;  %v1072_v49 = vshrl.u32 %v5781_v17, %v1071_v51 }
 0x198   :  { %v1037_v34 = vxor.u32 2147483648, %v1036_v50  ;;  %vm1088_vm6 = vcmp.lt.s32.totalorder %v1069_v53, 1  ;;  %v1080_v14 = vshrl.u32 %v5789_v20, %v1071_v51  ;;  %v1082_v8 = vshll.u32 %v5789_v20, %v1070_v40 }
 0x199   :  { %v3234_v9 = vmin.u32 %v1843_v33, %v4360_v3  ;;  %v1075_v22 = vor.u32 %v1074_v54, %v1073_v48  ;;  %v1078_v1 = vor.u32 %v1077_v39, %v1076_v41  ;;  %v1083_v11 = vshrl.u32 %v3589_v0, %v1071_v51 }
 0x19a   :  { %v1038_v45 = vsel %vm955_vm12, %v1037_v34, %v1036_v50  ;;  %v1081_v19 = vor.u32 %v1080_v14, %v1079_v27  ;;  %v1085_v36 = vshll.u32 %v3589_v0, %v1070_v40  ;;  %v1086_v63 = vshrl.u32 %v3590_v42, %v1071_v51 }
 0x19b   :  { %v1041_v44 = vsel %vm4317_vm13, %v4103_v57, %v1038_v45  ;;  %v1845_v58 = vclz %v3234_v9  ;;  %v1084_v33 = vor.u32 %v1083_v11, %v1082_v8  ;;  %vm1090_vm7 = vcmp.lt.s32.totalorder %v1069_v53, 3  ;;  %v485_v11 = vpop.f32.mrf.mxu0 }
 0x19c   :  { %3482 = vcosq.f32 %v1041_v44  ;;  %vm1779_vm8 = vcmp.lt.s32.totalorder %v4186_v46, 0  ;;  %v1087_v48 = vor.u32 %v1086_v63, %v1085_v36  ;;  %vm1091_vm9 = vcmp.lt.s32.totalorder %v1069_v53, 4 }
 0x19d   :  { %3484 = vsinq.f32 %v1041_v44  ;;  %v3235_v50 = vadd.s32 4294967294, %v1845_v58  ;;  %v1092_v30 = vsel %vm1088_vm6, %v1072_v49, %v1075_v22  ;;  %v1096_v34 = vsel %vm1088_vm6, %v1075_v22, %v1078_v1 }
 0x19e   :  { %v1093_v54 = vsel %vm1091_vm9, %v1081_v19, 2102212464  ;;  %v1097_v41 = vsel %vm1091_vm9, %v1084_v33, 920167782  ;;  %v1100_v39 = vsel %vm1088_vm6, %v1078_v1, %v1081_v19  ;;  %v1101_v27 = vsel %vm1091_vm9, %v1087_v48, 1326507024 }
 0x19f   :  { %vm3236_vm10 = vcmp.lt.s32.totalorder %v3235_v50, 0  ;;  %v1094_v51 = vsel %vm1090_vm7, %v1078_v1, %v1093_v54  ;;  %v1098_v9 = vsel %vm1090_vm7, %v1081_v19, %v1097_v41  ;;  %vm1089_vm11 = vcmp.lt.s32.totalorder %v1069_v53, 2 }
 0x1a0   :  { %v1848_v40 = vsel %vm3236_vm10, 0, %v3235_v50  ;;  %v1095_v58 = vsel %vm1089_vm11, %v1092_v30, %v1094_v51  ;;  %v1099_v49 = vsel %vm1089_vm11, %v1096_v34, %v1098_v9  ;;  %v1102_v22 = vsel %vm1090_vm7, %v1084_v33, %v1101_v27 }
 0x1a1   :  { %v1849_v45 = vsub.s32 32, %v1848_v40  ;;  %v1850_v14 = vshll.u32 %v4360_v3, %v1848_v40  ;;  %v1853_v44 = vsub.s32 4294967266, %v1848_v40  ;;  %v1171_v8 = vsel %vm1170_vm5, %v1169_v18, 0 }
 0x1a2   :  { %v1103_v50 = vsel %vm1089_vm11, %v1100_v39, %v1102_v22  ;;  %v4393_v25 = vshrl.u32 %v1171_v8, 5  ;;  %v4400_v3 = vmul.u32.u64.low %v4362_v23, %v1099_v49  ;;  %v4401_v48 = vmul.u32.u64.high %v4362_v23, %v1099_v49, %v4400_v3 }
 0x1a3   :  { %v1851_v36 = vshrl.u32 %v1833_v16, %v1849_v45  ;;  %v1854_v63 = vadd.s32 127, %v1853_v44  ;;  %v4396_v1 = vmul.u32.u64.low %v4362_v23, %v1103_v50  ;;  %v4397_v19 = vmul.u32.u64.high %v4362_v23, %v1103_v50, %v4396_v1 }
 0x1a4   :  { %v1173_v33 = vand.u32 31, %v1171_v8  ;;  %v4405_v18 = vadd.f32 %v485_v11, %v3813_v26  ;;  %vm1045_vm12 = vweird.f32 %v4103_v57  ;;  %vm1047_vm13 = vcmp.lt.s32.totalorder %v4357_v31, 2 }
 0x1a5   :  { %v1852_v30 = vor.u32 %v1851_v36, %v1850_v14  ;;  %v1855_v53 = vshll.u32 %v1854_v63, 23  ;;  %vm1048_vm14 = vcmp.eq.s32.totalorder %v4357_v31, 0  ;;  %vm1051_vm15 = vcmp.eq.s32.totalorder %v4357_v31, 2 }
 0x1a6   :  { %v4413_v16 = vshll.u32 %v1167_v4, 8  ;;  %vm4417_vm0 = vcmp.le.f32.partialorder %v1777_v28, 0.7853982  ;;  %v4426_v54 = vsel %vm1779_vm8, %v1863_v5, %v4346_v37  ;;  %v1111_v41 = vmul.u32 %v4362_v23, %v1095_v58 }
 0x1a7   :  { %v1856_v26 = vor.u32 4788187, %v1855_v53  ;;  %v1174_v39 = vsub.s32 32, %v1173_v33  ;;  %v1859_v12 = vcvt.s32.f32 %v1852_v30  ;;  %vm1113_vm1 = vc.u32 %v4397_v19, %v4400_v3 }
 0x1a8   :  { %v1114_v28 = vadd.s32 1, %v4401_v48  ;;  %vm1191_vm2 = vcmp.lt.s32.totalorder %v4393_v25, 1  ;;  %v1176_v51 = vshll.u32 %v5781_v17, %v1173_v33  ;;  %v1179_v45 = vshll.u32 %v5788_v24, %v1173_v33 }
 0x1a9   :  { %v3483_v4 = vpop.eup %3482  ;;  %v1857_v40 = vand.u32 2147483647, %v1856_v26  ;;  %v1177_v9 = vshrl.u32 %v5788_v24, %v1174_v39  ;;  %v1180_v37 = vshrl.u32 %v5793_v62, %v1174_v39  ;;  %v1183_v14 = vshrl.u32 %v5789_v20, %v1174_v39 }
 0x1aa   :  { %v3485_v5 = vpop.eup %3484  ;;  %v1052_v27 = vxor.u32 2147483648, %v3483_v4  ;;  %v1115_v23 = vsel %vm1113_vm1, %v1114_v28, %v4401_v48  ;;  %v1182_v22 = vshll.u32 %v5793_v62, %v1173_v33  ;;  %v1185_v63 = vshll.u32 %v5789_v20, %v1173_v33 }
 0x1ab   :  { %v1049_v44 = vxor.u32 2147483648, %v3485_v5  ;;  %v1860_v58 = vmul.f32 %v1859_v12, %v1857_v40  ;;  %v1116_v49 = vadd.s32 %v1115_v23, %v1111_v41  ;;  %v1178_v11 = vor.u32 %v1177_v9, %v1176_v51 }
 0x1ac   :  { %v1053_v8 = vsel %vm1051_vm15, %v1052_v27, %v3485_v5  ;;  %v1181_v36 = vor.u32 %v1180_v37, %v1179_v45  ;;  %v1186_v30 = vshrl.u32 %v3589_v0, %v1174_v39  ;;  %v1184_v26 = vor.u32 %v1183_v14, %v1182_v22 }
 0x1ad   :  { %v1050_v50 = vsel %vm1048_vm14, %v3483_v4, %v1049_v44  ;;  %v1861_v1 = vxor.u32 2147483648, %v1860_v58  ;;  %v1117_v48 = vadd.s32 536870912, %v1116_v49  ;;  %v1188_v41 = vshll.u32 %v3589_v0, %v1173_v33 }
 0x1ae   :  { %v1054_v53 = vsel %vm1047_vm13, %v1050_v50, %v1053_v8  ;;  %v1189_v12 = vshrl.u32 %v3590_v42, %v1174_v39  ;;  %v1187_v4 = vor.u32 %v1186_v30, %v1185_v63  ;;  %vm1193_vm3 = vcmp.lt.s32.totalorder %v4393_v25, 3 }
 0x1af   :  { %v1055_v28 = vsel %vm1045_vm12, nan, %v1054_v53  ;;  %v1862_v40 = vsel %vm1779_vm8, %v1861_v1, %v1860_v58  ;;  %v1118_v51 = vshrl.u32 %v1117_v48, 30  ;;  %vm1194_vm4 = vcmp.lt.s32.totalorder %v4393_v25, 4  ;;  %v3346_v53 = vpop.f32.mrf.mxu1 }
 0x1b0   :  { %3119 = vst [vmem:[#allocation2 + $0x18] sm:$0xff] %v1055_v28  ;;  %v1865_v9 = vsel %vm4417_vm0, %v4186_v46, %v1862_v40  ;;  %v1190_v31 = vor.u32 %v1189_v12, %v1188_v41  ;;  %v1175_v57 = vshrl.u32 %v5781_v17, %v1174_v39  ;;  %v1199_v37 = vsel %vm1191_vm2, %v1178_v11, %v1181_v36 }
 0x1b1   :  { %3486 = vcosq.f32 %v1865_v9  ;;  %v1119_v33 = vshll.u32 %v1118_v51, 30  ;;  %v1196_v5 = vsel %vm1194_vm4, %v1184_v26, 2102212464  ;;  %v1200_v27 = vsel %vm1194_vm4, %v1187_v4, 920167782 }
 0x1b2   :  { %3488 = vsinq.f32 %v1865_v9  ;;  %v1203_v23 = vsel %vm1191_vm2, %v1181_v36, %v1184_v26  ;;  %vm1192_vm5 = vcmp.lt.s32.totalorder %v4393_v25, 2  ;;  %v1201_v14 = vsel %vm1193_vm3, %v1184_v26, %v1200_v27 }
 0x1b3   :  { %v4464_v45 = vsub.s32 %v1116_v49, %v1119_v33  ;;  %v1204_v44 = vsel %vm1194_vm4, %v1190_v31, 1326507024  ;;  %v1866_v39 = vsel %vm4417_vm0, 0, %v4426_v54  ;;  %v1195_v58 = vsel %vm1191_vm2, %v1175_v57, %v1178_v11 }
 0x1b4   :  { %v1202_v22 = vsel %vm1192_vm5, %v1199_v37, %v1201_v14  ;;  %v1205_v49 = vsel %vm1193_vm3, %v1187_v4, %v1204_v44  ;;  %v1197_v63 = vsel %vm1193_vm3, %v1181_v36, %v1196_v5  ;;  %v4485_v34 = vadd.f32 %v3851_v2, %v4405_v18 }
 0x1b5   :  { %v1122_v8 = vsub.s32 0, %v4464_v45  ;;  %v1206_v50 = vsel %vm1192_vm5, %v1203_v23, %v1205_v49  ;;  %v4492_v1 = vmul.u32.u64.low %v4413_v16, %v1202_v22  ;;  %v4493_v48 = vmul.u32.u64.high %v4413_v16, %v1202_v22, %v4492_v1 }
 0x1b6   :  { %v4488_v54 = vmul.u32.u64.low %v4413_v16, %v1206_v50  ;;  %v4489_v11 = vmul.u32.u64.high %v4413_v16, %v1206_v50, %v4488_v54  ;;  %v1870_v36 = vand.u32 3, %v1866_v39  ;;  %v1142_v26 = vsub.s32 4, %v1118_v51 }
 0x1b7   :  { %v3206_v30 = vmin.u32 %v1122_v8, %v4464_v45  ;;  %v1198_v41 = vsel %vm1192_vm5, %v1195_v58, %v1197_v63  ;;  %v1265_v18 = vand.u32 2139095040, %v4485_v34  ;;  %vm1058_vm6 = vcmp.lt.s32.totalorder %v4302_v7, 0 }
 0x1b8   :  { %vm1216_vm7 = vc.u32 %v4489_v11, %v4492_v1  ;;  %v1217_v28 = vadd.s32 1, %v4493_v48  ;;  %v599_v40 = vadd.f32 %v3346_v53, %v3833_v55  ;;  %vm1869_vm8 = vweird.f32 %v4186_v46 }
 0x1b9   :  { %v1124_v12 = vclz %v3206_v30  ;;  %vm4508_vm9 = vcmp.le.f32.partialorder %v1056_v13, 0.7853982  ;;  %v1214_v9 = vmul.u32 %v4413_v16, %v1198_v41  ;;  %v1266_v31 = vshrl.u32 %v1265_v18, 23 }
 0x1ba   :  { %vm1871_vm10 = vcmp.lt.s32.totalorder %v1870_v36, 2  ;;  %v1143_v33 = vsel %vm1058_vm6, %v1142_v26, %v1118_v51  ;;  %v1218_v57 = vsel %vm1216_vm7, %v1217_v28, %v4493_v48  ;;  %v1262_v55 = vand.u32 2147483647, %v4485_v34 }
 0x1bb   :  { %v3207_v25 = vadd.s32 4294967294, %v1124_v12  ;;  %vm1872_vm11 = vcmp.eq.s32.totalorder %v1870_v36, 0  ;;  %v1219_v37 = vadd.s32 %v1218_v57, %v1214_v9  ;;  %v3213_v5 = vadd.s32 4294967169, %v1266_v31 }
 0x1bc   :  { %vm1875_vm13 = vcmp.eq.s32.totalorder %v1870_v36, 2  ;;  %v1112_v27 = vadd.s32 %v4400_v3, %v4397_v19  ;;  %v4520_v16 = vadd.f32 %v3856_v21, %v599_v40  ;;  %v1145_v58 = vsel %vm4508_vm9, 0, %v1143_v33 }
 0x1bd   :  { %vm3208_vm12 = vcmp.lt.s32.totalorder %v3207_v25, 0  ;;  %v1220_v49 = vadd.s32 536870912, %v1219_v37  ;;  %v1269_v8 = vand.u32 8388607, %v1262_v55  ;;  %v1272_v63 = vadd.s32 1, %v3213_v5 }
 0x1be   :  { %v3487_v13 = vpop.eup %3486  ;;  %v1127_v23 = vsel %vm3208_vm12, 0, %v3207_v25  ;;  %v2707_v53 = vand.u32 2139095040, %v4520_v16  ;;  %v4535_v31 = vand.u32 3, %v1145_v58  ;;  %vm1161_vm4 = vcmp.lt.s32.totalorder %v4305_v60, 0 }
 0x1bf   :  { %v3489_v14 = vpop.eup %3488  ;;  %v1876_v44 = vxor.u32 2147483648, %v3487_v13  ;;  %v1128_v51 = vsub.s32 32, %v1127_v23  ;;  %v1132_v39 = vsub.s32 4294967266, %v1127_v23  ;;  %v1129_v19 = vshll.u32 %v4464_v45, %v1127_v23 }
 0x1c0   :  { %v1873_v22 = vxor.u32 2147483648, %v3489_v14  ;;  %v4528_v30 = vshrl.u32 %v1220_v49, 30  ;;  %vm1273_vm14 = vcmp.gt.s32.totalorder %v1272_v63, 0  ;;  %v1270_v45 = vor.u32 8388608, %v1269_v8 }
 0x1c1   :  { %v1877_v50 = vsel %vm1875_vm13, %v1876_v44, %v3489_v14  ;;  %v1130_v3 = vshrl.u32 %v1112_v27, %v1128_v51  ;;  %v1133_v54 = vadd.s32 127, %v1132_v39  ;;  %v1274_v12 = vsel %vm1273_vm14, %v1272_v63, 0 }
 0x1c2   :  { %v1874_v48 = vsel %vm1872_vm11, %v3487_v13, %v1873_v22  ;;  %v1222_v40 = vshll.u32 %v4528_v30, 30  ;;  %v1276_v9 = vand.u32 31, %v1274_v12  ;;  %v4539_v57 = vshrl.u32 %v1274_v12, 5 }
 0x1c3   :  { %v1878_v26 = vsel %vm1871_vm10, %v1874_v48, %v1877_v50  ;;  %v1131_v41 = vor.u32 %v1130_v3, %v1129_v19  ;;  %v1134_v18 = vshll.u32 %v1133_v54, 23  ;;  %v2708_v36 = vshrl.u32 %v2707_v53, 23 }
 0x1c4   :  { %v1879_v28 = vsel %vm1869_vm8, nan, %v1878_v26  ;;  %v4537_v33 = vsub.s32 %v1219_v37, %v1222_v40  ;;  %v1215_v27 = vadd.s32 %v4492_v1, %v4489_v11  ;;  %v1277_v46 = vsub.s32 32, %v1276_v9 }
 0x1c5   :  { %3127 = vst [vmem:[#allocation2 + $0x58] sm:$0xff] %v1879_v28  ;;  %v1135_v25 = vor.u32 4788187, %v1134_v18  ;;  %v1138_v13 = vcvt.s32.f32 %v1131_v41  ;;  %v1245_v14 = vsub.s32 4, %v4528_v30  ;;  %v4545_v44 = vshll.u32 %v1270_v45, 8 }
 0x1c6   :  { %v1225_v23 = vsub.s32 0, %v4537_v33  ;;  %v2704_v51 = vand.u32 2147483647, %v4520_v16  ;;  %v1279_v37 = vshll.u32 %v5781_v17, %v1276_v9  ;;  %v1280_v58 = vshrl.u32 %v5788_v24, %v1277_v46 }
 0x1c7   :  { %v1136_v5 = vand.u32 2147483647, %v1135_v25  ;;  %v1283_v22 = vshrl.u32 %v5793_v62, %v1277_v46  ;;  %v1282_v11 = vshll.u32 %v5788_v24, %v1276_v9  ;;  %vm1294_vm15 = vcmp.lt.s32.totalorder %v4539_v57, 1 }
 0x1c8   :  { %v3210_v49 = vmin.u32 %v1225_v23, %v4537_v33  ;;  %v3269_v1 = vadd.s32 4294967169, %v2708_v36  ;;  %v1281_v63 = vor.u32 %v1280_v58, %v1279_v37  ;;  %v1285_v50 = vshll.u32 %v5793_v62, %v1276_v9 }
 0x1c9   :  { %v1139_v39 = vmul.f32 %v1138_v13, %v1136_v5  ;;  %v1286_v19 = vshrl.u32 %v5789_v20, %v1277_v46  ;;  %v1284_v54 = vor.u32 %v1283_v22, %v1282_v11  ;;  %v1288_v48 = vshll.u32 %v5789_v20, %v1276_v9 }
 0x1ca   :  { %v1227_v3 = vclz %v3210_v49  ;;  %v1289_v53 = vshrl.u32 %v3589_v0, %v1277_v46  ;;  %v1291_v18 = vshll.u32 %v3589_v0, %v1276_v9  ;;  %v1292_v12 = vshrl.u32 %v3590_v42, %v1277_v46 }
 0x1cb   :  { %v1140_v8 = vxor.u32 2147483648, %v1139_v39  ;;  %v1287_v41 = vor.u32 %v1286_v19, %v1285_v50  ;;  %vm1295_vm0 = vcmp.lt.s32.totalorder %v4539_v57, 2  ;;  %v1278_v25 = vshrl.u32 %v5781_v17, %v1277_v46 }
 0x1cc   :  { %v3211_v40 = vadd.s32 4294967294, %v1227_v3  ;;  %v1290_v45 = vor.u32 %v1289_v53, %v1288_v48  ;;  %v1293_v36 = vor.u32 %v1292_v12, %v1291_v18  ;;  %vm1297_vm1 = vcmp.lt.s32.totalorder %v4539_v57, 4  ;;  %v487_v48 = vpop.f32.mrf.mxu0 }
 0x1cd   :  { %v1141_v26 = vsel %vm1058_vm6, %v1140_v8, %v1139_v39  ;;  %v1299_v9 = vsel %vm1297_vm1, %v1287_v41, 2102212464  ;;  %v1302_v5 = vsel %vm1294_vm15, %v1281_v63, %v1284_v54  ;;  %vm1296_vm3 = vcmp.lt.s32.totalorder %v4539_v57, 3 }
 0x1ce   :  { %v1144_v28 = vsel %vm4508_vm9, %v4302_v7, %v1141_v26  ;;  %vm3212_vm2 = vcmp.lt.s32.totalorder %v3211_v40, 0  ;;  %v1298_v13 = vsel %vm1294_vm15, %v1278_v25, %v1281_v63  ;;  %v1303_v46 = vsel %vm1297_vm1, %v1290_v45, 920167782 }
 0x1cf   :  { %3490 = vcosq.f32 %v1144_v28  ;;  %v1230_v4 = vsel %vm3212_vm2, 0, %v3211_v40  ;;  %v1304_v37 = vsel %vm1296_vm3, %v1287_v41, %v1303_v46  ;;  %v1306_v58 = vsel %vm1294_vm15, %v1284_v54, %v1287_v41 }
 0x1d0   :  { %3492 = vsinq.f32 %v1144_v28  ;;  %v1231_v23 = vsub.s32 32, %v1230_v4  ;;  %v1235_v39 = vsub.s32 4294967266, %v1230_v4  ;;  %v1232_v22 = vshll.u32 %v4537_v33, %v1230_v4 }
 0x1d1   :  { %v1300_v49 = vsel %vm1296_vm3, %v1284_v54, %v1299_v9  ;;  %v1305_v11 = vsel %vm1295_vm0, %v1302_v5, %v1304_v37  ;;  %v1307_v8 = vsel %vm1297_vm1, %v1293_v36, 1326507024  ;;  %v2714_v3 = vadd.s32 1, %v3269_v1 }
 0x1d2   :  { %v1233_v50 = vshrl.u32 %v1215_v27, %v1231_v23  ;;  %v1236_v63 = vadd.s32 127, %v1235_v39  ;;  %v1308_v19 = vsel %vm1296_vm3, %v1290_v45, %v1307_v8  ;;  %v5803_v27 = vand.u32 2147483647, %v4305_v60 }
 0x1d3   :  { %v1309_v53 = vsel %vm1295_vm0, %v1306_v58, %v1308_v19  ;;  %v4588_v26 = vmul.u32.u64.low %v4545_v44, %v1305_v11  ;;  %v4589_v33 = vmul.u32.u64.high %v4545_v44, %v1305_v11, %v4588_v26  ;;  %v1301_v28 = vsel %vm1295_vm0, %v1298_v13, %v1300_v49 }
 0x1d4   :  { %v1234_v54 = vor.u32 %v1233_v50, %v1232_v22  ;;  %v1237_v41 = vshll.u32 %v1236_v63, 23  ;;  %v4593_v18 = vmul.u32.u64.low %v4545_v44, %v1309_v53  ;;  %v4594_v12 = vmul.u32.u64.high %v4545_v44, %v1309_v53, %v4593_v18 }
 0x1d5   :  { %vm4598_vm5 = vcmp.le.f32.partialorder %v5803_v27, 0.7853982  ;;  %vm2715_vm6 = vcmp.gt.s32.totalorder %v2714_v3, 0  ;;  %v586_v40 = vadd.f32 %v487_v48, %v3815_v29  ;;  %vm1150_vm7 = vcmp.lt.s32.totalorder %v4535_v31, 2 }
 0x1d6   :  { %v1238_v45 = vor.u32 4788187, %v1237_v41  ;;  %v1246_v25 = vsel %vm1161_vm4, %v1245_v14, %v4528_v30  ;;  %v2711_v36 = vand.u32 8388607, %v2704_v51  ;;  %v2716_v9 = vsel %vm2715_vm6, %v2714_v3, 0 }
 0x1d7   :  { %vm1148_vm8 = vweird.f32 %v4302_v7  ;;  %vm1151_vm9 = vcmp.eq.s32.totalorder %v4535_v31, 0  ;;  %vm1154_vm10 = vcmp.eq.s32.totalorder %v4535_v31, 2  ;;  %v1320_v29 = vadd.s32 1, %v4589_v33 }
 0x1d8   :  { %v2718_v57 = vand.u32 31, %v2716_v9  ;;  %v1239_v5 = vand.u32 2147483647, %v1238_v45  ;;  %v1241_v4 = vcvt.s32.f32 %v1234_v54  ;;  %v1317_v13 = vmul.u32 %v4545_v44, %v1301_v28 }
 0x1d9   :  { %vm1319_vm11 = vc.u32 %v4594_v12, %v4588_v26  ;;  %v1248_v30 = vsel %vm4598_vm5, 0, %v1246_v25  ;;  %v4624_v23 = vadd.f32 %v3862_v15, %v586_v40  ;;  %v2712_v22 = vor.u32 8388608, %v2711_v36 }
 0x1da   :  { %v1321_v14 = vsel %vm1319_vm11, %v1320_v29, %v4589_v33  ;;  %v2719_v46 = vsub.s32 32, %v2718_v57  ;;  %v1242_v37 = vmul.f32 %v1241_v4, %v1239_v5  ;;  %v4626_v49 = vshrl.u32 %v2716_v9, 5  ;;  %v564_v5 = vpop.f32.mrf.mxu1 }
 0x1db   :  { %v1322_v58 = vadd.s32 %v1321_v14, %v1317_v13  ;;  %v2721_v8 = vshll.u32 %v5781_v17, %v2718_v57  ;;  %v2724_v54 = vshll.u32 %v5788_v24, %v2718_v57  ;;  %v2727_v41 = vshll.u32 %v5793_v62, %v2718_v57 }
 0x1dc   :  { %v3491_v39 = vpop.eup %3490  ;;  %v2722_v50 = vshrl.u32 %v5788_v24, %v2719_v46  ;;  %v2725_v63 = vshrl.u32 %v5793_v62, %v2719_v46  ;;  %v1243_v3 = vxor.u32 2147483648, %v1242_v37  ;;  %v2728_v53 = vshrl.u32 %v5789_v20, %v2719_v46 }
 0x1dd   :  { %v3493_v11 = vpop.eup %3492  ;;  %v1155_v44 = vxor.u32 2147483648, %v3491_v39  ;;  %v1323_v48 = vadd.s32 536870912, %v1322_v58  ;;  %v2731_v18 = vshrl.u32 %v3589_v0, %v2719_v46  ;;  %v2730_v45 = vshll.u32 %v5789_v20, %v2718_v57 }
 0x1de   :  { %v1152_v19 = vxor.u32 2147483648, %v3493_v11  ;;  %v1244_v28 = vsel %vm1161_vm4, %v1243_v3, %v1242_v37  ;;  %v2723_v9 = vor.u32 %v2722_v50, %v2721_v8  ;;  %v2726_v29 = vor.u32 %v2725_v63, %v2724_v54 }
 0x1df   :  { %v1156_v33 = vsel %vm1154_vm10, %v1155_v44, %v3493_v11  ;;  %v1324_v40 = vshrl.u32 %v1323_v48, 30  ;;  %v1247_v36 = vsel %vm4598_vm5, %v4305_v60, %v1244_v28  ;;  %v2729_v14 = vor.u32 %v2728_v53, %v2727_v41 }
 0x1e0   :  { %v1153_v27 = vsel %vm1151_vm9, %v3491_v39, %v1152_v19  ;;  %3494 = vcosq.f32 %v1247_v36  ;;  %v2732_v39 = vor.u32 %v2731_v18, %v2730_v45  ;;  %v2733_v37 = vshll.u32 %v3589_v0, %v2718_v57 }
 0x1e1   :  { %v1157_v25 = vsel %vm1150_vm7, %v1153_v27, %v1156_v33  ;;  %v1325_v13 = vshll.u32 %v1324_v40, 30  ;;  %3496 = vsinq.f32 %v1247_v36  ;;  %v2734_v31 = vshrl.u32 %v3590_v42, %v2719_v46 }
 0x1e2   :  { %v1158_v4 = vsel %vm1148_vm8, nan, %v1157_v25  ;;  %v4651_v11 = vand.u32 3, %v1248_v30  ;;  %vm1264_vm12 = vcmp.lt.s32.totalorder %v4485_v34, 0  ;;  %v593_v44 = vadd.f32 %v564_v5, %v3837_v59 }
 0x1e3   :  { %3120 = vst [vmem:[#allocation2 + $0x20] sm:$0xff] %v1158_v4  ;;  %v4654_v1 = vsub.s32 %v1322_v58, %v1325_v13  ;;  %v2735_v7 = vor.u32 %v2734_v31, %v2733_v37  ;;  %vm2739_vm13 = vcmp.lt.s32.totalorder %v4626_v49, 4  ;;  %v2752_v8 = vshll.u32 %v2712_v22, 8 }
 0x1e4   :  { %v1368_v50 = vand.u32 2139095040, %v4624_v23  ;;  %vm4661_vm14 = vcmp.le.f32.partialorder %v1262_v55, 0.7853982  ;;  %v2720_v63 = vshrl.u32 %v5781_v17, %v2719_v46  ;;  %vm2736_vm15 = vcmp.lt.s32.totalorder %v4626_v49, 1 }
 0x1e5   :  { %v1328_v30 = vsub.s32 0, %v4654_v1  ;;  %v2741_v58 = vsel %vm2739_vm13, %v2729_v14, 2102212464  ;;  %v2744_v59 = vsel %vm2736_vm15, %v2723_v9, %v2726_v29  ;;  %v2745_v19 = vsel %vm2739_vm13, %v2732_v39, 920167782 }
 0x1e6   :  { %v2748_v3 = vsel %vm2736_vm15, %v2726_v29, %v2729_v14  ;;  %v2749_v48 = vsel %vm2739_vm13, %v2735_v7, 1326507024  ;;  %v1348_v53 = vsub.s32 4, %v1324_v40  ;;  %vm2737_vm0 = vcmp.lt.s32.totalorder %v4626_v49, 2 }
 0x1e7   :  { %v3214_v22 = vmin.u32 %v1328_v30, %v4654_v1  ;;  %vm2738_vm1 = vcmp.lt.s32.totalorder %v4626_v49, 3  ;;  %v2740_v55 = vsel %vm2736_vm15, %v2720_v63, %v2723_v9  ;;  %v1369_v41 = vshrl.u32 %v1368_v50, 23 }
 0x1e8   :  { %v2746_v33 = vsel %vm2738_vm1, %v2729_v14, %v2745_v19  ;;  %v2750_v54 = vsel %vm2738_vm1, %v2732_v39, %v2749_v48  ;;  %v2742_v46 = vsel %vm2738_vm1, %v2726_v29, %v2741_v58  ;;  %vm1251_vm2 = vweird.f32 %v4305_v60 }
 0x1e9   :  { %v1330_v18 = vclz %v3214_v22  ;;  %v2747_v27 = vsel %vm2737_vm0, %v2744_v59, %v2746_v33  ;;  %v2751_v28 = vsel %vm2737_vm0, %v2748_v3, %v2750_v54  ;;  %v1349_v4 = vsel %vm1264_vm12, %v1348_v53, %v1324_v40 }
 0x1ea   :  { %v4675_v45 = vmul.u32.u64.low %v2752_v8, %v2751_v28  ;;  %v4676_v25 = vmul.u32.u64.high %v2752_v8, %v2751_v28, %v4675_v45  ;;  %v4678_v36 = vmul.u32.u64.low %v2752_v8, %v2747_v27  ;;  %v4679_v5 = vmul.u32.u64.high %v2752_v8, %v2747_v27, %v4678_v36 }
 0x1eb   :  { %v3215_v9 = vadd.s32 4294967294, %v1330_v18  ;;  %v3217_v29 = vadd.s32 4294967169, %v1369_v41  ;;  %v4686_v13 = vadd.f32 %v3856_v21, %v593_v44  ;;  %vm1253_vm3 = vcmp.lt.s32.totalorder %v4651_v11, 2  ;;  %v489_v41 = vpop.f32.mrf.mxu0 }
 0x1ec   :  { %vm1254_vm4 = vcmp.eq.s32.totalorder %v4651_v11, 0  ;;  %vm1257_vm5 = vcmp.eq.s32.totalorder %v4651_v11, 2  ;;  %v2743_v14 = vsel %vm2737_vm0, %v2740_v55, %v2742_v46  ;;  %v1318_v39 = vadd.s32 %v4588_v26, %v4594_v12 }
 0x1ed   :  { %vm3216_vm6 = vcmp.lt.s32.totalorder %v3215_v9, 0  ;;  %v1365_v37 = vand.u32 2147483647, %v4624_v23  ;;  %v1375_v40 = vadd.s32 1, %v3217_v29  ;;  %v3495_v31 = vpop.eup %3494  ;;  %v1351_v44 = vsel %vm4661_vm14, 0, %v1349_v4 }
 0x1ee   :  { %v1333_v7 = vsel %vm3216_vm6, 0, %v3215_v9  ;;  %vm2761_vm7 = vc.u32 %v4676_v25, %v4678_v36  ;;  %v2762_v50 = vadd.s32 1, %v4679_v5  ;;  %v3497_v30 = vpop.eup %3496  ;;  %v1258_v49 = vxor.u32 2147483648, %v3495_v31 }
 0x1ef   :  { %v1334_v63 = vsub.s32 32, %v1333_v7  ;;  %v1338_v58 = vsub.s32 4294967266, %v1333_v7  ;;  %v2759_v59 = vmul.u32 %v2752_v8, %v2743_v14  ;;  %v1255_v26 = vxor.u32 2147483648, %v3497_v30 }
 0x1f0   :  { %v1335_v12 = vshll.u32 %v4654_v1, %v1333_v7  ;;  %v2763_v19 = vsel %vm2761_vm7, %v2762_v50, %v4679_v5  ;;  %vm1376_vm8 = vcmp.gt.s32.totalorder %v1375_v40, 0  ;;  %v1259_v3 = vsel %vm1257_vm5, %v1258_v49, %v3497_v30 }
 0x1f1   :  { %v1336_v48 = vshrl.u32 %v1318_v39, %v1334_v63  ;;  %v1339_v22 = vadd.s32 127, %v1338_v58  ;;  %v2764_v53 = vadd.s32 %v2763_v19, %v2759_v59  ;;  %v1256_v55 = vsel %vm1254_vm4, %v3495_v31, %v1255_v26 }
 0x1f2   :  { %v1372_v33 = vand.u32 8388607, %v1365_v37  ;;  %v1377_v54 = vsel %vm1376_vm8, %v1375_v40, 0  ;;  %v2089_v8 = vand.u32 2139095040, %v4686_v13  ;;  %v1260_v1 = vsel %vm1253_vm3, %v1256_v55, %v1259_v3 }
 0x1f3   :  { %v1337_v18 = vor.u32 %v1336_v48, %v1335_v12  ;;  %v1340_v46 = vshll.u32 %v1339_v22, 23  ;;  %v2765_v27 = vadd.s32 536870912, %v2764_v53  ;;  %v1261_v28 = vsel %vm1251_vm2, nan, %v1260_v1 }
 0x1f4   :  { %v1379_v45 = vand.u32 31, %v1377_v54  ;;  %3121 = vst [vmem:[#allocation2 + $0x28] sm:$0xff] %v1261_v28  ;;  %v4717_v4 = vadd.f32 %v489_v41, %v3817_v32  ;;  %v4719_v29 = vand.u32 3, %v1351_v44  ;;  %v1373_v14 = vor.u32 8388608, %v1372_v33 }
 0x1f5   :  { %v1341_v5 = vor.u32 4788187, %v1340_v46  ;;  %v4714_v9 = vshrl.u32 %v2765_v27, 30  ;;  %v2086_v11 = vand.u32 2147483647, %v4686_v13  ;;  %v1344_v31 = vcvt.s32.f32 %v1337_v18 }
 0x1f6   :  { %v1380_v39 = vsub.s32 32, %v1379_v45  ;;  %v2090_v60 = vshrl.u32 %v2089_v8, 23  ;;  %v1382_v50 = vshll.u32 %v5781_v17, %v1379_v45  ;;  %v1385_v58 = vshll.u32 %v5788_v24, %v1379_v45 }
 0x1f7   :  { %v1342_v40 = vand.u32 2147483647, %v1341_v5  ;;  %v2767_v7 = vshll.u32 %v4714_v9, 30  ;;  %v1378_v26 = vshrl.u32 %v1377_v54, 5  ;;  %v1388_v12 = vshll.u32 %v5793_v62, %v1379_v45 }
 0x1f8   :  { %v1383_v30 = vshrl.u32 %v5788_v24, %v1380_v39  ;;  %v1386_v49 = vshrl.u32 %v5793_v62, %v1380_v39  ;;  %v1389_v32 = vshrl.u32 %v5789_v20, %v1380_v39  ;;  %v1392_v59 = vshrl.u32 %v3589_v0, %v1380_v39 }
 0x1f9   :  { %v1345_v63 = vmul.f32 %v1344_v31, %v1342_v40  ;;  %v4727_v44 = vsub.s32 %v2764_v53, %v2767_v7  ;;  %v1391_v19 = vshll.u32 %v5789_v20, %v1379_v45  ;;  %v4733_v3 = vshll.u32 %v1373_v14, 8 }
 0x1fa   :  { %v1384_v55 = vor.u32 %v1383_v30, %v1382_v50  ;;  %v1387_v33 = vor.u32 %v1386_v49, %v1385_v58  ;;  %v1390_v8 = vor.u32 %v1389_v32, %v1388_v12  ;;  %v1394_v53 = vshll.u32 %v3589_v0, %v1379_v45 }
 0x1fb   :  { %v1346_v48 = vxor.u32 2147483648, %v1345_v63  ;;  %v2770_v22 = vsub.s32 0, %v4727_v44  ;;  %v1393_v41 = vor.u32 %v1392_v59, %v1391_v19  ;;  %v1395_v1 = vshrl.u32 %v3590_v42, %v1380_v39 }
 0x1fc   :  { %v1381_v46 = vshrl.u32 %v5781_v17, %v1380_v39  ;;  %v3245_v27 = vadd.s32 4294967169, %v2090_v60  ;;  %vm1397_vm9 = vcmp.lt.s32.totalorder %v1378_v26, 1  ;;  %vm1398_vm10 = vcmp.lt.s32.totalorder %v1378_v26, 2 }
 0x1fd   :  { %v1347_v54 = vsel %vm1264_vm12, %v1346_v48, %v1345_v63  ;;  %v3270_v18 = vmin.u32 %v2770_v22, %v4727_v44  ;;  %v1396_v5 = vor.u32 %v1395_v1, %v1394_v53  ;;  %vm1399_vm11 = vcmp.lt.s32.totalorder %v1378_v26, 3 }
 0x1fe   :  { %v1350_v28 = vsel %vm4661_vm14, %v4485_v34, %v1347_v54  ;;  %vm1400_vm13 = vcmp.lt.s32.totalorder %v1378_v26, 4  ;;  %vm2706_vm15 = vcmp.lt.s32.totalorder %v4520_v16, 0  ;;  %v1405_v40 = vsel %vm1397_vm9, %v1384_v55, %v1387_v33 }
 0x1ff   :  { %3498 = vcosq.f32 %v1350_v28  ;;  %v2772_v14 = vclz %v3270_v18  ;;  %v1402_v45 = vsel %vm1400_vm13, %v1390_v8, 2102212464  ;;  %v1406_v31 = vsel %vm1400_vm13, %v1393_v41, 920167782 }
 0x200   :  { %3500 = vsinq.f32 %v1350_v28  ;;  %v1401_v39 = vsel %vm1397_vm9, %v1381_v46, %v1384_v55  ;;  %v1407_v60 = vsel %vm1399_vm11, %v1390_v8, %v1406_v31  ;;  %v1409_v50 = vsel %vm1397_vm9, %v1387_v33, %v1390_v8 }
 0x201   :  { %v3271_v7 = vadd.s32 4294967294, %v2772_v14  ;;  %v1403_v57 = vsel %vm1399_vm11, %v1387_v33, %v1402_v45  ;;  %v1408_v30 = vsel %vm1398_vm10, %v1405_v40, %v1407_v60  ;;  %v1410_v49 = vsel %vm1400_vm13, %v1396_v5, 1326507024 }
 0x202   :  { %v2096_v32 = vadd.s32 1, %v3245_v27  ;;  %v1411_v63 = vsel %vm1399_vm11, %v1393_v41, %v1410_v49  ;;  %v4751_v58 = vmul.u32.u64.low %v4733_v3, %v1408_v30  ;;  %v4752_v59 = vmul.u32.u64.high %v4733_v3, %v1408_v30, %v4751_v58 }
 0x203   :  { %vm3272_vm12 = vcmp.lt.s32.totalorder %v3271_v7, 0  ;;  %v2760_v12 = vadd.s32 %v4678_v36, %v4676_v25  ;;  %v1412_v48 = vsel %vm1398_vm10, %v1409_v50, %v1411_v63  ;;  %v2790_v33 = vsub.s32 4, %v4714_v9 }
 0x204   :  { %v2775_v19 = vsel %vm3272_vm12, 0, %v3271_v7  ;;  %vm2097_vm14 = vcmp.gt.s32.totalorder %v2096_v32, 0  ;;  %v1404_v53 = vsel %vm1398_vm10, %v1401_v39, %v1403_v57  ;;  %vm1357_vm0 = vcmp.eq.s32.totalorder %v4719_v29, 0 }
 0x205   :  { %v2776_v22 = vsub.s32 32, %v2775_v19  ;;  %v2780_v55 = vsub.s32 4294967266, %v2775_v19  ;;  %v2098_v8 = vsel %vm2097_vm14, %v2096_v32, 0  ;;  %vm4767_vm1 = vcmp.le.f32.partialorder %v2704_v51, 0.7853982 }
 0x206   :  { %v4761_v41 = vmul.u32.u64.low %v4733_v3, %v1412_v48  ;;  %v4762_v1 = vmul.u32.u64.high %v4733_v3, %v1412_v48, %v4761_v41  ;;  %v2100_v54 = vand.u32 31, %v2098_v8  ;;  %v2777_v36 = vshll.u32 %v4727_v44, %v2775_v19 }
 0x207   :  { %v2778_v18 = vshrl.u32 %v2760_v12, %v2776_v22  ;;  %v2781_v46 = vadd.s32 127, %v2780_v55  ;;  %v1423_v26 = vadd.s32 1, %v4752_v59  ;;  %vm1356_vm2 = vcmp.lt.s32.totalorder %v4719_v29, 2 }
 0x208   :  { %vm1360_vm3 = vcmp.eq.s32.totalorder %v4719_v29, 2  ;;  %v2093_v27 = vand.u32 8388607, %v2086_v11  ;;  %v2101_v28 = vsub.s32 32, %v2100_v54  ;;  %v4779_v51 = vadd.f32 %v3851_v2, %v4717_v4 }
 0x209   :  { %vm1354_vm4 = vweird.f32 %v4485_v34  ;;  %v2779_v5 = vor.u32 %v2778_v18, %v2777_v36  ;;  %v2782_v44 = vshll.u32 %v2781_v46, 23  ;;  %v4785_v14 = vsel %vm2706_vm15, %v2790_v33, %v4714_v9 }
 0x20a   :  { %v1420_v45 = vmul.u32 %v4733_v3, %v1404_v53  ;;  %vm1422_vm5 = vc.u32 %v4762_v1, %v4751_v58  ;;  %v4790_v40 = vshrl.u32 %v2098_v8, 5  ;;  %v2103_v31 = vshll.u32 %v5781_v17, %v2100_v54 }
 0x20b   :  { %v2104_v4 = vshrl.u32 %v5788_v24, %v2101_v28  ;;  %v2783_v7 = vor.u32 4788187, %v2782_v44  ;;  %v1424_v39 = vsel %vm1422_vm5, %v1423_v26, %v4752_v59  ;;  %v2106_v60 = vshll.u32 %v5788_v24, %v2100_v54 }
 0x20c   :  { %v2107_v50 = vshrl.u32 %v5793_v62, %v2101_v28  ;;  %v3499_v9 = vpop.eup %3498  ;;  %v1425_v57 = vadd.s32 %v1424_v39, %v1420_v45  ;;  %v2109_v3 = vshll.u32 %v5793_v62, %v2100_v54  ;;  %v2112_v30 = vshll.u32 %v5789_v20, %v2100_v54 }
 0x20d   :  { %v2113_v49 = vshrl.u32 %v3589_v0, %v2101_v28  ;;  %v3501_v32 = vpop.eup %3500  ;;  %v1361_v63 = vxor.u32 2147483648, %v3499_v9  ;;  %v2784_v12 = vand.u32 2147483647, %v2783_v7  ;;  %v2786_v19 = vcvt.s32.f32 %v2779_v5 }
 0x20e   :  { %v2110_v48 = vshrl.u32 %v5789_v20, %v2101_v28  ;;  %v1358_v22 = vxor.u32 2147483648, %v3501_v32  ;;  %v1426_v59 = vadd.s32 536870912, %v1425_v57  ;;  %v2105_v55 = vor.u32 %v2104_v4, %v2103_v31 }
 0x20f   :  { %v2108_v33 = vor.u32 %v2107_v50, %v2106_v60  ;;  %v1362_v8 = vsel %vm1360_vm3, %v1361_v63, %v3501_v32  ;;  %v2787_v53 = vmul.f32 %v2786_v19, %v2784_v12  ;;  %v2114_v41 = vor.u32 %v2113_v49, %v2112_v30 }
 0x210   :  { %v2116_v36 = vshrl.u32 %v3590_v42, %v2101_v28  ;;  %v1359_v18 = vsel %vm1357_vm0, %v3499_v9, %v1358_v22  ;;  %v2793_v46 = vsel %vm4767_vm1, 0, %v4785_v14  ;;  %v1427_v26 = vshrl.u32 %v1426_v59, 30 }
 0x211   :  { %v2094_v5 = vor.u32 8388608, %v2093_v27  ;;  %v1363_v44 = vsel %vm1356_vm2, %v1359_v18, %v1362_v8  ;;  %v2788_v45 = vxor.u32 2147483648, %v2787_v53  ;;  %v2111_v31 = vor.u32 %v2110_v48, %v2109_v3 }
 0x212   :  { %v2115_v4 = vshll.u32 %v3589_v0, %v2100_v54  ;;  %v1364_v7 = vsel %vm1354_vm4, nan, %v1363_v44  ;;  %v1428_v39 = vshll.u32 %v1427_v26, 30  ;;  %vm2118_vm6 = vcmp.lt.s32.totalorder %v4790_v40, 1 }
 0x213   :  { %vm2121_vm7 = vcmp.lt.s32.totalorder %v4790_v40, 4  ;;  %3122 = vst [vmem:[#allocation2 + $0x30] sm:$0xff] %v1364_v7  ;;  %v2789_v14 = vsel %vm2706_vm15, %v2788_v45, %v2787_v53  ;;  %v2126_v29 = vsel %vm2118_vm6, %v2105_v55, %v2108_v33  ;;  %vm2120_vm8 = vcmp.lt.s32.totalorder %v4790_v40, 3  ;;  %v3347_v7 = vpop.f32.mrf.mxu1 }
 0x214   :  { %v2117_v27 = vor.u32 %v2116_v36, %v2115_v4  ;;  %v2127_v60 = vsel %vm2121_vm7, %v2114_v41, 920167782  ;;  %v2792_v34 = vsel %vm4767_vm1, %v4520_v16, %v2789_v14  ;;  %v1429_v54 = vsub.s32 %v1425_v57, %v1428_v39 }
 0x215   :  { %v2134_v50 = vshll.u32 %v2094_v5, 8  ;;  %3502 = vcosq.f32 %v2792_v34  ;;  %v2102_v9 = vshrl.u32 %v5781_v17, %v2101_v28  ;;  %vm2119_vm9 = vcmp.lt.s32.totalorder %v4790_v40, 2 }
 0x216   :  { %v2128_v3 = vsel %vm2120_vm8, %v2111_v31, %v2127_v60  ;;  %3504 = vsinq.f32 %v2792_v34  ;;  %v1431_v30 = vsub.s32 0, %v1429_v54  ;;  %v2123_v49 = vsel %vm2121_vm7, %v2111_v31, 2102212464 }
 0x217   :  { %v2129_v25 = vsel %vm2119_vm9, %v2126_v29, %v2128_v3  ;;  %v2130_v57 = vsel %vm2118_vm6, %v2108_v33, %v2111_v31  ;;  %v2131_v32 = vsel %vm2121_vm7, %v2117_v27, 1326507024  ;;  %v2122_v19 = vsel %vm2118_vm6, %v2102_v9, %v2105_v55 }
 0x218   :  { %v4838_v28 = vmul.u32.u64.low %v2134_v50, %v2129_v25  ;;  %v4839_v63 = vmul.u32.u64.high %v2134_v50, %v2129_v25, %v4838_v28  ;;  %v3218_v12 = vmin.u32 %v1431_v30, %v1429_v54  ;;  %v2124_v48 = vsel %vm2120_vm8, %v2108_v33, %v2123_v49 }
 0x219   :  { %v2132_v22 = vsel %vm2120_vm8, %v2114_v41, %v2131_v32  ;;  %v1574_v59 = vand.u32 2139095040, %v4779_v51  ;;  %v2797_v8 = vand.u32 3, %v2793_v46  ;;  %v1451_v36 = vsub.s32 4, %v1427_v26 }
 0x21a   :  { %v1433_v53 = vclz %v3218_v12  ;;  %v2133_v18 = vsel %vm2119_vm9, %v2130_v57, %v2132_v22  ;;  %v2125_v55 = vsel %vm2119_vm9, %v2122_v19, %v2124_v48  ;;  %v2144_v33 = vadd.s32 1, %v4839_v63 }
 0x21b   :  { %v4851_v5 = vmul.u32.u64.low %v2134_v50, %v2133_v18  ;;  %v4852_v44 = vmul.u32.u64.high %v2134_v50, %v2133_v18, %v4851_v5  ;;  %v1575_v31 = vshrl.u32 %v1574_v59, 23  ;;  %vm4859_vm10 = vcmp.le.f32.partialorder %v1365_v37, 0.7853982 }
 0x21c   :  { %v3219_v45 = vadd.s32 4294967294, %v1433_v53  ;;  %vm1367_vm11 = vcmp.lt.s32.totalorder %v4624_v23, 0  ;;  %vm2799_vm13 = vcmp.eq.s32.totalorder %v2797_v8, 0  ;;  %v2141_v39 = vmul.u32 %v2134_v50, %v2125_v55 }
 0x21d   :  { %v1452_v46 = vsel %vm1367_vm11, %v1451_v36, %v1427_v26  ;;  %v3225_v4 = vadd.s32 4294967169, %v1575_v31  ;;  %vm2143_vm12 = vc.u32 %v4852_v44, %v4838_v28  ;;  %v1571_v14 = vand.u32 2147483647, %v4779_v51 }
 0x21e   :  { %vm3220_vm15 = vcmp.lt.s32.totalorder %v3219_v45, 0  ;;  %v1421_v37 = vadd.s32 %v4751_v58, %v4762_v1  ;;  %v2145_v60 = vsel %vm2143_vm12, %v2144_v33, %v4839_v63  ;;  %vm2802_vm14 = vcmp.eq.s32.totalorder %v2797_v8, 2 }
 0x21f   :  { %v1436_v40 = vsel %vm3220_vm15, 0, %v3219_v45  ;;  %v2146_v34 = vadd.s32 %v2145_v60, %v2141_v39  ;;  %v1581_v9 = vadd.s32 1, %v3225_v4  ;;  %v602_v26 = vadd.f32 %v3347_v7, %v3844_v6 }
 0x220   :  { %v1437_v27 = vsub.s32 32, %v1436_v40  ;;  %v1441_v29 = vsub.s32 4294967266, %v1436_v40  ;;  %v1438_v30 = vshll.u32 %v1429_v54, %v1436_v40  ;;  %v1454_v25 = vsel %vm4859_vm10, 0, %v1452_v46 }
 0x221   :  { %v2147_v12 = vadd.s32 536870912, %v2146_v34  ;;  %v1578_v58 = vand.u32 8388607, %v1571_v14  ;;  %vm1582_vm0 = vcmp.gt.s32.totalorder %v1581_v9, 0  ;;  %v4881_v59 = vadd.f32 %v3856_v21, %v602_v26 }
 0x222   :  { %v3503_v3 = vpop.eup %3502  ;;  %v1439_v50 = vshrl.u32 %v1421_v37, %v1437_v27  ;;  %v1442_v49 = vadd.s32 127, %v1441_v29  ;;  %v1583_v48 = vsel %vm1582_vm0, %v1581_v9, 0  ;;  %vm2798_vm1 = vcmp.lt.s32.totalorder %v2797_v8, 2 }
 0x223   :  { %v3505_v57 = vpop.eup %3504  ;;  %v2803_v32 = vxor.u32 2147483648, %v3503_v3  ;;  %v4878_v22 = vshrl.u32 %v2147_v12, 30  ;;  %v1585_v54 = vand.u32 31, %v1583_v48  ;;  %vm2796_vm2 = vweird.f32 %v4520_v16 }
 0x224   :  { %v2800_v1 = vxor.u32 2147483648, %v3505_v57  ;;  %v1440_v63 = vor.u32 %v1439_v50, %v1438_v30  ;;  %v1443_v19 = vshll.u32 %v1442_v49, 23  ;;  %v4886_v46 = vand.u32 3, %v1454_v25 }
 0x225   :  { %v2804_v6 = vsel %vm2802_vm14, %v2803_v32, %v3505_v57  ;;  %v2149_v5 = vshll.u32 %v4878_v22, 30  ;;  %v1586_v45 = vsub.s32 32, %v1585_v54  ;;  %v1579_v7 = vor.u32 8388608, %v1578_v58 }
 0x226   :  { %v2801_v53 = vsel %vm2799_vm13, %v3503_v3, %v2800_v1  ;;  %v1444_v36 = vor.u32 4788187, %v1443_v19  ;;  %v1447_v31 = vcvt.s32.f32 %v1440_v63  ;;  %v3016_v8 = vand.u32 2139095040, %v4881_v59 }
 0x227   :  { %v2805_v18 = vsel %vm2798_vm1, %v2801_v53, %v2804_v6  ;;  %v4888_v4 = vsub.s32 %v2146_v34, %v2149_v5  ;;  %v1589_v40 = vshrl.u32 %v5788_v24, %v1586_v45  ;;  %v2142_v16 = vadd.s32 %v4838_v28, %v4852_v44 }
 0x228   :  { %v2806_v55 = vsel %vm2796_vm2, nan, %v2805_v18  ;;  %v1445_v33 = vand.u32 2147483647, %v1444_v36  ;;  %v1584_v37 = vshrl.u32 %v1583_v48, 5  ;;  %v1592_v27 = vshrl.u32 %v5793_v62, %v1586_v45 }
 0x229   :  { %3136 = vst [vmem:[#allocation2 + $0xa0] sm:$0xff] %v2806_v55  ;;  %v2152_v29 = vsub.s32 0, %v4888_v4  ;;  %v1588_v60 = vshll.u32 %v5781_v17, %v1585_v54  ;;  %v1591_v9 = vshll.u32 %v5788_v24, %v1585_v54  ;;  %v1595_v34 = vshrl.u32 %v5789_v20, %v1586_v45 }
 0x22a   :  { %v1448_v39 = vmul.f32 %v1447_v31, %v1445_v33  ;;  %v1594_v3 = vshll.u32 %v5793_v62, %v1585_v54  ;;  %v1597_v30 = vshll.u32 %v5789_v20, %v1585_v54  ;;  %v1598_v50 = vshrl.u32 %v3589_v0, %v1586_v45 }
 0x22b   :  { %v3246_v28 = vmin.u32 %v2152_v29, %v4888_v4  ;;  %v1590_v44 = vor.u32 %v1589_v40, %v1588_v60  ;;  %v4903_v49 = vshll.u32 %v1579_v7, 8  ;;  %v3017_v25 = vshrl.u32 %v3016_v8, 23 }
 0x22c   :  { %v1449_v26 = vxor.u32 2147483648, %v1448_v39  ;;  %v1593_v32 = vor.u32 %v1592_v27, %v1591_v9  ;;  %v1596_v12 = vor.u32 %v1595_v34, %v1594_v3  ;;  %v1599_v58 = vor.u32 %v1598_v50, %v1597_v30 }
 0x22d   :  { %v2154_v63 = vclz %v3246_v28  ;;  %v1600_v19 = vshll.u32 %v3589_v0, %v1585_v54  ;;  %v1601_v48 = vshrl.u32 %v3590_v42, %v1586_v45  ;;  %v1587_v6 = vshrl.u32 %v5781_v17, %v1586_v45 }
 0x22e   :  { %v1450_v57 = vsel %vm1367_vm11, %v1449_v26, %v1448_v39  ;;  %vm1603_vm3 = vcmp.lt.s32.totalorder %v1584_v37, 1  ;;  %vm1605_vm4 = vcmp.lt.s32.totalorder %v1584_v37, 3  ;;  %vm1606_vm5 = vcmp.lt.s32.totalorder %v1584_v37, 4 }
 0x22f   :  { %v1453_v1 = vsel %vm4859_vm10, %v4624_v23, %v1450_v57  ;;  %v3247_v53 = vadd.s32 4294967294, %v2154_v63  ;;  %v1602_v36 = vor.u32 %v1601_v48, %v1600_v19  ;;  %v1608_v18 = vsel %vm1606_vm5, %v1596_v12, 2102212464  ;;  %v567_v48 = vpop.f32.mrf.mxu1 }
 0x230   :  { %3506 = vcosq.f32 %v1453_v1  ;;  %v1611_v5 = vsel %vm1603_vm3, %v1590_v44, %v1593_v32  ;;  %v1612_v55 = vsel %vm1606_vm5, %v1599_v58, 920167782  ;;  %v1615_v33 = vsel %vm1603_vm3, %v1593_v32, %v1596_v12 }
 0x231   :  { %3508 = vsinq.f32 %v1453_v1  ;;  %vm3248_vm6 = vcmp.lt.s32.totalorder %v3247_v53, 0  ;;  %vm1604_vm7 = vcmp.lt.s32.totalorder %v1584_v37, 2  ;;  %v1613_v41 = vsel %vm1605_vm4, %v1596_v12, %v1612_v55  ;;  %v491_v12 = vpop.f32.mrf.mxu0 }
 0x232   :  { %v1616_v54 = vsel %vm1606_vm5, %v1602_v36, 1326507024  ;;  %v2157_v31 = vsel %vm3248_vm6, 0, %v3247_v53  ;;  %v1607_v7 = vsel %vm1603_vm3, %v1587_v6, %v1590_v44  ;;  %v1614_v40 = vsel %vm1604_vm7, %v1611_v5, %v1613_v41 }
 0x233   :  { %v1617_v45 = vsel %vm1605_vm4, %v1599_v58, %v1616_v54  ;;  %v2158_v8 = vsub.s32 32, %v2157_v31  ;;  %v2162_v39 = vsub.s32 4294967266, %v2157_v31  ;;  %v1609_v27 = vsel %vm1605_vm4, %v1593_v32, %v1608_v18 }
 0x234   :  { %v1618_v29 = vsel %vm1604_vm7, %v1615_v33, %v1617_v45  ;;  %v4923_v34 = vmul.u32.u64.low %v4903_v49, %v1614_v40  ;;  %v4924_v26 = vmul.u32.u64.high %v4903_v49, %v1614_v40, %v4923_v34  ;;  %v2159_v3 = vshll.u32 %v4888_v4, %v2157_v31 }
 0x235   :  { %v4919_v60 = vmul.u32.u64.low %v4903_v49, %v1618_v29  ;;  %v4920_v9 = vmul.u32.u64.high %v4903_v49, %v1618_v29, %v4919_v60  ;;  %v2160_v30 = vshrl.u32 %v2142_v16, %v2158_v8  ;;  %v2163_v50 = vadd.s32 127, %v2162_v39 }
 0x236   :  { %v3281_v28 = vadd.s32 4294967169, %v3017_v25  ;;  %v2172_v44 = vsub.s32 4, %v4878_v22  ;;  %v1610_v57 = vsel %vm1604_vm7, %v1607_v7, %v1609_v27  ;;  %v3013_v32 = vand.u32 2147483647, %v4881_v59 }
 0x237   :  { %vm2088_vm8 = vcmp.lt.s32.totalorder %v4686_v13, 0  ;;  %v2161_v58 = vor.u32 %v2160_v30, %v2159_v3  ;;  %v2164_v1 = vshll.u32 %v2163_v50, 23  ;;  %vm1457_vm9 = vweird.f32 %v4624_v23 }
 0x238   :  { %v3023_v63 = vadd.s32 1, %v3281_v28  ;;  %vm1459_vm10 = vcmp.lt.s32.totalorder %v4886_v46, 2  ;;  %vm4936_vm11 = vcmp.le.f32.partialorder %v2086_v11, 0.7853982  ;;  %vm1628_vm13 = vc.u32 %v4920_v9, %v4923_v34 }
 0x239   :  { %v1629_v16 = vadd.s32 1, %v4924_v26  ;;  %v2165_v37 = vor.u32 4788187, %v2164_v1  ;;  %v1626_v25 = vmul.u32 %v4903_v49, %v1610_v57  ;;  %v589_v19 = vadd.f32 %v491_v12, %v3819_v35  ;;  %v495_v49 = vpop.f32.mrf.mxu0 }
 0x23a   :  { %vm3024_vm15 = vcmp.gt.s32.totalorder %v3023_v63, 0  ;;  %v2173_v6 = vsel %vm2088_vm8, %v2172_v44, %v4878_v22  ;;  %v3020_v53 = vand.u32 8388607, %v3013_v32  ;;  %v2168_v55 = vcvt.s32.f32 %v2161_v58 }
 0x23b   :  { %v1630_v11 = vsel %vm1628_vm13, %v1629_v16, %v4924_v26  ;;  %v3025_v36 = vsel %vm3024_vm15, %v3023_v63, 0  ;;  %v2166_v5 = vand.u32 2147483647, %v2165_v37  ;;  %vm1460_vm12 = vcmp.eq.s32.totalorder %v4886_v46, 0 }
 0x23c   :  { %v1631_v33 = vadd.s32 %v1630_v11, %v1626_v25  ;;  %v3027_v41 = vand.u32 31, %v3025_v36  ;;  %vm1463_vm14 = vcmp.eq.s32.totalorder %v4886_v46, 2  ;;  %v4954_v22 = vadd.f32 %v567_v48, %v3849_v10 }
 0x23d   :  { %v3507_v18 = vpop.eup %3506  ;;  %v2169_v7 = vmul.f32 %v2168_v55, %v2166_v5  ;;  %v2175_v39 = vsel %vm4936_vm11, 0, %v2173_v6  ;;  %v4959_v27 = vadd.f32 %v3862_v15, %v589_v19  ;;  %v4962_v29 = vadd.f32 %v495_v49, %v3821_v38 }
 0x23e   :  { %v3509_v54 = vpop.eup %3508  ;;  %v1464_v35 = vxor.u32 2147483648, %v3507_v18  ;;  %v1632_v40 = vadd.s32 536870912, %v1631_v33  ;;  %v3028_v45 = vsub.s32 32, %v3027_v41  ;;  %v3021_v10 = vor.u32 8388608, %v3020_v53 }
 0x23f   :  { %v1461_v31 = vxor.u32 2147483648, %v3509_v54  ;;  %v2170_v26 = vxor.u32 2147483648, %v2169_v7  ;;  %v3030_v50 = vshll.u32 %v5781_v17, %v3027_v41  ;;  %v3026_v1 = vshrl.u32 %v3025_v36, 5 }
 0x240   :  { %v1465_v8 = vsel %vm1463_vm14, %v1464_v35, %v3509_v54  ;;  %v4964_v3 = vshrl.u32 %v1632_v40, 30  ;;  %v3031_v28 = vshrl.u32 %v5788_v24, %v3028_v45  ;;  %v3034_v44 = vshrl.u32 %v5793_v62, %v3028_v45 }
 0x241   :  { %v1462_v60 = vsel %vm1460_vm12, %v3507_v18, %v1461_v31  ;;  %v2171_v38 = vsel %vm2088_vm8, %v2170_v26, %v2169_v7  ;;  %v3037_v58 = vshrl.u32 %v5789_v20, %v3028_v45  ;;  %v3033_v63 = vshll.u32 %v5788_v24, %v3027_v41 }
 0x242   :  { %v1466_v30 = vsel %vm1459_vm10, %v1462_v60, %v1465_v8  ;;  %v1634_v12 = vshll.u32 %v4964_v3, 30  ;;  %v2174_v46 = vsel %vm4936_vm11, %v4686_v13, %v2171_v38  ;;  %v1677_v16 = vand.u32 2139095040, %v4959_v27 }
 0x243   :  { %v1467_v57 = vsel %vm1457_vm9, nan, %v1466_v30  ;;  %3510 = vcosq.f32 %v2174_v46  ;;  %v3032_v37 = vor.u32 %v3031_v28, %v3030_v50  ;;  %v3036_v25 = vshll.u32 %v5793_v62, %v3027_v41 }
 0x244   :  { %3123 = vst [vmem:[#allocation2 + $0x38] sm:$0xff] %v1467_v57  ;;  %v4982_v23 = vsub.s32 %v1631_v33, %v1634_v12  ;;  %3512 = vsinq.f32 %v2174_v46  ;;  %v3035_v19 = vor.u32 %v3034_v44, %v3033_v63  ;;  %v3039_v48 = vshll.u32 %v5789_v20, %v3027_v41 }
 0x245   :  { %v3040_v6 = vshrl.u32 %v3589_v0, %v3028_v45  ;;  %v4987_v11 = vand.u32 3, %v2175_v39  ;;  %v3038_v53 = vor.u32 %v3037_v58, %v3036_v25  ;;  %v3043_v36 = vshrl.u32 %v3590_v42, %v3028_v45 }
 0x246   :  { %v1637_v4 = vsub.s32 0, %v4982_v23  ;;  %v3042_v5 = vshll.u32 %v3589_v0, %v3027_v41  ;;  %v3061_v55 = vshll.u32 %v3021_v10, 8  ;;  %v1678_v33 = vshrl.u32 %v1677_v16, 23 }
 0x247   :  { %v3041_v18 = vor.u32 %v3040_v6, %v3039_v48  ;;  %v3029_v54 = vshrl.u32 %v5781_v17, %v3028_v45  ;;  %vm3045_vm0 = vcmp.lt.s32.totalorder %v3026_v1, 1  ;;  %v1674_v35 = vand.u32 2147483647, %v4959_v27 }
 0x248   :  { %v3226_v49 = vmin.u32 %v1637_v4, %v4982_v23  ;;  %v3044_v31 = vor.u32 %v3043_v36, %v3042_v5  ;;  %vm3047_vm1 = vcmp.lt.s32.totalorder %v3026_v1, 3  ;;  %vm3048_vm2 = vcmp.lt.s32.totalorder %v3026_v1, 4 }
 0x249   :  { %v3053_v7 = vsel %vm3045_vm0, %v3032_v37, %v3035_v19  ;;  %v3050_v8 = vsel %vm3048_vm2, %v3038_v53, 2102212464  ;;  %v3054_v39 = vsel %vm3048_vm2, %v3041_v18, 920167782  ;;  %v3057_v60 = vsel %vm3045_vm0, %v3035_v19, %v3038_v53 }
 0x24a   :  { %v1639_v40 = vclz %v3226_v49  ;;  %vm3046_vm3 = vcmp.lt.s32.totalorder %v3026_v1, 2  ;;  %v3055_v41 = vsel %vm3047_vm1, %v3038_v53, %v3054_v39  ;;  %v3058_v26 = vsel %vm3048_vm2, %v3044_v31, 1326507024 }
 0x24b   :  { %v3229_v10 = vadd.s32 4294967169, %v1678_v33  ;;  %v3049_v50 = vsel %vm3045_vm0, %v3029_v54, %v3032_v37  ;;  %v3056_v45 = vsel %vm3046_vm3, %v3053_v7, %v3055_v41  ;;  %v3059_v28 = vsel %vm3047_vm1, %v3041_v18, %v3058_v26 }
 0x24c   :  { %v3227_v30 = vadd.s32 4294967294, %v1639_v40  ;;  %vm1573_vm4 = vcmp.lt.s32.totalorder %v4779_v51, 0  ;;  %v3051_v44 = vsel %vm3047_vm1, %v3035_v19, %v3050_v8  ;;  %v3060_v57 = vsel %vm3046_vm3, %v3057_v60, %v3059_v28 }
 0x24d   :  { %v5001_v38 = vmul.u32.u64.low %v3061_v55, %v3056_v45  ;;  %v5002_v12 = vmul.u32.u64.high %v3061_v55, %v3056_v45, %v5001_v38  ;;  %vm2178_vm5 = vweird.f32 %v4686_v13  ;;  %v1684_v63 = vadd.s32 1, %v3229_v10 }
 0x24e   :  { %vm3228_vm6 = vcmp.lt.s32.totalorder %v3227_v30, 0  ;;  %v5006_v58 = vmul.u32.u64.low %v3061_v55, %v3060_v57  ;;  %v5007_v46 = vmul.u32.u64.high %v3061_v55, %v3060_v57, %v5006_v58  ;;  %vm2181_vm7 = vcmp.eq.s32.totalorder %v4987_v11, 0 }
 0x24f   :  { %vm2184_vm8 = vcmp.eq.s32.totalorder %v4987_v11, 2  ;;  %v1627_v16 = vadd.s32 %v4923_v34, %v4920_v9  ;;  %v1642_v37 = vsel %vm3228_vm6, 0, %v3227_v30  ;;  %v3052_v48 = vsel %vm3046_vm3, %v3049_v50, %v3051_v44 }
 0x250   :  { %v1643_v25 = vsub.s32 32, %v1642_v37  ;;  %v1647_v19 = vsub.s32 4294967266, %v1642_v37  ;;  %vm1685_vm9 = vcmp.gt.s32.totalorder %v1684_v63, 0  ;;  %v3511_v6 = vpop.eup %3510  ;;  %v1657_v4 = vsub.s32 4, %v4964_v3 }
 0x251   :  { %v3071_v53 = vadd.s32 1, %v5002_v12  ;;  %v1681_v36 = vand.u32 8388607, %v1674_v35  ;;  %v1686_v18 = vsel %vm1685_vm9, %v1684_v63, 0  ;;  %v3513_v5 = vpop.eup %3512  ;;  %v2185_v33 = vxor.u32 2147483648, %v3511_v6 }
 0x252   :  { %v1644_v49 = vshll.u32 %v4982_v23, %v1642_v37  ;;  %v1645_v9 = vshrl.u32 %v1627_v16, %v1643_v25  ;;  %v1648_v34 = vadd.s32 127, %v1647_v19  ;;  %v2182_v54 = vxor.u32 2147483648, %v3513_v5  ;;  %v497_v19 = vpop.f32.mrf.mxu0 }
 0x253   :  { %v3068_v31 = vmul.u32 %v3061_v55, %v3052_v48  ;;  %vm3070_vm10 = vc.u32 %v5007_v46, %v5001_v38  ;;  %v1688_v1 = vand.u32 31, %v1686_v18  ;;  %v2186_v7 = vsel %vm2184_vm8, %v2185_v33, %v3513_v5 }
 0x254   :  { %vm5025_vm11 = vcmp.le.f32.partialorder %v1571_v14, 0.7853982  ;;  %v1646_v8 = vor.u32 %v1645_v9, %v1644_v49  ;;  %v1649_v39 = vshll.u32 %v1648_v34, 23  ;;  %v3072_v23 = vsel %vm3070_vm10, %v3071_v53, %v5002_v12 }
 0x255   :  { %vm2180_vm13 = vcmp.lt.s32.totalorder %v4987_v11, 2  ;;  %v2183_v55 = vsel %vm2181_vm7, %v3511_v6, %v2182_v54  ;;  %v3073_v60 = vadd.s32 %v3072_v23, %v3068_v31  ;;  %v1689_v41 = vsub.s32 32, %v1688_v1 }
 0x256   :  { %v2187_v26 = vsel %vm2180_vm13, %v2183_v55, %v2186_v7  ;;  %v1650_v10 = vor.u32 4788187, %v1649_v39  ;;  %v5036_v14 = vsel %vm1573_vm4, %v1657_v4, %v4964_v3  ;;  %v5040_v30 = vadd.f32 %v3856_v21, %v4954_v22 }
 0x257   :  { %v2188_v50 = vsel %vm2178_vm5, nan, %v2187_v26  ;;  %v3074_v45 = vadd.s32 536870912, %v3073_v60  ;;  %v1682_v28 = vor.u32 8388608, %v1681_v36  ;;  %v1692_v11 = vshrl.u32 %v5788_v24, %v1689_v41 }
 0x258   :  { %3130 = vst [vmem:[#allocation2 + $0x70] sm:$0xff] %v2188_v50  ;;  %v1651_v44 = vand.u32 2147483647, %v1650_v10  ;;  %v1653_v57 = vcvt.s32.f32 %v1646_v8  ;;  %v1695_v12 = vshrl.u32 %v5793_v62, %v1689_v41  ;;  %v1698_v58 = vshrl.u32 %v5789_v20, %v1689_v41 }
 0x259   :  { %v5047_v3 = vshrl.u32 %v3074_v45, 30  ;;  %v1691_v63 = vshll.u32 %v5781_v17, %v1688_v1  ;;  %v1694_v21 = vshll.u32 %v5788_v24, %v1688_v1  ;;  %v1701_v13 = vshrl.u32 %v3589_v0, %v1689_v41 }
 0x25a   :  { %v1654_v22 = vmul.f32 %v1653_v57, %v1651_v44  ;;  %v1687_v16 = vshrl.u32 %v1686_v18, 5  ;;  %v1697_v37 = vshll.u32 %v5793_v62, %v1688_v1  ;;  %v1700_v25 = vshll.u32 %v5789_v20, %v1688_v1 }
 0x25b   :  { %v3076_v48 = vshll.u32 %v5047_v3, 30  ;;  %v1693_v6 = vor.u32 %v1692_v11, %v1691_v63  ;;  %v1696_v4 = vor.u32 %v1695_v12, %v1694_v21  ;;  %v1704_v53 = vshrl.u32 %v3590_v42, %v1689_v41 }
 0x25c   :  { %v1655_v36 = vxor.u32 2147483648, %v1654_v22  ;;  %v1699_v5 = vor.u32 %v1698_v58, %v1697_v37  ;;  %v1702_v33 = vor.u32 %v1701_v13, %v1700_v25  ;;  %v1703_v49 = vshll.u32 %v3589_v0, %v1688_v1 }
 0x25d   :  { %v1660_v18 = vsel %vm5025_vm11, 0, %v5036_v14  ;;  %v5060_v9 = vsub.s32 %v3073_v60, %v3076_v48  ;;  %v1722_v34 = vshll.u32 %v1682_v28, 8  ;;  %v592_v54 = vadd.f32 %v497_v19, %v3823_v43 }
 0x25e   :  { %v1656_v31 = vsel %vm1573_vm4, %v1655_v36, %v1654_v22  ;;  %v1690_v7 = vshrl.u32 %v5781_v17, %v1689_v41  ;;  %v1705_v8 = vor.u32 %v1704_v53, %v1703_v49  ;;  %v2395_v39 = vand.u32 2147483647, %v5040_v30 }
 0x25f   :  { %v1659_v1 = vsel %vm5025_vm11, %v4779_v51, %v1656_v31  ;;  %v3079_v23 = vsub.s32 0, %v5060_v9  ;;  %vm1706_vm15 = vcmp.lt.s32.totalorder %v1687_v16, 1  ;;  %vm1709_vm12 = vcmp.lt.s32.totalorder %v1687_v16, 4 }
 0x260   :  { %3514 = vcosq.f32 %v1659_v1  ;;  %v1711_v55 = vsel %vm1709_vm12, %v1699_v5, 2102212464  ;;  %v1714_v60 = vsel %vm1706_vm15, %v1693_v6, %v1696_v4  ;;  %v1715_v43 = vsel %vm1709_vm12, %v1702_v33, 920167782 }
 0x261   :  { %3516 = vsinq.f32 %v1659_v1  ;;  %v3282_v26 = vmin.u32 %v3079_v23, %v5060_v9  ;;  %vm1707_vm14 = vcmp.lt.s32.totalorder %v1687_v16, 2  ;;  %vm1708_vm0 = vcmp.lt.s32.totalorder %v1687_v16, 3 }
 0x262   :  { %v1710_v41 = vsel %vm1706_vm15, %v1690_v7, %v1693_v6  ;;  %v1716_v10 = vsel %vm1708_vm0, %v1699_v5, %v1715_v43  ;;  %v1718_v14 = vsel %vm1706_vm15, %v1696_v4, %v1699_v5  ;;  %v1719_v50 = vsel %vm1709_vm12, %v1705_v8, 1326507024 }
 0x263   :  { %v3081_v45 = vclz %v3282_v26  ;;  %v1712_v40 = vsel %vm1708_vm0, %v1696_v4, %v1711_v55  ;;  %v1717_v28 = vsel %vm1707_vm14, %v1714_v60, %v1716_v10  ;;  %v1720_v11 = vsel %vm1708_vm0, %v1702_v33, %v1719_v50 }
 0x264   :  { %v1721_v44 = vsel %vm1707_vm14, %v1718_v14, %v1720_v11  ;;  %v5074_v57 = vmul.u32.u64.low %v1722_v34, %v1717_v28  ;;  %v5075_v12 = vmul.u32.u64.high %v1722_v34, %v1717_v28, %v5074_v57  ;;  %v2398_v58 = vand.u32 2139095040, %v5040_v30 }
 0x265   :  { %v3283_v63 = vadd.s32 4294967294, %v3081_v45  ;;  %v3099_v21 = vsub.s32 4, %v5047_v3  ;;  %v5080_v13 = vmul.u32.u64.low %v1722_v34, %v1721_v44  ;;  %v5081_v22 = vmul.u32.u64.high %v1722_v34, %v1721_v44, %v5080_v13 }
 0x266   :  { %vm5085_vm1 = vcmp.le.f32.partialorder %v3013_v32, 0.7853982  ;;  %vm3015_vm2 = vcmp.lt.s32.totalorder %v4881_v59, 0  ;;  %v2399_v25 = vshrl.u32 %v2398_v58, 23  ;;  %v5092_v19 = vadd.f32 %v3851_v2, %v4962_v29 }
 0x267   :  { %v1664_v48 = vand.u32 3, %v1660_v18  ;;  %vm3284_vm3 = vcmp.lt.s32.totalorder %v3283_v63, 0  ;;  %v1713_v6 = vsel %vm1707_vm14, %v1710_v41, %v1712_v40  ;;  %v5096_v4 = vadd.f32 %v3862_v15, %v592_v54 }
 0x268   :  { %v3069_v32 = vadd.s32 %v5001_v38, %v5007_v46  ;;  %v3084_v53 = vsel %vm3284_vm3, 0, %v3283_v63  ;;  %v1732_v36 = vadd.s32 1, %v5075_v12  ;;  %v3257_v5 = vadd.s32 4294967169, %v2399_v25 }
 0x269   :  { %v3085_v33 = vsub.s32 32, %v3084_v53  ;;  %v3089_v49 = vsub.s32 4294967266, %v3084_v53  ;;  %v3100_v29 = vsel %vm3015_vm2, %v3099_v21, %v5047_v3  ;;  %v2402_v16 = vand.u32 8388607, %v2395_v39 }
 0x26a   :  { %vm1663_vm4 = vweird.f32 %v4779_v51  ;;  %v1729_v18 = vmul.u32 %v1722_v34, %v1713_v6  ;;  %vm1731_vm5 = vc.u32 %v5081_v22, %v5074_v57  ;;  %v2405_v38 = vadd.s32 1, %v3257_v5 }
 0x26b   :  { %v1883_v46 = vand.u32 2139095040, %v5092_v19  ;;  %v3086_v54 = vshll.u32 %v5060_v9, %v3084_v53  ;;  %v3087_v31 = vshrl.u32 %v3069_v32, %v3085_v33  ;;  %v3090_v7 = vadd.s32 127, %v3089_v49 }
 0x26c   :  { %v1733_v8 = vsel %vm1731_vm5, %v1732_v36, %v5075_v12  ;;  %vm1665_vm6 = vcmp.lt.s32.totalorder %v1664_v48, 2  ;;  %v3102_v3 = vsel %vm5085_vm1, 0, %v3100_v29  ;;  %vm2406_vm7 = vcmp.gt.s32.totalorder %v2405_v38, 0 }
 0x26d   :  { %v1734_v1 = vadd.s32 %v1733_v8, %v1729_v18  ;;  %v3515_v23 = vpop.eup %3514  ;;  %v3088_v34 = vor.u32 %v3087_v31, %v3086_v54  ;;  %v3091_v55 = vshll.u32 %v3090_v7, 23  ;;  %v2403_v60 = vor.u32 8388608, %v2402_v16 }
 0x26e   :  { %v2407_v43 = vsel %vm2406_vm7, %v2405_v38, 0  ;;  %v3517_v26 = vpop.eup %3516  ;;  %v1670_v41 = vxor.u32 2147483648, %v3515_v23  ;;  %v1884_v9 = vshrl.u32 %v1883_v46, 23  ;;  %vm1666_vm8 = vcmp.eq.s32.totalorder %v1664_v48, 0 }
 0x26f   :  { %v1735_v10 = vadd.s32 536870912, %v1734_v1  ;;  %v2409_v14 = vand.u32 31, %v2407_v43  ;;  %v1667_v50 = vxor.u32 2147483648, %v3517_v26  ;;  %vm1669_vm9 = vcmp.eq.s32.totalorder %v1664_v48, 2 }
 0x270   :  { %v3092_v45 = vor.u32 4788187, %v3091_v55  ;;  %v1671_v40 = vsel %vm1669_vm9, %v1670_v41, %v3517_v26  ;;  %v5114_v28 = vand.u32 3, %v3102_v3  ;;  %v3095_v63 = vcvt.s32.f32 %v3088_v34 }
 0x271   :  { %v5116_v11 = vshrl.u32 %v1735_v10, 30  ;;  %v2410_v44 = vsub.s32 32, %v2409_v14  ;;  %v1668_v12 = vsel %vm1666_vm8, %v3515_v23, %v1667_v50  ;;  %v1880_v21 = vand.u32 2147483647, %v5092_v19 }
 0x272   :  { %v3093_v58 = vand.u32 2147483647, %v3092_v45  ;;  %v1672_v13 = vsel %vm1665_vm6, %v1668_v12, %v1671_v40  ;;  %v5121_v6 = vshll.u32 %v2403_v60, 8  ;;  %v3237_v32 = vadd.s32 4294967169, %v1884_v9 }
 0x273   :  { %v1737_v25 = vshll.u32 %v5116_v11, 30  ;;  %v1673_v53 = vsel %vm1663_vm4, nan, %v1672_v13  ;;  %v2413_v5 = vshrl.u32 %v5788_v24, %v2410_v44  ;;  %v2416_v33 = vshrl.u32 %v5793_v62, %v2410_v44 }
 0x274   :  { %v3096_v36 = vmul.f32 %v3095_v63, %v3093_v58  ;;  %3125 = vst [vmem:[#allocation2 + $0x48] sm:$0xff] %v1673_v53  ;;  %v2412_v29 = vshll.u32 %v5781_v17, %v2409_v14  ;;  %v2415_v48 = vshll.u32 %v5788_v24, %v2409_v14  ;;  %v2419_v16 = vshrl.u32 %v5789_v20, %v2410_v44 }
 0x275   :  { %v5127_v49 = vsub.s32 %v1734_v1, %v1737_v25  ;;  %v2408_v38 = vshrl.u32 %v2407_v43, 5  ;;  %v2418_v46 = vshll.u32 %v5793_v62, %v2409_v14  ;;  %v2421_v51 = vshll.u32 %v5789_v20, %v2409_v14 }
 0x276   :  { %v3097_v18 = vxor.u32 2147483648, %v3096_v36  ;;  %v2414_v31 = vor.u32 %v2413_v5, %v2412_v29  ;;  %v2417_v7 = vor.u32 %v2416_v33, %v2415_v48  ;;  %v2422_v8 = vshrl.u32 %v3589_v0, %v2410_v44 }
 0x277   :  { %v1740_v54 = vsub.s32 0, %v5127_v49  ;;  %v2420_v1 = vor.u32 %v2419_v16, %v2418_v46  ;;  %v2424_v23 = vshll.u32 %v3589_v0, %v2409_v14  ;;  %v2425_v34 = vshrl.u32 %v3590_v42, %v2410_v44 }
 0x278   :  { %v3098_v3 = vsel %vm3015_vm2, %v3097_v18, %v3096_v36  ;;  %v1760_v43 = vsub.s32 4, %v5116_v11  ;;  %v1890_v26 = vadd.s32 1, %v3237_v32  ;;  %v2411_v41 = vshrl.u32 %v5781_v17, %v2410_v44 }
 0x279   :  { %v3101_v55 = vsel %vm5085_vm1, %v4881_v59, %v3098_v3  ;;  %v3230_v60 = vmin.u32 %v1740_v54, %v5127_v49  ;;  %v2423_v10 = vor.u32 %v2422_v8, %v2421_v51  ;;  %v2426_v9 = vor.u32 %v2425_v34, %v2424_v23 }
 0x27a   :  { %3518 = vcosq.f32 %v3101_v55  ;;  %vm2427_vm10 = vcmp.lt.s32.totalorder %v2408_v38, 1  ;;  %vm2428_vm11 = vcmp.lt.s32.totalorder %v2408_v38, 2  ;;  %vm2429_vm13 = vcmp.lt.s32.totalorder %v2408_v38, 3 }
 0x27b   :  { %3520 = vsinq.f32 %v3101_v55  ;;  %v1742_v50 = vclz %v3230_v60  ;;  %vm2430_vm15 = vcmp.lt.s32.totalorder %v2408_v38, 4  ;;  %v2435_v14 = vsel %vm2427_vm10, %v2414_v31, %v2417_v7 }
 0x27c   :  { %v2439_v45 = vsel %vm2427_vm10, %v2417_v7, %v2420_v1  ;;  %v2432_v40 = vsel %vm2430_vm15, %v2420_v1, 2102212464  ;;  %v2436_v12 = vsel %vm2430_vm15, %v2423_v10, 920167782  ;;  %vm1891_vm12 = vcmp.gt.s32.totalorder %v1890_v26, 0 }
 0x27d   :  { %v3231_v37 = vadd.s32 4294967294, %v1742_v50  ;;  %v2431_v58 = vsel %vm2427_vm10, %v2411_v41, %v2414_v31  ;;  %v2433_v63 = vsel %vm2429_vm13, %v2417_v7, %v2432_v40  ;;  %v2437_v13 = vsel %vm2429_vm13, %v2420_v1, %v2436_v12 }
 0x27e   :  { %v2440_v25 = vsel %vm2430_vm15, %v2426_v9, 1326507024  ;;  %v2438_v44 = vsel %vm2428_vm11, %v2435_v14, %v2437_v13  ;;  %v1892_v53 = vsel %vm1891_vm12, %v1890_v26, 0  ;;  %vm1676_vm0 = vcmp.lt.s32.totalorder %v4959_v27, 0 }
 0x27f   :  { %vm3232_vm14 = vcmp.lt.s32.totalorder %v3231_v37, 0  ;;  %v2441_v32 = vsel %vm2429_vm13, %v2423_v10, %v2440_v25  ;;  %v5149_v33 = vmul.u32.u64.low %v5121_v6, %v2438_v44  ;;  %v5150_v29 = vmul.u32.u64.high %v5121_v6, %v2438_v44, %v5149_v33 }
 0x280   :  { %v1745_v36 = vsel %vm3232_vm14, 0, %v3231_v37  ;;  %v2442_v5 = vsel %vm2428_vm11, %v2439_v45, %v2441_v32  ;;  %v1730_v48 = vadd.s32 %v5074_v57, %v5081_v22  ;;  %vm3108_vm1 = vcmp.eq.s32.totalorder %v5114_v28, 0 }
 0x281   :  { %v1746_v16 = vsub.s32 32, %v1745_v36  ;;  %v1750_v18 = vsub.s32 4294967266, %v1745_v36  ;;  %v2434_v46 = vsel %vm2428_vm11, %v2431_v58, %v2433_v63  ;;  %v1894_v31 = vand.u32 31, %v1892_v53 }
 0x282   :  { %v5159_v51 = vmul.u32.u64.low %v5121_v6, %v2442_v5  ;;  %v5160_v54 = vmul.u32.u64.high %v5121_v6, %v2442_v5, %v5159_v51  ;;  %vm3107_vm2 = vcmp.lt.s32.totalorder %v5114_v28, 2  ;;  %vm3111_vm3 = vcmp.eq.s32.totalorder %v5114_v28, 2 }
 0x283   :  { %v1747_v7 = vshll.u32 %v5127_v49, %v1745_v36  ;;  %v1748_v8 = vshrl.u32 %v1730_v48, %v1746_v16  ;;  %v1751_v3 = vadd.s32 127, %v1750_v18  ;;  %vm3105_vm4 = vweird.f32 %v4881_v59 }
 0x284   :  { %v5169_v57 = vsel %vm1676_vm0, %v1760_v43, %v5116_v11  ;;  %v2453_v22 = vadd.s32 1, %v5150_v29  ;;  %v1887_v38 = vand.u32 8388607, %v1880_v21  ;;  %v1895_v1 = vsub.s32 32, %v1894_v31 }
 0x285   :  { %v1749_v23 = vor.u32 %v1748_v8, %v1747_v7  ;;  %v1752_v34 = vshll.u32 %v1751_v3, 23  ;;  %v2450_v55 = vmul.u32 %v5121_v6, %v2434_v46  ;;  %v5175_v49 = vshrl.u32 %v1892_v53, 5 }
 0x286   :  { %vm2452_vm5 = vc.u32 %v5160_v54, %v5149_v33  ;;  %v1897_v60 = vshll.u32 %v5781_v17, %v1894_v31  ;;  %v1898_v11 = vshrl.u32 %v5788_v24, %v1895_v1  ;;  %v1900_v43 = vshll.u32 %v5788_v24, %v1894_v31 }
 0x287   :  { %v3519_v26 = vpop.eup %3518  ;;  %v1753_v41 = vor.u32 4788187, %v1752_v34  ;;  %v2454_v10 = vsel %vm2452_vm5, %v2453_v22, %v5150_v29  ;;  %v1901_v9 = vshrl.u32 %v5793_v62, %v1895_v1  ;;  %v1903_v50 = vshll.u32 %v5793_v62, %v1894_v31 }
 0x288   :  { %v3521_v6 = vpop.eup %3520  ;;  %v3112_v14 = vxor.u32 2147483648, %v3519_v26  ;;  %v1756_v45 = vcvt.s32.f32 %v1749_v23  ;;  %v2455_v37 = vadd.s32 %v2454_v10, %v2450_v55  ;;  %v1906_v40 = vshll.u32 %v5789_v20, %v1894_v31 }
 0x289   :  { %v3109_v12 = vxor.u32 2147483648, %v3521_v6  ;;  %v1754_v58 = vand.u32 2147483647, %v1753_v41  ;;  %v1904_v63 = vshrl.u32 %v5789_v20, %v1895_v1  ;;  %v1907_v13 = vshrl.u32 %v3589_v0, %v1895_v1 }
 0x28a   :  { %v3113_v25 = vsel %vm3111_vm3, %v3112_v14, %v3521_v6  ;;  %v2456_v44 = vadd.s32 536870912, %v2455_v37  ;;  %v1899_v32 = vor.u32 %v1898_v11, %v1897_v60  ;;  %v1902_v53 = vor.u32 %v1901_v9, %v1900_v43 }
 0x28b   :  { %v3110_v36 = vsel %vm3108_vm1, %v3519_v26, %v3109_v12  ;;  %v1757_v5 = vmul.f32 %v1756_v45, %v1754_v58  ;;  %v1908_v29 = vor.u32 %v1907_v13, %v1906_v40  ;;  %v1910_v48 = vshrl.u32 %v3590_v42, %v1895_v1 }
 0x28c   :  { %v3114_v16 = vsel %vm3107_vm2, %v3110_v36, %v3113_v25  ;;  %vm5197_vm6 = vcmp.le.f32.partialorder %v1674_v35, 0.7853982  ;;  %v5201_v46 = vshrl.u32 %v2456_v44, 30  ;;  %v1888_v51 = vor.u32 8388608, %v1887_v38 }
 0x28d   :  { %v3115_v7 = vsel %vm3105_vm4, nan, %v3114_v16  ;;  %v1758_v8 = vxor.u32 2147483648, %v1757_v5  ;;  %v1905_v3 = vor.u32 %v1904_v63, %v1903_v50  ;;  %v1909_v22 = vshll.u32 %v3589_v0, %v1894_v31 }
 0x28e   :  { %3139 = vst [vmem:[#allocation2 + $0xb8] sm:$0xff] %v3115_v7  ;;  %v1763_v28 = vsel %vm5197_vm6, 0, %v5169_v57  ;;  %v2458_v35 = vshll.u32 %v5201_v46, 30  ;;  %vm1912_vm7 = vcmp.lt.s32.totalorder %v5175_v49, 1  ;;  %vm1915_vm8 = vcmp.lt.s32.totalorder %v5175_v49, 4 }
 0x28f   :  { %v1759_v38 = vsel %vm1676_vm0, %v1758_v8, %v1757_v5  ;;  %v1911_v59 = vor.u32 %v1910_v48, %v1909_v22  ;;  %v1920_v23 = vsel %vm1912_vm7, %v1899_v32, %v1902_v53  ;;  %v1921_v31 = vsel %vm1915_vm8, %v1908_v29, 920167782 }
 0x290   :  { %v1762_v57 = vsel %vm5197_vm6, %v4959_v27, %v1759_v38  ;;  %v2459_v34 = vsub.s32 %v2455_v37, %v2458_v35  ;;  %vm1914_vm9 = vcmp.lt.s32.totalorder %v5175_v49, 3  ;;  %v1928_v55 = vshll.u32 %v1888_v51, 8 }
 0x291   :  { %3522 = vcosq.f32 %v1762_v57  ;;  %v1896_v60 = vshrl.u32 %v5781_v17, %v1895_v1  ;;  %vm1913_vm10 = vcmp.lt.s32.totalorder %v5175_v49, 2  ;;  %v1922_v11 = vsel %vm1914_vm9, %v1905_v3, %v1921_v31 }
 0x292   :  { %3524 = vsinq.f32 %v1762_v57  ;;  %v2461_v43 = vsub.s32 0, %v2459_v34  ;;  %v1917_v26 = vsel %vm1915_vm8, %v1905_v3, 2102212464  ;;  %v1923_v41 = vsel %vm1913_vm10, %v1920_v23, %v1922_v11 }
 0x293   :  { %v1924_v10 = vsel %vm1912_vm7, %v1902_v53, %v1905_v3  ;;  %v1925_v9 = vsel %vm1915_vm8, %v1911_v59, 1326507024  ;;  %v5234_v1 = vmul.u32.u64.low %v1928_v55, %v1923_v41  ;;  %v5235_v50 = vmul.u32.u64.high %v1928_v55, %v1923_v41, %v5234_v1  ;;  %v499_v3 = vpop.f32.mrf.mxu0 }
 0x294   :  { %v3258_v6 = vmin.u32 %v2461_v43, %v2459_v34  ;;  %v1916_v14 = vsel %vm1912_vm7, %v1896_v60, %v1899_v32  ;;  %v1918_v45 = vsel %vm1914_vm9, %v1902_v53, %v1917_v26  ;;  %v1926_v37 = vsel %vm1914_vm9, %v1908_v29, %v1925_v9 }
 0x295   :  { %v1986_v40 = vand.u32 2139095040, %v5096_v4  ;;  %v1767_v12 = vand.u32 3, %v1763_v28  ;;  %v1927_v63 = vsel %vm1913_vm10, %v1924_v10, %v1926_v37  ;;  %v1919_v32 = vsel %vm1913_vm10, %v1916_v14, %v1918_v45 }
 0x296   :  { %v2463_v58 = vclz %v3258_v6  ;;  %v5247_v13 = vmul.u32.u64.low %v1928_v55, %v1927_v63  ;;  %v5248_v25 = vmul.u32.u64.high %v1928_v55, %v1927_v63, %v5247_v13  ;;  %v1938_v53 = vadd.s32 1, %v5235_v50 }
 0x297   :  { %v1987_v44 = vshrl.u32 %v1986_v40, 23  ;;  %v1983_v5 = vand.u32 2147483647, %v5096_v4  ;;  %vm1768_vm11 = vcmp.lt.s32.totalorder %v1767_v12, 2  ;;  %vm2397_vm13 = vcmp.lt.s32.totalorder %v5040_v30, 0  ;;  %v501_v13 = vpop.f32.mrf.mxu0 }
 0x298   :  { %v3259_v36 = vadd.s32 4294967294, %v2463_v58  ;;  %vm1766_vm12 = vweird.f32 %v4959_v27  ;;  %v1935_v16 = vmul.u32 %v1928_v55, %v1919_v32  ;;  %vm1937_vm14 = vc.u32 %v5248_v25, %v5234_v1 }
 0x299   :  { %v3241_v29 = vadd.s32 4294967169, %v1987_v44  ;;  %v2451_v49 = vadd.s32 %v5149_v33, %v5160_v54  ;;  %v1939_v8 = vsel %vm1937_vm14, %v1938_v53, %v5235_v50  ;;  %v2481_v22 = vsub.s32 4, %v5201_v46 }
 0x29a   :  { %vm3260_vm15 = vcmp.lt.s32.totalorder %v3259_v36, 0  ;;  %v1940_v28 = vadd.s32 %v1939_v8, %v1935_v16  ;;  %v1990_v35 = vand.u32 8388607, %v1983_v5  ;;  %v594_v11 = vadd.f32 %v499_v3, %v3827_v47 }
 0x29b   :  { %v2466_v48 = vsel %vm3260_vm15, 0, %v3259_v36  ;;  %v1993_v18 = vadd.s32 1, %v3241_v29  ;;  %vm1772_vm1 = vcmp.eq.s32.totalorder %v1767_v12, 2  ;;  %vm1769_vm2 = vcmp.eq.s32.totalorder %v1767_v12, 0 }
 0x29c   :  { %v2467_v51 = vsub.s32 32, %v2466_v48  ;;  %v2471_v7 = vsub.s32 4294967266, %v2466_v48  ;;  %v2468_v59 = vshll.u32 %v2459_v34, %v2466_v48  ;;  %v1941_v33 = vadd.s32 536870912, %v1940_v28 }
 0x29d   :  { %vm1994_vm0 = vcmp.gt.s32.totalorder %v1993_v18, 0  ;;  %vm5269_vm3 = vcmp.le.f32.partialorder %v2395_v39, 0.7853982  ;;  %v5276_v47 = vsel %vm2397_vm13, %v2481_v22, %v5201_v46  ;;  %v1991_v45 = vor.u32 8388608, %v1990_v35 }
 0x29e   :  { %v3523_v38 = vpop.eup %3522  ;;  %v2469_v23 = vshrl.u32 %v2451_v49, %v2467_v51  ;;  %v2472_v31 = vadd.s32 127, %v2471_v7  ;;  %v1995_v57 = vsel %vm1994_vm0, %v1993_v18, 0  ;;  %v5265_v9 = vshrl.u32 %v1941_v33, 30 }
 0x29f   :  { %v3525_v55 = vpop.eup %3524  ;;  %v1773_v60 = vxor.u32 2147483648, %v3523_v38  ;;  %v1997_v54 = vand.u32 31, %v1995_v57  ;;  %v5281_v63 = vadd.f32 %v3851_v2, %v594_v11  ;;  %v1996_v16 = vshrl.u32 %v1995_v57, 5 }
 0x2a0   :  { %v1770_v43 = vxor.u32 2147483648, %v3525_v55  ;;  %v2470_v26 = vor.u32 %v2469_v23, %v2468_v59  ;;  %v2473_v41 = vshll.u32 %v2472_v31, 23  ;;  %v1943_v58 = vshll.u32 %v5265_v9, 30 }
 0x2a1   :  { %v1774_v10 = vsel %vm1772_vm1, %v1773_v60, %v3525_v55  ;;  %v1998_v50 = vsub.s32 32, %v1997_v54  ;;  %v2000_v12 = vshll.u32 %v5781_v17, %v1997_v54  ;;  %v2003_v53 = vshll.u32 %v5788_v24, %v1997_v54 }
 0x2a2   :  { %v1771_v6 = vsel %vm1769_vm2, %v3523_v38, %v1770_v43  ;;  %v2474_v14 = vor.u32 4788187, %v2473_v41  ;;  %v2477_v40 = vcvt.s32.f32 %v2470_v26  ;;  %v5287_v46 = vsub.s32 %v1940_v28, %v1943_v58 }
 0x2a3   :  { %v1775_v37 = vsel %vm1768_vm11, %v1771_v6, %v1774_v10  ;;  %v2001_v36 = vshrl.u32 %v5788_v24, %v1998_v50  ;;  %v2004_v32 = vshrl.u32 %v5793_v62, %v1998_v50  ;;  %v2007_v29 = vshrl.u32 %v5789_v20, %v1998_v50 }
 0x2a4   :  { %v1776_v39 = vsel %vm1766_vm12, nan, %v1775_v37  ;;  %v2475_v44 = vand.u32 2147483647, %v2474_v14  ;;  %v2006_v18 = vshll.u32 %v5793_v62, %v1997_v54  ;;  %v595_v27 = vadd.f32 %v501_v13, %v3831_v52 }
 0x2a5   :  { %3126 = vst [vmem:[#allocation2 + $0x50] sm:$0xff] %v1776_v39  ;;  %v1946_v49 = vsub.s32 0, %v5287_v46  ;;  %v2002_v51 = vor.u32 %v2001_v36, %v2000_v12  ;;  %v2005_v7 = vor.u32 %v2004_v32, %v2003_v53  ;;  %v2009_v8 = vshll.u32 %v5789_v20, %v1997_v54 }
 0x2a6   :  { %v2478_v48 = vmul.f32 %v2477_v40, %v2475_v44  ;;  %v2010_v22 = vshrl.u32 %v3589_v0, %v1998_v50  ;;  %v2012_v28 = vshll.u32 %v3589_v0, %v1997_v54  ;;  %v2013_v35 = vshrl.u32 %v3590_v42, %v1998_v50 }
 0x2a7   :  { %v3238_v38 = vmin.u32 %v1946_v49, %v5287_v46  ;;  %v2008_v59 = vor.u32 %v2007_v29, %v2006_v18  ;;  %v2031_v23 = vshll.u32 %v1991_v45, 8  ;;  %v2192_v31 = vand.u32 2139095040, %v5281_v63 }
 0x2a8   :  { %v2479_v3 = vxor.u32 2147483648, %v2478_v48  ;;  %v1999_v57 = vshrl.u32 %v5781_v17, %v1998_v50  ;;  %v2011_v55 = vor.u32 %v2010_v22, %v2009_v8  ;;  %v2014_v60 = vor.u32 %v2013_v35, %v2012_v28 }
 0x2a9   :  { %v1948_v54 = vclz %v3238_v38  ;;  %vm2015_vm4 = vcmp.lt.s32.totalorder %v1996_v16, 1  ;;  %vm2016_vm5 = vcmp.lt.s32.totalorder %v1996_v16, 2  ;;  %vm2017_vm6 = vcmp.lt.s32.totalorder %v1996_v16, 3 }
 0x2aa   :  { %v2480_v52 = vsel %vm2397_vm13, %v2479_v3, %v2478_v48  ;;  %vm2018_vm7 = vcmp.lt.s32.totalorder %v1996_v16, 4  ;;  %v2023_v11 = vsel %vm2015_vm4, %v2002_v51, %v2005_v7  ;;  %v2019_v10 = vsel %vm2015_vm4, %v1999_v57, %v2002_v51 }
 0x2ab   :  { %v2483_v33 = vsel %vm5269_vm3, %v5040_v30, %v2480_v52  ;;  %v3239_v43 = vadd.s32 4294967294, %v1948_v54  ;;  %v2020_v26 = vsel %vm2018_vm7, %v2008_v59, 2102212464  ;;  %v2024_v41 = vsel %vm2018_vm7, %v2011_v55, 920167782 }
 0x2ac   :  { %3526 = vcosq.f32 %v2483_v33  ;;  %v2025_v6 = vsel %vm2017_vm6, %v2008_v59, %v2024_v41  ;;  %v2027_v50 = vsel %vm2015_vm4, %v2005_v7, %v2008_v59  ;;  %v2028_v14 = vsel %vm2018_vm7, %v2014_v60, 1326507024 }
 0x2ad   :  { %3528 = vsinq.f32 %v2483_v33  ;;  %vm3240_vm8 = vcmp.lt.s32.totalorder %v3239_v43, 0  ;;  %v2021_v45 = vsel %vm2017_vm6, %v2005_v7, %v2020_v26  ;;  %v2026_v37 = vsel %vm2016_vm5, %v2023_v11, %v2025_v6 }
 0x2ae   :  { %v2029_v40 = vsel %vm2017_vm6, %v2011_v55, %v2028_v14  ;;  %v1951_v58 = vsel %vm3240_vm8, 0, %v3239_v43  ;;  %v5309_v39 = vmul.u32.u64.low %v2031_v23, %v2026_v37  ;;  %v5310_v44 = vmul.u32.u64.high %v2031_v23, %v2026_v37, %v5309_v39 }
 0x2af   :  { %v2030_v13 = vsel %vm2016_vm5, %v2027_v50, %v2029_v40  ;;  %v1936_v36 = vadd.s32 %v5234_v1, %v5248_v25  ;;  %v1952_v32 = vsub.s32 32, %v1951_v58  ;;  %v1956_v12 = vsub.s32 4294967266, %v1951_v58 }
 0x2b0   :  { %v5316_v53 = vadd.f32 %v3862_v15, %v595_v27  ;;  %v2484_v29 = vsel %vm5269_vm3, 0, %v5276_v47  ;;  %v5321_v48 = vmul.u32.u64.low %v2031_v23, %v2030_v13  ;;  %v5322_v18 = vmul.u32.u64.high %v2031_v23, %v2030_v13, %v5321_v48 }
 0x2b1   :  { %v2193_v49 = vshrl.u32 %v2192_v31, 23  ;;  %v1953_v51 = vshll.u32 %v5287_v46, %v1951_v58  ;;  %v1954_v7 = vshrl.u32 %v1936_v36, %v1952_v32  ;;  %v1957_v8 = vadd.s32 127, %v1956_v12 }
 0x2b2   :  { %v2022_v3 = vsel %vm2016_vm5, %v2019_v10, %v2021_v45  ;;  %v1966_v1 = vsub.s32 4, %v5265_v9  ;;  %v2041_v25 = vadd.s32 1, %v5310_v44  ;;  %v2189_v27 = vand.u32 2147483647, %v5281_v63 }
 0x2b3   :  { %v3249_v22 = vadd.s32 4294967169, %v2193_v49  ;;  %v1955_v28 = vor.u32 %v1954_v7, %v1953_v51  ;;  %v1958_v34 = vshll.u32 %v1957_v8, 23  ;;  %v2295_v47 = vand.u32 2139095040, %v5316_v53 }
 0x2b4   :  { %vm2487_vm9 = vweird.f32 %v5040_v30  ;;  %v2488_v35 = vand.u32 3, %v2484_v29  ;;  %v2038_v38 = vmul.u32 %v2031_v23, %v2022_v3  ;;  %vm2040_vm10 = vc.u32 %v5322_v18, %v5309_v39 }
 0x2b5   :  { %v2199_v46 = vadd.s32 1, %v3249_v22  ;;  %vm5335_vm11 = vcmp.le.f32.partialorder %v1880_v21, 0.7853982  ;;  %vm1882_vm13 = vcmp.lt.s32.totalorder %v5092_v19, 0  ;;  %v1959_v59 = vor.u32 4788187, %v1958_v34 }
 0x2b6   :  { %v2042_v31 = vsel %vm2040_vm10, %v2041_v25, %v5310_v44  ;;  %v1967_v52 = vsel %vm1882_vm13, %v1966_v1, %v5265_v9  ;;  %v2196_v57 = vand.u32 8388607, %v2189_v27  ;;  %v1962_v21 = vcvt.s32.f32 %v1955_v28 }
 0x2b7   :  { %v2043_v23 = vadd.s32 %v2042_v31, %v2038_v38  ;;  %vm2200_vm15 = vcmp.gt.s32.totalorder %v2199_v46, 0  ;;  %v1960_v60 = vand.u32 2147483647, %v1959_v59  ;;  %v2296_v54 = vshrl.u32 %v2295_v47, 23 }
 0x2b8   :  { %v2201_v33 = vsel %vm2200_vm15, %v2199_v46, 0  ;;  %vm2489_vm12 = vcmp.lt.s32.totalorder %v2488_v35, 2  ;;  %vm2490_vm14 = vcmp.eq.s32.totalorder %v2488_v35, 0  ;;  %vm2493_vm0 = vcmp.eq.s32.totalorder %v2488_v35, 2 }
 0x2b9   :  { %v3527_v55 = vpop.eup %3526  ;;  %v2044_v26 = vadd.s32 536870912, %v2043_v23  ;;  %v2203_v41 = vand.u32 31, %v2201_v33  ;;  %v1963_v6 = vmul.f32 %v1962_v21, %v1960_v60  ;;  %v1969_v50 = vsel %vm5335_vm11, 0, %v1967_v52 }
 0x2ba   :  { %v3529_v11 = vpop.eup %3528  ;;  %v2494_v43 = vxor.u32 2147483648, %v3527_v55  ;;  %v2197_v58 = vor.u32 8388608, %v2196_v57  ;;  %v3253_v13 = vadd.s32 4294967169, %v2296_v54  ;;  %v5367_v30 = vand.u32 3, %v1969_v50 }
 0x2bb   :  { %v2491_v10 = vxor.u32 2147483648, %v3529_v11  ;;  %v5348_v14 = vshrl.u32 %v2044_v26, 30  ;;  %v2204_v45 = vsub.s32 32, %v2203_v41  ;;  %v1964_v40 = vxor.u32 2147483648, %v1963_v6 }
 0x2bc   :  { %v2495_v9 = vsel %vm2493_vm0, %v2494_v43, %v3529_v11  ;;  %v2206_v32 = vshll.u32 %v5781_v17, %v2203_v41  ;;  %v2209_v12 = vshll.u32 %v5788_v24, %v2203_v41  ;;  %v2212_v3 = vshll.u32 %v5793_v62, %v2203_v41 }
 0x2bd   :  { %v2492_v37 = vsel %vm2490_vm14, %v3527_v55, %v2491_v10  ;;  %v2046_v36 = vshll.u32 %v5348_v14, 30  ;;  %v1965_v48 = vsel %vm1882_vm13, %v1964_v40, %v1963_v6  ;;  %v2207_v49 = vshrl.u32 %v5788_v24, %v2204_v45 }
 0x2be   :  { %v2496_v44 = vsel %vm2489_vm12, %v2492_v37, %v2495_v9  ;;  %v2210_v51 = vshrl.u32 %v5793_v62, %v2204_v45  ;;  %v1968_v7 = vsel %vm5335_vm11, %v5092_v19, %v1965_v48  ;;  %v2213_v1 = vshrl.u32 %v5789_v20, %v2204_v45 }
 0x2bf   :  { %v2497_v29 = vsel %vm2487_vm9, nan, %v2496_v44  ;;  %v5363_v8 = vsub.s32 %v2043_v23, %v2046_v36  ;;  %3530 = vcosq.f32 %v1968_v7  ;;  %v2202_v25 = vshrl.u32 %v2201_v33, 5 }
 0x2c0   :  { %3133 = vst [vmem:[#allocation2 + $0x88] sm:$0xff] %v2497_v29  ;;  %v2208_v22 = vor.u32 %v2207_v49, %v2206_v32  ;;  %3532 = vsinq.f32 %v1968_v7  ;;  %v2211_v34 = vor.u32 %v2210_v51, %v2209_v12  ;;  %v2214_v47 = vor.u32 %v2213_v1, %v2212_v3 }
 0x2c1   :  { %v2049_v28 = vsub.s32 0, %v5363_v8  ;;  %v2215_v35 = vshll.u32 %v5789_v20, %v2203_v41  ;;  %v2216_v38 = vshrl.u32 %v3589_v0, %v2204_v45  ;;  %v2218_v46 = vshll.u32 %v3589_v0, %v2203_v41 }
 0x2c2   :  { %v2219_v16 = vshrl.u32 %v3590_v42, %v2204_v45  ;;  %v2237_v31 = vshll.u32 %v2197_v58, 8  ;;  %v2292_v52 = vand.u32 2147483647, %v5316_v53  ;;  %v2302_v23 = vadd.s32 1, %v3253_v13 }
 0x2c3   :  { %v3242_v59 = vmin.u32 %v2049_v28, %v5363_v8  ;;  %v2205_v57 = vshrl.u32 %v5781_v17, %v2204_v45  ;;  %v2217_v55 = vor.u32 %v2216_v38, %v2215_v35  ;;  %vm2221_vm1 = vcmp.lt.s32.totalorder %v2202_v25, 1 }
 0x2c4   :  { %v2220_v60 = vor.u32 %v2219_v16, %v2218_v46  ;;  %vm2222_vm2 = vcmp.lt.s32.totalorder %v2202_v25, 2  ;;  %vm2223_vm3 = vcmp.lt.s32.totalorder %v2202_v25, 3  ;;  %vm2224_vm4 = vcmp.lt.s32.totalorder %v2202_v25, 4 }
 0x2c5   :  { %v2051_v21 = vclz %v3242_v59  ;;  %v2226_v33 = vsel %vm2224_vm4, %v2214_v47, 2102212464  ;;  %v2229_v54 = vsel %vm2221_vm1, %v2208_v22, %v2211_v34  ;;  %v2230_v11 = vsel %vm2224_vm4, %v2217_v55, 920167782 }
 0x2c6   :  { %v2233_v43 = vsel %vm2221_vm1, %v2211_v34, %v2214_v47  ;;  %v2225_v41 = vsel %vm2221_vm1, %v2205_v57, %v2208_v22  ;;  %v2231_v10 = vsel %vm2223_vm3, %v2214_v47, %v2230_v11  ;;  %v2234_v6 = vsel %vm2224_vm4, %v2220_v60, 1326507024 }
 0x2c7   :  { %v3243_v26 = vadd.s32 4294967294, %v2051_v21  ;;  %v2227_v9 = vsel %vm2223_vm3, %v2211_v34, %v2226_v33  ;;  %v2232_v50 = vsel %vm2222_vm2, %v2229_v54, %v2231_v10  ;;  %v2235_v37 = vsel %vm2223_vm3, %v2217_v55, %v2234_v6  ;;  %v505_v34 = vpop.f32.mrf.mxu0 }
 0x2c8   :  { %vm2303_vm5 = vcmp.gt.s32.totalorder %v2302_v23, 0  ;;  %vm1985_vm6 = vcmp.lt.s32.totalorder %v5096_v4, 0  ;;  %v2236_v45 = vsel %vm2222_vm2, %v2233_v43, %v2235_v37  ;;  %vm1972_vm8 = vweird.f32 %v5092_v19 }
 0x2c9   :  { %vm3244_vm7 = vcmp.lt.s32.totalorder %v3243_v26, 0  ;;  %v5380_v40 = vmul.u32.u64.low %v2237_v31, %v2232_v50  ;;  %v5381_v58 = vmul.u32.u64.high %v2237_v31, %v2232_v50, %v5380_v40  ;;  %v2039_v13 = vadd.s32 %v5309_v39, %v5322_v18 }
 0x2ca   :  { %v2054_v44 = vsel %vm3244_vm7, 0, %v3243_v26  ;;  %v5387_v36 = vmul.u32.u64.low %v2237_v31, %v2236_v45  ;;  %v5388_v32 = vmul.u32.u64.high %v2237_v31, %v2236_v45, %v5387_v36  ;;  %v2228_v48 = vsel %vm2222_vm2, %v2225_v41, %v2227_v9 }
 0x2cb   :  { %v2055_v12 = vsub.s32 32, %v2054_v44  ;;  %v2059_v29 = vsub.s32 4294967266, %v2054_v44  ;;  %v2304_v49 = vsel %vm2303_vm5, %v2302_v23, 0  ;;  %vm1978_vm9 = vcmp.eq.s32.totalorder %v5367_v30, 2 }
 0x2cc   :  { %v2069_v51 = vsub.s32 4, %v5348_v14  ;;  %v2299_v7 = vand.u32 8388607, %v2292_v52  ;;  %v2306_v3 = vand.u32 31, %v2304_v49  ;;  %v3531_v1 = vpop.eup %3530  ;;  %v2056_v39 = vshll.u32 %v5363_v8, %v2054_v44 }
 0x2cd   :  { %v2057_v18 = vshrl.u32 %v2039_v13, %v2055_v12  ;;  %v2060_v22 = vadd.s32 127, %v2059_v29  ;;  %v2247_v28 = vadd.s32 1, %v5381_v58  ;;  %v3533_v47 = vpop.eup %3532  ;;  %v1979_v25 = vxor.u32 2147483648, %v3531_v1 }
 0x2ce   :  { %v2244_v35 = vmul.u32 %v2237_v31, %v2228_v48  ;;  %vm2246_vm10 = vc.u32 %v5388_v32, %v5380_v40  ;;  %v2307_v38 = vsub.s32 32, %v2306_v3  ;;  %v1976_v46 = vxor.u32 2147483648, %v3533_v47 }
 0x2cf   :  { %v2058_v16 = vor.u32 %v2057_v18, %v2056_v39  ;;  %v2061_v59 = vshll.u32 %v2060_v22, 23  ;;  %v2248_v23 = vsel %vm2246_vm10, %v2247_v28, %v5381_v58  ;;  %vm1975_vm11 = vcmp.eq.s32.totalorder %v5367_v30, 0 }
 0x2d0   :  { %v1980_v8 = vsel %vm1978_vm9, %v1979_v25, %v3533_v47  ;;  %v2249_v57 = vadd.s32 %v2248_v23, %v2244_v35  ;;  %v597_v55 = vadd.f32 %v505_v34, %v3835_v56  ;;  %vm1974_vm13 = vcmp.lt.s32.totalorder %v5367_v30, 2 }
 0x2d1   :  { %v1977_v31 = vsel %vm1975_vm11, %v3531_v1, %v1976_v46  ;;  %v2062_v60 = vor.u32 4788187, %v2061_v59  ;;  %v2300_v21 = vor.u32 8388608, %v2299_v7  ;;  %v5408_v54 = vsel %vm1985_vm6, %v2069_v51, %v5348_v14 }
 0x2d2   :  { %v1981_v33 = vsel %vm1974_vm13, %v1977_v31, %v1980_v8  ;;  %v2250_v11 = vadd.s32 536870912, %v2249_v57  ;;  %v2310_v43 = vshrl.u32 %v5788_v24, %v2307_v38  ;;  %v2065_v10 = vcvt.s32.f32 %v2058_v16 }
 0x2d3   :  { %v1982_v26 = vsel %vm1972_vm8, nan, %v1981_v33  ;;  %v2063_v41 = vand.u32 2147483647, %v2062_v60  ;;  %v2313_v56 = vshrl.u32 %v5793_v62, %v2307_v38  ;;  %v2309_v6 = vshll.u32 %v5781_v17, %v2306_v3 }
 0x2d4   :  { %3128 = vst [vmem:[#allocation2 + $0x60] sm:$0xff] %v1982_v26  ;;  %v5414_v30 = vshrl.u32 %v2250_v11, 30  ;;  %v2312_v9 = vshll.u32 %v5788_v24, %v2306_v3  ;;  %v2316_v14 = vshrl.u32 %v5789_v20, %v2307_v38  ;;  %v2318_v37 = vshll.u32 %v5789_v20, %v2306_v3 }
 0x2d5   :  { %v2066_v50 = vmul.f32 %v2065_v10, %v2063_v41  ;;  %v2319_v45 = vshrl.u32 %v3589_v0, %v2307_v38  ;;  %v2322_v19 = vshrl.u32 %v3590_v42, %v2307_v38  ;;  %v2305_v13 = vshrl.u32 %v2304_v49, 5 }
 0x2d6   :  { %v2252_v58 = vshll.u32 %v5414_v30, 30  ;;  %v2311_v44 = vor.u32 %v2310_v43, %v2309_v6  ;;  %v2315_v36 = vshll.u32 %v5793_v62, %v2306_v3  ;;  %v2314_v29 = vor.u32 %v2313_v56, %v2312_v9 }
 0x2d7   :  { %v2067_v12 = vxor.u32 2147483648, %v2066_v50  ;;  %v2320_v48 = vor.u32 %v2319_v45, %v2318_v37  ;;  %v2321_v51 = vshll.u32 %v3589_v0, %v2306_v3  ;;  %vm5427_vm15 = vcmp.le.f32.partialorder %v1983_v5, 0.7853982 }
 0x2d8   :  { %v5431_v1 = vsub.s32 %v2249_v57, %v2252_v58  ;;  %v2317_v39 = vor.u32 %v2316_v14, %v2315_v36  ;;  %v5434_v18 = vadd.f32 %v3851_v2, %v597_v55  ;;  %v2072_v22 = vsel %vm5427_vm15, 0, %v5408_v54 }
 0x2d9   :  { %v2068_v49 = vsel %vm1985_vm6, %v2067_v12, %v2066_v50  ;;  %v2323_v3 = vor.u32 %v2322_v19, %v2321_v51  ;;  %v2340_v28 = vshll.u32 %v2300_v21, 8  ;;  %vm2324_vm12 = vcmp.lt.s32.totalorder %v2305_v13, 1  ;;  %v507_v21 = vpop.f32.mrf.mxu0 }
 0x2da   :  { %v2071_v5 = vsel %vm5427_vm15, %v5096_v4, %v2068_v49  ;;  %v2255_v34 = vsub.s32 0, %v5431_v1  ;;  %vm2327_vm14 = vcmp.lt.s32.totalorder %v2305_v13, 4  ;;  %v2308_v47 = vshrl.u32 %v5781_v17, %v2307_v38 }
 0x2db   :  { %3534 = vcosq.f32 %v2071_v5  ;;  %v2332_v25 = vsel %vm2324_vm12, %v2311_v44, %v2314_v29  ;;  %v2333_v35 = vsel %vm2327_vm14, %v2320_v48, 920167782  ;;  %vm2326_vm0 = vcmp.lt.s32.totalorder %v2305_v13, 3 }
 0x2dc   :  { %3536 = vsinq.f32 %v2071_v5  ;;  %v3250_v46 = vmin.u32 %v2255_v34, %v5431_v1  ;;  %v2329_v16 = vsel %vm2327_vm14, %v2317_v39, 2102212464  ;;  %vm2325_vm1 = vcmp.lt.s32.totalorder %v2305_v13, 2 }
 0x2dd   :  { %v2334_v59 = vsel %vm2326_vm0, %v2317_v39, %v2333_v35  ;;  %v2336_v23 = vsel %vm2324_vm12, %v2314_v29, %v2317_v39  ;;  %v2337_v8 = vsel %vm2327_vm14, %v2323_v3, 1326507024  ;;  %v2328_v55 = vsel %vm2324_vm12, %v2308_v47, %v2311_v44 }
 0x2de   :  { %v2257_v57 = vclz %v3250_v46  ;;  %v2335_v31 = vsel %vm2325_vm1, %v2332_v25, %v2334_v59  ;;  %v2338_v60 = vsel %vm2326_vm0, %v2320_v48, %v2337_v8  ;;  %v2330_v33 = vsel %vm2326_vm0, %v2314_v29, %v2329_v16  ;;  %v509_v46 = vpop.f32.mrf.mxu0 }
 0x2df   :  { %v2339_v38 = vsel %vm2325_vm1, %v2336_v23, %v2338_v60  ;;  %v5449_v54 = vmul.u32.u64.low %v2340_v28, %v2335_v31  ;;  %v5450_v11 = vmul.u32.u64.high %v2340_v28, %v2335_v31, %v5449_v54  ;;  %v2501_v10 = vand.u32 2139095040, %v5434_v18 }
 0x2e0   :  { %v3251_v43 = vadd.s32 4294967294, %v2257_v57  ;;  %v5453_v26 = vmul.u32.u64.low %v2340_v28, %v2339_v38  ;;  %v5454_v41 = vmul.u32.u64.high %v2340_v28, %v2339_v38, %v5453_v26  ;;  %v598_v56 = vadd.f32 %v507_v21, %v3839_v61  ;;  %v5828_v38 = vld [vmem:[#allocation5_spill] sm:$0xff] }
 0x2e1   :  { %vm2191_vm2 = vcmp.lt.s32.totalorder %v5281_v63, 0  ;;  %v2331_v6 = vsel %vm2325_vm1, %v2328_v55, %v2330_v33  ;;  %v2502_v9 = vshrl.u32 %v2501_v10, 23  ;;  %v2076_v14 = vand.u32 3, %v2072_v22 }
 0x2e2   :  { %vm3252_vm3 = vcmp.lt.s32.totalorder %v3251_v43, 0  ;;  %vm5462_vm4 = vcmp.le.f32.partialorder %v2189_v27, 0.7853982  ;;  %v2350_v45 = vadd.s32 1, %v5450_v11  ;;  %v2245_v19 = vadd.s32 %v5380_v40, %v5388_v32 }
 0x2e3   :  { %v2260_v37 = vsel %vm3252_vm3, 0, %v3251_v43  ;;  %v2275_v44 = vsub.s32 4, %v5414_v30  ;;  %vm2075_vm5 = vweird.f32 %v5096_v4  ;;  %v2347_v13 = vmul.u32 %v2340_v28, %v2331_v6 }
 0x2e4   :  { %v2261_v61 = vsub.s32 32, %v2260_v37  ;;  %v2265_v58 = vsub.s32 4294967266, %v2260_v37  ;;  %vm2349_vm6 = vc.u32 %v5454_v41, %v5449_v54  ;;  %v2498_v27 = vand.u32 2147483647, %v5434_v18 }
 0x2e5   :  { %v3261_v36 = vadd.s32 4294967169, %v2502_v9  ;;  %v2262_v12 = vshll.u32 %v5431_v1, %v2260_v37  ;;  %v2351_v51 = vsel %vm2349_vm6, %v2350_v45, %v5450_v11  ;;  %vm2077_vm7 = vcmp.lt.s32.totalorder %v2076_v14, 2 }
 0x2e6   :  { %v2263_v29 = vshrl.u32 %v2245_v19, %v2261_v61  ;;  %v2266_v48 = vadd.s32 127, %v2265_v58  ;;  %vm2078_vm8 = vcmp.eq.s32.totalorder %v2076_v14, 0  ;;  %v2352_v40 = vadd.s32 %v2351_v51, %v2347_v13 }
 0x2e7   :  { %v2508_v32 = vadd.s32 1, %v3261_v36  ;;  %v2276_v22 = vsel %vm2191_vm2, %v2275_v44, %v5414_v30  ;;  %v5480_v3 = vadd.f32 %v3862_v15, %v598_v56  ;;  %vm2081_vm9 = vcmp.eq.s32.totalorder %v2076_v14, 2 }
 0x2e8   :  { %v3535_v7 = vpop.eup %3534  ;;  %v2264_v39 = vor.u32 %v2263_v29, %v2262_v12  ;;  %v2267_v49 = vshll.u32 %v2266_v48, 23  ;;  %v2353_v5 = vadd.s32 536870912, %v2352_v40  ;;  %v2505_v25 = vand.u32 8388607, %v2498_v27 }
 0x2e9   :  { %v3537_v28 = vpop.eup %3536  ;;  %v2082_v1 = vxor.u32 2147483648, %v3535_v7  ;;  %vm2509_vm10 = vcmp.gt.s32.totalorder %v2508_v32, 0  ;;  %v2278_v59 = vsel %vm5462_vm4, 0, %v2276_v22  ;;  %v2604_v31 = vand.u32 2139095040, %v5480_v3 }
 0x2ea   :  { %v2079_v34 = vxor.u32 2147483648, %v3537_v28  ;;  %v2268_v47 = vor.u32 4788187, %v2267_v49  ;;  %v2510_v35 = vsel %vm2509_vm10, %v2508_v32, 0  ;;  %v5486_v30 = vshrl.u32 %v2353_v5, 30 }
 0x2eb   :  { %v2083_v16 = vsel %vm2081_vm9, %v2082_v1, %v3537_v28  ;;  %v2512_v23 = vand.u32 31, %v2510_v35  ;;  %v2271_v55 = vcvt.s32.f32 %v2264_v39  ;;  %v5493_v11 = vadd.f32 %v509_v46, %v5828_v38 }
 0x2ec   :  { %v2080_v8 = vsel %vm2078_vm8, %v3535_v7, %v2079_v34  ;;  %v2269_v57 = vand.u32 2147483647, %v2268_v47  ;;  %v2355_v21 = vshll.u32 %v5486_v30, 30  ;;  %v5497_v10 = vand.u32 3, %v2278_v59 }
 0x2ed   :  { %v2084_v60 = vsel %vm2077_vm7, %v2080_v8, %v2083_v16  ;;  %v2513_v33 = vsub.s32 32, %v2512_v23  ;;  %v2506_v56 = vor.u32 8388608, %v2505_v25  ;;  %v2348_v6 = vadd.s32 %v5449_v54, %v5454_v41 }
 0x2ee   :  { %v2085_v43 = vsel %vm2075_vm5, nan, %v2084_v60  ;;  %v2272_v26 = vmul.f32 %v2271_v55, %v2269_v57  ;;  %v5501_v9 = vsub.s32 %v2352_v40, %v2355_v21  ;;  %v2601_v37 = vand.u32 2147483647, %v5480_v3 }
 0x2ef   :  { %3129 = vst [vmem:[#allocation2 + $0x68] sm:$0xff] %v2085_v43  ;;  %v2516_v14 = vshrl.u32 %v5788_v24, %v2513_v33  ;;  %v2511_v19 = vshrl.u32 %v2510_v35, 5  ;;  %v2519_v61 = vshrl.u32 %v5793_v62, %v2513_v33  ;;  %v2605_v4 = vshrl.u32 %v2604_v31, 23 }
 0x2f0   :  { %v2273_v45 = vxor.u32 2147483648, %v2272_v26  ;;  %v2358_v58 = vsub.s32 0, %v5501_v9  ;;  %v2515_v44 = vshll.u32 %v5781_v17, %v2512_v23  ;;  %v2518_v13 = vshll.u32 %v5788_v24, %v2512_v23 }
 0x2f1   :  { %v2522_v36 = vshrl.u32 %v5789_v20, %v2513_v33  ;;  %v2521_v41 = vshll.u32 %v5793_v62, %v2512_v23  ;;  %v2524_v12 = vshll.u32 %v5789_v20, %v2512_v23  ;;  %v2525_v29 = vshrl.u32 %v3589_v0, %v2513_v33 }
 0x2f2   :  { %v2274_v54 = vsel %vm2191_vm2, %v2273_v45, %v2272_v26  ;;  %v3254_v51 = vmin.u32 %v2358_v58, %v5501_v9  ;;  %v2517_v40 = vor.u32 %v2516_v14, %v2515_v44  ;;  %v5519_v32 = vshll.u32 %v2506_v56, 8 }
 0x2f3   :  { %v2277_v48 = vsel %vm5462_vm4, %v5281_v63, %v2274_v54  ;;  %v2520_v7 = vor.u32 %v2519_v61, %v2518_v13  ;;  %v2523_v39 = vor.u32 %v2522_v36, %v2521_v41  ;;  %v2526_v49 = vor.u32 %v2525_v29, %v2524_v12 }
 0x2f4   :  { %3538 = vcosq.f32 %v2277_v48  ;;  %v2360_v22 = vclz %v3254_v51  ;;  %v2527_v28 = vshll.u32 %v3589_v0, %v2512_v23  ;;  %v2528_v1 = vshrl.u32 %v3590_v42, %v2513_v33 }
 0x2f5   :  { %3540 = vsinq.f32 %v2277_v48  ;;  %v2378_v5 = vsub.s32 4, %v5486_v30  ;;  %v2514_v50 = vshrl.u32 %v5781_v17, %v2513_v33  ;;  %vm2530_vm11 = vcmp.lt.s32.totalorder %v2511_v19, 1 }
 0x2f6   :  { %v3265_v34 = vadd.s32 4294967169, %v2605_v4  ;;  %v3255_v47 = vadd.s32 4294967294, %v2360_v22  ;;  %v2529_v25 = vor.u32 %v2528_v1, %v2527_v28  ;;  %vm2532_vm13 = vcmp.lt.s32.totalorder %v2511_v19, 3 }
 0x2f7   :  { %vm2533_vm15 = vcmp.lt.s32.totalorder %v2511_v19, 4  ;;  %vm2294_vm12 = vcmp.lt.s32.totalorder %v5316_v53, 0  ;;  %v2538_v46 = vsel %vm2530_vm11, %v2517_v40, %v2520_v7  ;;  %v2542_v59 = vsel %vm2530_vm11, %v2520_v7, %v2523_v39 }
 0x2f8   :  { %v2535_v35 = vsel %vm2533_vm15, %v2523_v39, 2102212464  ;;  %v2539_v16 = vsel %vm2533_vm15, %v2526_v49, 920167782  ;;  %vm3256_vm14 = vcmp.lt.s32.totalorder %v3255_v47, 0  ;;  %vm2531_vm0 = vcmp.lt.s32.totalorder %v2511_v19, 2 }
 0x2f9   :  { %v2540_v23 = vsel %vm2532_vm13, %v2523_v39, %v2539_v16  ;;  %v2543_v8 = vsel %vm2533_vm15, %v2529_v25, 1326507024  ;;  %v2363_v57 = vsel %vm3256_vm14, 0, %v3255_v47  ;;  %v2534_v55 = vsel %vm2530_vm11, %v2514_v50, %v2517_v40 }
 0x2fa   :  { %v2541_v31 = vsel %vm2531_vm0, %v2538_v46, %v2540_v23  ;;  %v2544_v60 = vsel %vm2532_vm13, %v2526_v49, %v2543_v8  ;;  %v2364_v21 = vsub.s32 32, %v2363_v57  ;;  %v2368_v33 = vsub.s32 4294967266, %v2363_v57 }
 0x2fb   :  { %v2536_v38 = vsel %vm2532_vm13, %v2520_v7, %v2535_v35  ;;  %v2545_v43 = vsel %vm2531_vm0, %v2542_v59, %v2544_v60  ;;  %v5539_v14 = vmul.u32.u64.low %v5519_v32, %v2541_v31  ;;  %v5540_v45 = vmul.u32.u64.high %v5519_v32, %v2541_v31, %v5539_v14 }
 0x2fc   :  { %v5535_v26 = vmul.u32.u64.low %v5519_v32, %v2545_v43  ;;  %v5536_v56 = vmul.u32.u64.high %v5519_v32, %v2545_v43, %v5535_v26  ;;  %v2365_v61 = vshll.u32 %v5501_v9, %v2363_v57  ;;  %v2366_v4 = vshrl.u32 %v2348_v6, %v2364_v21 }
 0x2fd   :  { %v2369_v58 = vadd.s32 127, %v2368_v33  ;;  %v2611_v44 = vadd.s32 1, %v3265_v34  ;;  %vm2281_vm1 = vweird.f32 %v5281_v63  ;;  %vm2283_vm2 = vcmp.lt.s32.totalorder %v5497_v10, 2 }
 0x2fe   :  { %vm2284_vm3 = vcmp.eq.s32.totalorder %v5497_v10, 0  ;;  %vm5549_vm4 = vcmp.le.f32.partialorder %v2292_v52, 0.7853982  ;;  %v2537_v36 = vsel %vm2531_vm0, %v2534_v55, %v2536_v38  ;;  %v2367_v54 = vor.u32 %v2366_v4, %v2365_v61 }
 0x2ff   :  { %v2370_v41 = vshll.u32 %v2369_v58, 23  ;;  %vm2612_vm5 = vcmp.gt.s32.totalorder %v2611_v44, 0  ;;  %v5556_v6 = vadd.f32 %v3851_v2, %v5493_v11  ;;  %vm2555_vm6 = vc.u32 %v5536_v56, %v5539_v14 }
 0x300   :  { %v2556_v9 = vadd.s32 1, %v5540_v45  ;;  %v2608_v52 = vand.u32 8388607, %v2601_v37  ;;  %v2613_v12 = vsel %vm2612_vm5, %v2611_v44, 0  ;;  %v2379_v19 = vsel %vm2294_vm12, %v2378_v5, %v5486_v30 }
 0x301   :  { %v3539_v29 = vpop.eup %3538  ;;  %v2371_v48 = vor.u32 4788187, %v2370_v41  ;;  %v2553_v51 = vmul.u32 %v5519_v32, %v2537_v36  ;;  %v2615_v40 = vand.u32 31, %v2613_v12  ;;  %vm2287_vm7 = vcmp.eq.s32.totalorder %v5497_v10, 2 }
 0x302   :  { %v3541_v2 = vpop.eup %3540  ;;  %v2288_v11 = vxor.u32 2147483648, %v3539_v29  ;;  %v2374_v7 = vcvt.s32.f32 %v2367_v54  ;;  %v2557_v39 = vsel %vm2555_vm6, %v2556_v9, %v5540_v45  ;;  %v2381_v34 = vsel %vm5549_vm4, 0, %v2379_v19 }
 0x303   :  { %v2285_v49 = vxor.u32 2147483648, %v3541_v2  ;;  %v2372_v22 = vand.u32 2147483647, %v2371_v48  ;;  %v2558_v28 = vadd.s32 %v2557_v39, %v2553_v51  ;;  %v2616_v1 = vsub.s32 32, %v2615_v40 }
 0x304   :  { %v2289_v50 = vsel %vm2287_vm7, %v2288_v11, %v3541_v2  ;;  %v2609_v47 = vor.u32 8388608, %v2608_v52  ;;  %v2810_v30 = vand.u32 2139095040, %v5556_v6  ;;  %v2618_v35 = vshll.u32 %v5781_v17, %v2615_v40 }
 0x305   :  { %v2286_v32 = vsel %vm2284_vm3, %v3539_v29, %v2285_v49  ;;  %v2375_v5 = vmul.f32 %v2374_v7, %v2372_v22  ;;  %v2559_v25 = vadd.s32 536870912, %v2558_v28  ;;  %v2619_v16 = vshrl.u32 %v5788_v24, %v2616_v1 }
 0x306   :  { %v2290_v46 = vsel %vm2283_vm2, %v2286_v32, %v2289_v50  ;;  %v2621_v59 = vshll.u32 %v5788_v24, %v2615_v40  ;;  %v2622_v23 = vshrl.u32 %v5793_v62, %v2616_v1  ;;  %v2625_v31 = vshrl.u32 %v5789_v20, %v2616_v1 }
 0x307   :  { %v2291_v8 = vsel %vm2281_vm1, nan, %v2290_v46  ;;  %v2376_v57 = vxor.u32 2147483648, %v2375_v5  ;;  %v5582_v55 = vshrl.u32 %v2559_v25, 30  ;;  %v2614_v60 = vshrl.u32 %v2613_v12, 5 }
 0x308   :  { %3131 = vst [vmem:[#allocation2 + $0x78] sm:$0xff] %v2291_v8  ;;  %v2624_v21 = vshll.u32 %v5793_v62, %v2615_v40  ;;  %v2627_v10 = vshll.u32 %v5789_v20, %v2615_v40  ;;  %v2628_v33 = vshrl.u32 %v3589_v0, %v2616_v1  ;;  %v2620_v63 = vor.u32 %v2619_v16, %v2618_v35 }
 0x309   :  { %v2377_v38 = vsel %vm2294_vm12, %v2376_v57, %v2375_v5  ;;  %v2561_v43 = vshll.u32 %v5582_v55, 30  ;;  %v2623_v26 = vor.u32 %v2622_v23, %v2621_v59  ;;  %v2630_v4 = vshll.u32 %v3589_v0, %v2615_v40 }
 0x30a   :  { %v2380_v45 = vsel %vm5549_vm4, %v5316_v53, %v2377_v38  ;;  %v2629_v61 = vor.u32 %v2628_v33, %v2627_v10  ;;  %v2631_v58 = vshrl.u32 %v3590_v42, %v2616_v1  ;;  %v2626_v36 = vor.u32 %v2625_v31, %v2624_v21 }
 0x30b   :  { %3542 = vcosq.f32 %v2380_v45  ;;  %v5596_v44 = vsub.s32 %v2558_v28, %v2561_v43  ;;  %v2807_v41 = vand.u32 2147483647, %v5556_v6  ;;  %v2811_v9 = vshrl.u32 %v2810_v30, 23 }
 0x30c   :  { %3544 = vsinq.f32 %v2380_v45  ;;  %v2632_v54 = vor.u32 %v2631_v58, %v2630_v4  ;;  %v5599_v52 = vand.u32 3, %v2381_v34  ;;  %vm2633_vm8 = vcmp.lt.s32.totalorder %v2614_v60, 1 }
 0x30d   :  { %v2564_v12 = vsub.s32 0, %v5596_v44  ;;  %vm2636_vm9 = vcmp.lt.s32.totalorder %v2614_v60, 4  ;;  %v2617_v13 = vshrl.u32 %v5781_v17, %v2616_v1  ;;  %v2641_v29 = vsel %vm2633_vm8, %v2620_v63, %v2623_v26 }
 0x30e   :  { %v2642_v48 = vsel %vm2636_vm9, %v2629_v61, 920167782  ;;  %v2649_v19 = vshll.u32 %v2609_v47, 8  ;;  %vm2635_vm10 = vcmp.lt.s32.totalorder %v2614_v60, 3  ;;  %v2638_v40 = vsel %vm2636_vm9, %v2626_v36, 2102212464 }
 0x30f   :  { %v3262_v51 = vmin.u32 %v2564_v12, %v5596_v44  ;;  %v2645_v2 = vsel %vm2633_vm8, %v2623_v26, %v2626_v36  ;;  %vm2634_vm11 = vcmp.lt.s32.totalorder %v2614_v60, 2  ;;  %v2643_v11 = vsel %vm2635_vm10, %v2626_v36, %v2642_v48 }
 0x310   :  { %v2646_v7 = vsel %vm2636_vm9, %v2632_v54, 1326507024  ;;  %v3273_v39 = vadd.s32 4294967169, %v2811_v9  ;;  %v2637_v22 = vsel %vm2633_vm8, %v2617_v13, %v2620_v63  ;;  %v2644_v28 = vsel %vm2634_vm11, %v2641_v29, %v2643_v11 }
 0x311   :  { %v2566_v49 = vclz %v3262_v51  ;;  %v2647_v50 = vsel %vm2635_vm10, %v2629_v61, %v2646_v7  ;;  %v2639_v34 = vsel %vm2635_vm10, %v2623_v26, %v2638_v40  ;;  %vm2384_vm13 = vweird.f32 %v5316_v53 }
 0x312   :  { %v2648_v1 = vsel %vm2634_vm11, %v2645_v2, %v2647_v50  ;;  %v5606_v30 = vmul.u32.u64.low %v2649_v19, %v2644_v28  ;;  %v5607_v32 = vmul.u32.u64.high %v2649_v19, %v2644_v28, %v5606_v30  ;;  %v2817_v35 = vadd.s32 1, %v3273_v39  ;;  %v511_v28 = vpop.f32.mrf.mxu0 }
 0x313   :  { %v3263_v47 = vadd.s32 4294967294, %v2566_v49  ;;  %v5610_v5 = vmul.u32.u64.low %v2649_v19, %v2648_v1  ;;  %v5611_v25 = vmul.u32.u64.high %v2649_v19, %v2648_v1, %v5610_v5  ;;  %v2640_v46 = vsel %vm2634_vm11, %v2637_v22, %v2639_v34 }
 0x314   :  { %vm2818_vm12 = vcmp.gt.s32.totalorder %v2817_v35, 0  ;;  %vm2386_vm14 = vcmp.lt.s32.totalorder %v5599_v52, 2  ;;  %v2659_v59 = vadd.s32 1, %v5607_v32  ;;  %v2554_v8 = vadd.s32 %v5539_v14, %v5536_v56 }
 0x315   :  { %vm3264_vm15 = vcmp.lt.s32.totalorder %v3263_v47, 0  ;;  %v2819_v23 = vsel %vm2818_vm12, %v2817_v35, 0  ;;  %v2814_v21 = vand.u32 8388607, %v2807_v41  ;;  %v2656_v60 = vmul.u32 %v2649_v19, %v2640_v46 }
 0x316   :  { %v2569_v16 = vsel %vm3264_vm15, 0, %v3263_v47  ;;  %vm2658_vm0 = vc.u32 %v5611_v25, %v5606_v30  ;;  %v2821_v38 = vand.u32 31, %v2819_v23  ;;  %vm2390_vm1 = vcmp.eq.s32.totalorder %v5599_v52, 2 }
 0x317   :  { %v2570_v57 = vsub.s32 32, %v2569_v16  ;;  %v2574_v31 = vsub.s32 4294967266, %v2569_v16  ;;  %v2571_v33 = vshll.u32 %v5596_v44, %v2569_v16  ;;  %v2660_v61 = vsel %vm2658_vm0, %v2659_v59, %v5607_v32 }
 0x318   :  { %v3543_v10 = vpop.eup %3542  ;;  %v2661_v14 = vadd.s32 %v2660_v61, %v2656_v60  ;;  %v2822_v4 = vsub.s32 32, %v2821_v38  ;;  %vm2387_vm2 = vcmp.eq.s32.totalorder %v5599_v52, 0  ;;  %vm2500_vm3 = vcmp.lt.s32.totalorder %v5434_v18, 0 }
 0x319   :  { %v3545_v43 = vpop.eup %3544  ;;  %v2391_v63 = vxor.u32 2147483648, %v3543_v10  ;;  %v2572_v26 = vshrl.u32 %v2554_v8, %v2570_v57  ;;  %v2575_v45 = vadd.s32 127, %v2574_v31  ;;  %v2815_v12 = vor.u32 8388608, %v2814_v21 }
 0x31a   :  { %v2388_v56 = vxor.u32 2147483648, %v3545_v43  ;;  %v2662_v9 = vadd.s32 536870912, %v2661_v14  ;;  %v2825_v13 = vshrl.u32 %v5788_v24, %v2822_v4  ;;  %vm5633_vm4 = vcmp.le.f32.partialorder %v2498_v27, 0.7853982 }
 0x31b   :  { %v2392_v58 = vsel %vm2390_vm1, %v2391_v63, %v3545_v43  ;;  %v2573_v44 = vor.u32 %v2572_v26, %v2571_v33  ;;  %v2576_v36 = vshll.u32 %v2575_v45, 23  ;;  %v2820_v51 = vshrl.u32 %v2819_v23, 5  ;;  %v5833_v23 = vld [vmem:[#allocation6_spill] sm:$0xff] }
 0x31c   :  { %v2389_v54 = vsel %vm2387_vm2, %v3543_v10, %v2388_v56  ;;  %v2828_v40 = vshrl.u32 %v5793_v62, %v2822_v4  ;;  %v5640_v11 = vshrl.u32 %v2662_v9, 30  ;;  %v2824_v7 = vshll.u32 %v5781_v17, %v2821_v38 }
 0x31d   :  { %v2393_v29 = vsel %vm2386_vm14, %v2389_v54, %v2392_v58  ;;  %v2577_v19 = vor.u32 4788187, %v2576_v36  ;;  %v2827_v52 = vshll.u32 %v5788_v24, %v2821_v38  ;;  %v2580_v49 = vcvt.s32.f32 %v2573_v44 }
 0x31e   :  { %v2394_v2 = vsel %vm2384_vm13, nan, %v2393_v29  ;;  %v2830_v27 = vshll.u32 %v5793_v62, %v2821_v38  ;;  %v2831_v22 = vshrl.u32 %v5789_v20, %v2822_v4  ;;  %v2664_v50 = vshll.u32 %v5640_v11, 30 }
 0x31f   :  { %3132 = vst [vmem:[#allocation2 + $0x80] sm:$0xff] %v2394_v2  ;;  %v2578_v39 = vand.u32 2147483647, %v2577_v19  ;;  %v2826_v34 = vor.u32 %v2825_v13, %v2824_v7  ;;  %v2833_v53 = vshll.u32 %v5789_v20, %v2821_v38  ;;  %v2834_v1 = vshrl.u32 %v3589_v0, %v2822_v4 }
 0x320   :  { %v2829_v47 = vor.u32 %v2828_v40, %v2827_v52  ;;  %v2832_v5 = vor.u32 %v2831_v22, %v2830_v27  ;;  %v2837_v35 = vshrl.u32 %v3590_v42, %v2822_v4  ;;  %v2665_v46 = vsub.s32 %v2661_v14, %v2664_v50 }
 0x321   :  { %v2581_v32 = vmul.f32 %v2580_v49, %v2578_v39  ;;  %v2835_v16 = vor.u32 %v2834_v1, %v2833_v53  ;;  %v2836_v59 = vshll.u32 %v3589_v0, %v2821_v38  ;;  %v601_v8 = vadd.f32 %v511_v28, %v5833_v23 }
 0x322   :  { %v2584_v31 = vsub.s32 4, %v5582_v55  ;;  %v2823_v21 = vshrl.u32 %v5781_v17, %v2822_v4  ;;  %v2855_v10 = vshll.u32 %v2815_v12, 8  ;;  %v2667_v33 = vsub.s32 0, %v2665_v46 }
 0x323   :  { %v2582_v57 = vxor.u32 2147483648, %v2581_v32  ;;  %v2838_v60 = vor.u32 %v2837_v35, %v2836_v59  ;;  %vm2839_vm5 = vcmp.lt.s32.totalorder %v2820_v51, 1  ;;  %vm2842_vm6 = vcmp.lt.s32.totalorder %v2820_v51, 4 }
 0x324   :  { %v2844_v63 = vsel %vm2842_vm6, %v2832_v5, 2102212464  ;;  %v2847_v26 = vsel %vm2839_vm5, %v2826_v34, %v2829_v47  ;;  %v2848_v38 = vsel %vm2842_vm6, %v2835_v16, 920167782  ;;  %v3266_v61 = vmin.u32 %v2667_v33, %v2665_v46 }
 0x325   :  { %v2583_v43 = vsel %vm2500_vm3, %v2582_v57, %v2581_v32  ;;  %vm2841_vm7 = vcmp.lt.s32.totalorder %v2820_v51, 3  ;;  %v5663_v56 = vadd.f32 %v3862_v15, %v601_v8  ;;  %vm2840_vm8 = vcmp.lt.s32.totalorder %v2820_v51, 2 }
 0x326   :  { %v2586_v45 = vsel %vm5633_vm4, %v5434_v18, %v2583_v43  ;;  %v2843_v14 = vsel %vm2839_vm5, %v2823_v21, %v2826_v34  ;;  %v2849_v4 = vsel %vm2841_vm7, %v2832_v5, %v2848_v38  ;;  %v2669_v58 = vclz %v3266_v61 }
 0x327   :  { %3546 = vcosq.f32 %v2586_v45  ;;  %v2845_v44 = vsel %vm2841_vm7, %v2829_v47, %v2844_v63  ;;  %v2850_v36 = vsel %vm2840_vm8, %v2847_v26, %v2849_v4  ;;  %v2851_v54 = vsel %vm2839_vm5, %v2829_v47, %v2832_v5 }
 0x328   :  { %3548 = vsinq.f32 %v2586_v45  ;;  %v2852_v9 = vsel %vm2842_vm6, %v2838_v60, 1326507024  ;;  %v5669_v12 = vmul.u32.u64.low %v2855_v10, %v2850_v36  ;;  %v5670_v13 = vmul.u32.u64.high %v2855_v10, %v2850_v36, %v5669_v12 }
 0x329   :  { %v3267_v15 = vadd.s32 4294967294, %v2669_v58  ;;  %v2853_v29 = vsel %vm2841_vm7, %v2835_v16, %v2852_v9  ;;  %v2585_v19 = vsel %vm2500_vm3, %v2584_v31, %v5582_v55  ;;  %v2913_v2 = vand.u32 2139095040, %v5663_v56 }
 0x32a   :  { %v2854_v40 = vsel %vm2840_vm8, %v2851_v54, %v2853_v29  ;;  %v2846_v7 = vsel %vm2840_vm8, %v2843_v14, %v2845_v44  ;;  %v2865_v27 = vadd.s32 1, %v5670_v13  ;;  %v2587_v28 = vsel %vm5633_vm4, 0, %v2585_v19 }
 0x32b   :  { %vm3268_vm9 = vcmp.lt.s32.totalorder %v3267_v15, 0  ;;  %v5679_v52 = vmul.u32.u64.low %v2855_v10, %v2854_v40  ;;  %v5680_v39 = vmul.u32.u64.high %v2855_v10, %v2854_v40, %v5679_v52  ;;  %v2914_v22 = vshrl.u32 %v2913_v2, 23 }
 0x32c   :  { %v2672_v49 = vsel %vm3268_vm9, 0, %v3267_v15  ;;  %v2657_v55 = vadd.s32 %v5606_v30, %v5611_v25  ;;  %v2862_v53 = vmul.u32 %v2855_v10, %v2846_v7  ;;  %v2591_v5 = vand.u32 3, %v2587_v28 }
 0x32d   :  { %v2673_v50 = vsub.s32 32, %v2672_v49  ;;  %v2677_v34 = vsub.s32 4294967266, %v2672_v49  ;;  %v3277_v1 = vadd.s32 4294967169, %v2914_v22  ;;  %v2674_v32 = vshll.u32 %v2665_v46, %v2672_v49 }
 0x32e   :  { %vm2864_vm10 = vc.u32 %v5680_v39, %v5669_v12  ;;  %vm2590_vm11 = vweird.f32 %v5434_v18  ;;  %v2910_v30 = vand.u32 2147483647, %v5663_v56  ;;  %vm5694_vm15 = vcmp.le.f32.partialorder %v2601_v37, 0.7853982 }
 0x32f   :  { %v2675_v51 = vshrl.u32 %v2657_v55, %v2673_v50  ;;  %v2678_v47 = vadd.s32 127, %v2677_v34  ;;  %v2866_v35 = vsel %vm2864_vm10, %v2865_v27, %v5670_v13  ;;  %v2920_v16 = vadd.s32 1, %v3277_v1 }
 0x330   :  { %v2867_v23 = vadd.s32 %v2866_v35, %v2862_v53  ;;  %vm2603_vm12 = vcmp.lt.s32.totalorder %v5480_v3, 0  ;;  %vm2593_vm14 = vcmp.eq.s32.totalorder %v2591_v5, 0  ;;  %vm2596_vm0 = vcmp.eq.s32.totalorder %v2591_v5, 2 }
 0x331   :  { %v2676_v59 = vor.u32 %v2675_v51, %v2674_v32  ;;  %v2679_v48 = vshll.u32 %v2678_v47, 23  ;;  %vm2921_vm13 = vcmp.gt.s32.totalorder %v2920_v16, 0  ;;  %v2687_v37 = vsub.s32 4, %v5640_v11 }
 0x332   :  { %v2868_v57 = vadd.s32 536870912, %v2867_v23  ;;  %v2922_v31 = vsel %vm2921_vm13, %v2920_v16, 0  ;;  %v2917_v45 = vand.u32 8388607, %v2910_v30  ;;  %vm2592_vm1 = vcmp.lt.s32.totalorder %v2591_v5, 2 }
 0x333   :  { %v2680_v8 = vor.u32 4788187, %v2679_v48  ;;  %v2924_v33 = vand.u32 31, %v2922_v31  ;;  %v2683_v63 = vcvt.s32.f32 %v2676_v59  ;;  %v2688_v40 = vsel %vm2603_vm12, %v2687_v37, %v5640_v11 }
 0x334   :  { %v3547_v25 = vpop.eup %3546  ;;  %v5699_v26 = vshrl.u32 %v2868_v57, 30  ;;  %v2918_v2 = vor.u32 8388608, %v2917_v45  ;;  %v2923_v7 = vshrl.u32 %v2922_v31, 5  ;;  %v2690_v50 = vsel %vm5694_vm15, 0, %v2688_v40 }
 0x335   :  { %v3549_v21 = vpop.eup %3548  ;;  %v2597_v10 = vxor.u32 2147483648, %v3547_v25  ;;  %v2681_v43 = vand.u32 2147483647, %v2680_v8  ;;  %v2925_v61 = vsub.s32 32, %v2924_v33  ;;  %v2927_v36 = vshll.u32 %v5781_v17, %v2924_v33 }
 0x336   :  { %v2594_v60 = vxor.u32 2147483648, %v3549_v21  ;;  %v2870_v58 = vshll.u32 %v5699_v26, 30  ;;  %v2930_v19 = vshll.u32 %v5788_v24, %v2924_v33  ;;  %v2936_v55 = vshll.u32 %v5789_v20, %v2924_v33 }
 0x337   :  { %v2598_v38 = vsel %vm2596_vm0, %v2597_v10, %v3549_v21  ;;  %v2684_v4 = vmul.f32 %v2683_v63, %v2681_v43  ;;  %v2928_v54 = vshrl.u32 %v5788_v24, %v2925_v61  ;;  %v2931_v9 = vshrl.u32 %v5793_v62, %v2925_v61 }
 0x338   :  { %v2595_v14 = vsel %vm2593_vm14, %v3547_v25, %v2594_v60  ;;  %v2871_v29 = vsub.s32 %v2867_v23, %v2870_v58  ;;  %v2934_v18 = vshrl.u32 %v5789_v20, %v2925_v61  ;;  %v2933_v24 = vshll.u32 %v5793_v62, %v2924_v33 }
 0x339   :  { %v2599_v44 = vsel %vm2592_vm1, %v2595_v14, %v2598_v38  ;;  %v2685_v15 = vxor.u32 2147483648, %v2684_v4  ;;  %v2929_v52 = vor.u32 %v2928_v54, %v2927_v36  ;;  %v2932_v22 = vor.u32 %v2931_v9, %v2930_v19 }
 0x33a   :  { %v2600_v13 = vsel %vm2590_vm11, nan, %v2599_v44  ;;  %v2873_v27 = vsub.s32 0, %v2871_v29  ;;  %v2937_v11 = vshrl.u32 %v3589_v0, %v2925_v61  ;;  %v2935_v53 = vor.u32 %v2934_v18, %v2933_v24 }
 0x33b   :  { %3134 = vst [vmem:[#allocation2 + $0x90] sm:$0xff] %v2600_v13  ;;  %v2686_v49 = vsel %vm2603_vm12, %v2685_v15, %v2684_v4  ;;  %v2958_v32 = vshll.u32 %v2918_v2, 8  ;;  %v2939_v47 = vshll.u32 %v3589_v0, %v2924_v33  ;;  %v2940_v5 = vshrl.u32 %v3590_v42, %v2925_v61 }
 0x33c   :  { %v2689_v28 = vsel %vm5694_vm15, %v5480_v3, %v2686_v49  ;;  %v3274_v34 = vmin.u32 %v2873_v27, %v2871_v29  ;;  %v2938_v1 = vor.u32 %v2937_v11, %v2936_v55  ;;  %vm2942_vm2 = vcmp.lt.s32.totalorder %v2923_v7, 1 }
 0x33d   :  { %3550 = vcosq.f32 %v2689_v28  ;;  %v2926_v62 = vshrl.u32 %v5781_v17, %v2925_v61  ;;  %vm2944_vm3 = vcmp.lt.s32.totalorder %v2923_v7, 3  ;;  %vm2945_vm4 = vcmp.lt.s32.totalorder %v2923_v7, 4 }
 0x33e   :  { %3552 = vsinq.f32 %v2689_v28  ;;  %v2875_v51 = vclz %v3274_v34  ;;  %v2950_v20 = vsel %vm2942_vm2, %v2929_v52, %v2932_v22  ;;  %v2941_v16 = vor.u32 %v2940_v5, %v2939_v47 }
 0x33f   :  { %v2947_v59 = vsel %vm2945_vm4, %v2935_v53, 2102212464  ;;  %v2951_v48 = vsel %vm2945_vm4, %v2938_v1, 920167782  ;;  %vm2943_vm5 = vcmp.lt.s32.totalorder %v2923_v7, 2  ;;  %v2946_v23 = vsel %vm2942_vm2, %v2926_v62, %v2929_v52 }
 0x340   :  { %v3275_v35 = vadd.s32 4294967294, %v2875_v51  ;;  %v2952_v25 = vsel %vm2944_vm3, %v2935_v53, %v2951_v48  ;;  %v2954_v46 = vsel %vm2942_vm2, %v2932_v22, %v2935_v53  ;;  %v2948_v0 = vsel %vm2944_vm3, %v2932_v22, %v2947_v59 }
 0x341   :  { %v2953_v42 = vsel %vm2943_vm5, %v2950_v20, %v2952_v25  ;;  %v2955_v8 = vsel %vm2945_vm4, %v2941_v16, 1326507024  ;;  %v2863_v10 = vadd.s32 %v5669_v12, %v5680_v39  ;;  %v2949_v14 = vsel %vm2943_vm5, %v2946_v23, %v2948_v0 }
 0x342   :  { %vm3276_vm6 = vcmp.lt.s32.totalorder %v3275_v35, 0  ;;  %v2956_v17 = vsel %vm2944_vm3, %v2938_v1, %v2955_v8  ;;  %v5732_v31 = vmul.u32.u64.low %v2958_v32, %v2953_v42  ;;  %v5733_v21 = vmul.u32.u64.high %v2958_v32, %v2953_v42, %v5732_v31 }
 0x343   :  { %v2878_v57 = vsel %vm3276_vm6, 0, %v3275_v35  ;;  %v2957_v43 = vsel %vm2943_vm5, %v2954_v46, %v2956_v17  ;;  %v2694_v4 = vand.u32 3, %v2690_v50  ;;  %v2965_v9 = vmul.u32 %v2958_v32, %v2949_v14 }
 0x344   :  { %v2879_v33 = vsub.s32 32, %v2878_v57  ;;  %v2883_v60 = vsub.s32 4294967266, %v2878_v57  ;;  %v5738_v63 = vmul.u32.u64.low %v2958_v32, %v2957_v43  ;;  %v5739_v38 = vmul.u32.u64.high %v2958_v32, %v2957_v43, %v5738_v63 }
 0x345   :  { %v2880_v37 = vshll.u32 %v2871_v29, %v2878_v57  ;;  %v2968_v58 = vadd.s32 1, %v5733_v21  ;;  %vm2699_vm8 = vcmp.eq.s32.totalorder %v2694_v4, 2  ;;  %vm2696_vm9 = vcmp.eq.s32.totalorder %v2694_v4, 0 }
 0x346   :  { %v2881_v45 = vshrl.u32 %v2863_v10, %v2879_v33  ;;  %v2884_v61 = vadd.s32 127, %v2883_v60  ;;  %vm2967_vm7 = vc.u32 %v5739_v38, %v5732_v31  ;;  %vm2695_vm10 = vcmp.lt.s32.totalorder %v2694_v4, 2 }
 0x347   :  { %v2969_v15 = vsel %vm2967_vm7, %v2968_v58, %v5733_v21  ;;  %vm2693_vm11 = vweird.f32 %v5480_v3  ;;  %vm2809_vm13 = vcmp.lt.s32.totalorder %v5556_v6, 0  ;;  %vm2808_vm15 = vcmp.le.f32.partialorder %v2807_v41, 0.7853982 }
 0x348   :  { %v2882_v44 = vor.u32 %v2881_v45, %v2880_v37  ;;  %v2885_v36 = vshll.u32 %v2884_v61, 23  ;;  %v2970_v29 = vadd.s32 %v2969_v15, %v2965_v9  ;;  %v2893_v53 = vsub.s32 4, %v5699_v26 }
 0x349   :  { %v2966_v41 = vadd.s32 %v5732_v31, %v5739_v38  ;;  %vm2899_vm2 = vweird.f32 %v5556_v6  ;;  %vm2912_vm3 = vcmp.lt.s32.totalorder %v5663_v56, 0  ;;  %vm2911_vm4 = vcmp.le.f32.partialorder %v2910_v30, 0.7853982 }
 0x34a   :  { %v3551_v54 = vpop.eup %3550  ;;  %v2886_v13 = vor.u32 4788187, %v2885_v36  ;;  %v2889_v7 = vcvt.s32.f32 %v2882_v44  ;;  %v2971_v49 = vadd.s32 536870912, %v2970_v29  ;;  %v2894_v32 = vsel %vm2809_vm13, %v2893_v53, %v5699_v26 }
 0x34b   :  { %v3553_v12 = vpop.eup %3552  ;;  %v2700_v39 = vxor.u32 2147483648, %v3551_v54  ;;  %v2896_v5 = vsel %vm2808_vm15, 0, %v2894_v32 }
 0x34c   :  { %v2697_v19 = vxor.u32 2147483648, %v3553_v12  ;;  %v2887_v2 = vand.u32 2147483647, %v2886_v13  ;;  %v2972_v28 = vshrl.u32 %v2971_v49, 30  ;;  %v2900_v20 = vand.u32 3, %v2896_v5 }
 0x34d   :  { %v2701_v40 = vsel %vm2699_vm8, %v2700_v39, %v3553_v12  ;;  %vm3002_vm8 = vweird.f32 %v5663_v56 }
 0x34e   :  { %v2698_v52 = vsel %vm2696_vm9, %v3551_v54, %v2697_v19  ;;  %v2890_v22 = vmul.f32 %v2889_v7, %v2887_v2  ;;  %v2973_v55 = vshll.u32 %v2972_v28, 30  ;;  %vm2905_vm14 = vcmp.eq.s32.totalorder %v2900_v20, 2 }
 0x34f   :  { %v2702_v27 = vsel %vm2695_vm10, %v2698_v52, %v2701_v40  ;;  %vm2902_vm0 = vcmp.eq.s32.totalorder %v2900_v20, 0  ;;  %vm2901_vm1 = vcmp.lt.s32.totalorder %v2900_v20, 2  ;;  %v2996_v45 = vsub.s32 4, %v2972_v28 }
 0x350   :  { %v2703_v18 = vsel %vm2693_vm11, nan, %v2702_v27  ;;  %v2891_v24 = vxor.u32 2147483648, %v2890_v22  ;;  %v2974_v34 = vsub.s32 %v2970_v29, %v2973_v55 }
 0x351   :  { %3135 = vst [vmem:[#allocation2 + $0x98] sm:$0xff] %v2703_v18  ;;  %v2997_v61 = vsel %vm2912_vm3, %v2996_v45, %v2972_v28 }
 0x352   :  { %v2892_v11 = vsel %vm2809_vm13, %v2891_v24, %v2890_v22  ;;  %v2976_v3 = vsub.s32 0, %v2974_v34 }
 0x353   :  { %v2895_v50 = vsel %vm2808_vm15, %v5556_v6, %v2892_v11  ;;  %v2999_v6 = vsel %vm2911_vm4, 0, %v2997_v61 }
 0x354   :  { %3554 = vcosq.f32 %v2895_v50  ;;  %v3278_v1 = vmin.u32 %v2976_v3, %v2974_v34  ;;  %v3003_v14 = vand.u32 3, %v2999_v6 }
 0x355   :  { %3556 = vsinq.f32 %v2895_v50 }
 0x356   :  { %v2978_v51 = vclz %v3278_v1  ;;  %vm3008_vm5 = vcmp.eq.s32.totalorder %v3003_v14, 2  ;;  %vm3005_vm6 = vcmp.eq.s32.totalorder %v3003_v14, 0  ;;  %vm3004_vm7 = vcmp.lt.s32.totalorder %v3003_v14, 2 }
 0x358   :  { %v3279_v47 = vadd.s32 4294967294, %v2978_v51 }
 0x35a   :  { %vm3280_vm12 = vcmp.lt.s32.totalorder %v3279_v47, 0 }
 0x35b   :  { %v2981_v62 = vsel %vm3280_vm12, 0, %v3279_v47 }
 0x35c   :  { %v2982_v35 = vsub.s32 32, %v2981_v62  ;;  %v2986_v16 = vsub.s32 4294967266, %v2981_v62  ;;  %v2983_v48 = vshll.u32 %v2974_v34, %v2981_v62 }
 0x35e   :  { %v2984_v23 = vshrl.u32 %v2966_v41, %v2982_v35  ;;  %v2987_v25 = vadd.s32 127, %v2986_v16 }
 0x360   :  { %v2985_v8 = vor.u32 %v2984_v23, %v2983_v48  ;;  %v2988_v26 = vshll.u32 %v2987_v25, 23 }
 0x361   :  { %v3555_v59 = vpop.eup %3554 }
 0x362   :  { %v3557_v46 = vpop.eup %3556  ;;  %v2906_v0 = vxor.u32 2147483648, %v3555_v59  ;;  %v2989_v21 = vor.u32 4788187, %v2988_v26  ;;  %v2992_v60 = vcvt.s32.f32 %v2985_v8 }
 0x363   :  { %v2903_v42 = vxor.u32 2147483648, %v3557_v46 }
 0x364   :  { %v2907_v57 = vsel %vm2905_vm14, %v2906_v0, %v3557_v46  ;;  %v2990_v33 = vand.u32 2147483647, %v2989_v21 }
 0x365   :  { %v2904_v17 = vsel %vm2902_vm0, %v3555_v59, %v2903_v42 }
 0x366   :  { %v2908_v31 = vsel %vm2901_vm1, %v2904_v17, %v2907_v57  ;;  %v2993_v43 = vmul.f32 %v2992_v60, %v2990_v33 }
 0x367   :  { %v2909_v10 = vsel %vm2899_vm2, nan, %v2908_v31 }
 0x368   :  { %3137 = vst [vmem:[#allocation2 + $0xa8] sm:$0xff] %v2909_v10  ;;  %v2994_v63 = vxor.u32 2147483648, %v2993_v43 }
 0x36a   :  { %v2995_v38 = vsel %vm2912_vm3, %v2994_v63, %v2993_v43 }
 0x36b   :  { %v2998_v37 = vsel %vm2911_vm4, %v5663_v56, %v2995_v38 }
 0x36c   :  { %3558 = vcosq.f32 %v2998_v37 }
 0x36d   :  { %3560 = vsinq.f32 %v2998_v37 }
 0x379   :  { %v3559_v4 = vpop.eup %3558 }
 0x37a   :  { %v3561_v58 = vpop.eup %3560  ;;  %v3009_v44 = vxor.u32 2147483648, %v3559_v4 }
 0x37b   :  { %v3006_v36 = vxor.u32 2147483648, %v3561_v58 }
 0x37c   :  { %v3010_v54 = vsel %vm3008_vm5, %v3009_v44, %v3561_v58 }
 0x37d   :  { %v3007_v30 = vsel %vm3005_vm6, %v3559_v4, %v3006_v36 }
 0x37e   :  { %v3011_v9 = vsel %vm3004_vm7, %v3007_v30, %v3010_v54 }
 0x37f   :  { %v3012_v12 = vsel %vm3002_vm8, nan, %v3011_v9 }
 0x380   :  { %3138 = vst [vmem:[#allocation2 + $0xb0] sm:$0xff] %v3012_v12 }
 0x381   :  { %3573 = shalt.err (!%p3570_p4)
}
 0x382   :  { %s3592_s21 = smov 384   ;;  %s3593_s22 = smov 24  }
 0x383   :  { %3151 = dma.vmem_to_hbm [thread:$0]  %s3146_s19, 3072, %s5765_s3, [#allocation3], %s3592_s21, %s3592_s21, %s3593_s22  }
 0x384   :  { %3582 = dma.done.wait [#allocation3], 3072  }
 0x385   :  { %3583 = vsyncadd [#allocation3], 4294964224 }
 0x386   :  { %3155 = vsyncpa [#allocation3], 1 }

</bundles_post_ra>
